<compile_context>
chip_gen: v7x
topology: tpu7x:2x2x1
jax: 0.10.0
libtpu: 0.0.40
codegen_flags: <defaults>
</compile_context>

<pallas_src>
import functools

import jax
import jax.numpy as jnp
from jax import lax
from jax.experimental import pallas as pl
from jax.experimental.pallas import tpu as pltpu

_OUT_PAD = 128  # lane-padded width of the FC-head output block

# Source gate order (PyTorch / harness): 0=i, 1=f, 2=g, 3=o.
# Kernel gate order: [i, f, o, g] -> sigmoid over slots 0..2, tanh over slot 3.
_GATE_ORDER = (0, 1, 3, 2)  # destination slot k takes source gate _GATE_ORDER[k]


def lstm_kernel(xp_ref, whh0_ref, wih1_ref, whh1_ref, b1_ref, wfc_ref, bfc_ref,
                out_ref, *, seq_len, hidden_pad):
    """2-layer LSTM recurrence (input projection precomputed) + Linear head."""
    Hp = hidden_pad
    B = out_ref.shape[0]

    # Tiny (few vregs); hoisted so the broadcast isn't re-emitted every step.
    b1v = jnp.broadcast_to(b1_ref[...], (B, 4 * Hp))

    def gate_act(gates, c_prev):
        # Gates laid out [i, f, o, g]: one sigmoid over the contiguous 3*Hp
        # lanes, one tanh over the last Hp lanes.  All slice offsets are
        # multiples of 128 lanes (Hp=128) -> no lane rotates.
        sig = jax.nn.sigmoid(gates[:, :3 * Hp])
        g = jnp.tanh(gates[:, 3 * Hp:])
        i = sig[:, 0:Hp]
        f = sig[:, Hp:2 * Hp]
        o = sig[:, 2 * Hp:3 * Hp]
        c_new = f * c_prev + i * g
        h_new = o * jnp.tanh(c_new)
        return h_new, c_new

    def step(t, carry):
        h0, c0, h1, c1 = carry
        # Layer-1 recurrent dot does not depend on this step's layer-0 output;
        # issue it first so it can overlap with layer-0 compute.
        rec1 = jnp.dot(h1, whh1_ref[...], preferred_element_type=jnp.float32)
        gates0 = xp_ref[t] + jnp.dot(h0, whh0_ref[...],
                                     preferred_element_type=jnp.float32)
        h0, c0 = gate_act(gates0, c0)
        gates1 = rec1 + b1v + jnp.dot(h0, wih1_ref[...],
                                      preferred_element_type=jnp.float32)
        h1, c1 = gate_act(gates1, c1)
        return (h0, c0, h1, c1)

    zeros = jnp.zeros((B, Hp), jnp.float32)  # torch.zeros initial states
    _, _, h1, _ = lax.fori_loop(0, seq_len, step, (zeros, zeros, zeros, zeros),
                                unroll=True)

    # Linear(H, 1) head folded into the epilogue; lane-dense (B, 128) store.
    out_ref[...] = (jnp.dot(h1, wfc_ref[...], preferred_element_type=jnp.float32)
                    + bfc_ref[...])


def _pad_gate_cols(w, H, Hp):
    """(rows, 4H) with gate order (i,f,g,o) -> (rows, 4Hp) with order [i,f,o,g],
    gate k occupying columns [k*Hp, k*Hp+H); padded columns are zero."""
    rows = w.shape[0]
    out = jnp.zeros((rows, 4 * Hp), jnp.float32)
    for k, src in enumerate(_GATE_ORDER):
        out = out.at[:, k * Hp:k * Hp + H].set(w[:, src * H:(src + 1) * H])
    return out


def prepare_params(params):
    """One-time weight fusion / padding / gate reordering.  Cache the result.

    NOTE: the harness stores LSTM weights as (in_features, 4H) with gate order
    (i, f, g, o) and a pre-folded b_ih + b_hh.  Real PyTorch nn.LSTM weights are
    (4H, in) with separate biases -- transpose and fold before calling this.
    """
    H = params["hidden_size"]
    Hp = pl.cdiv(H, 128) * 128          # lane-aligned hidden width (128 here)

    def pad_rows(w):
        return jnp.pad(w, ((0, Hp - w.shape[0]), (0, 0)))

    wfc = jnp.zeros((Hp, _OUT_PAD), jnp.float32).at[:H, :1].set(params["wfc"])
    bfc = jnp.zeros((1, _OUT_PAD), jnp.float32).at[:, :1].set(params["bfc"])
    return dict(
        wih0=_pad_gate_cols(params["wih0"], H, Hp),            # (I,  4*Hp)
        b0=_pad_gate_cols(params["b0"], H, Hp),                # (1,  4*Hp)
        whh0=pad_rows(_pad_gate_cols(params["whh0"], H, Hp)),  # (Hp, 4*Hp)
        wih1=pad_rows(_pad_gate_cols(params["wih1"], H, Hp)),  # (Hp, 4*Hp)
        whh1=pad_rows(_pad_gate_cols(params["whh1"], H, Hp)),  # (Hp, 4*Hp)
        b1=_pad_gate_cols(params["b1"], H, Hp),                # (1,  4*Hp)
        wfc=wfc,                                               # (Hp, 128)
        bfc=bfc,                                               # (1,  128)
    )


def _lstm_forward_impl(x, p):
    """x: (B, T, I) float32 (PyTorch batch_first layout). Returns (B, 1)."""
    B, T, I = x.shape
    Hp = p["whh0"].shape[0]

    # Hoisted layer-0 input projection: one batched dot over all T steps,
    # entirely off the serial recurrence critical path.
    x_t = jnp.transpose(x, (1, 0, 2))                          # (T, B, I)
    xp = jnp.einsum("tbi,ig->tbg", x_t, p["wih0"]) + p["b0"]   # (T, B, 4*Hp)

    kernel = functools.partial(lstm_kernel, seq_len=T, hidden_pad=Hp)
    out_pad = pl.pallas_call(
        kernel,
        out_shape=jax.ShapeDtypeStruct((B, _OUT_PAD), jnp.float32),
        grid_spec=pltpu.PrefetchScalarGridSpec(
            num_scalar_prefetch=0,
            grid=(1,),                                         # single invocation
            in_specs=[
                pl.BlockSpec((T, B, 4 * Hp), lambda i: (0, 0, 0)),  # x projection
                pl.BlockSpec((Hp, 4 * Hp), lambda i: (0, 0)),       # W_hh layer 0
                pl.BlockSpec((Hp, 4 * Hp), lambda i: (0, 0)),       # W_ih layer 1
                pl.BlockSpec((Hp, 4 * Hp), lambda i: (0, 0)),       # W_hh layer 1
                pl.BlockSpec((1, 4 * Hp), lambda i: (0, 0)),        # bias layer 1
                pl.BlockSpec((Hp, _OUT_PAD), lambda i: (0, 0)),     # FC weight
                pl.BlockSpec((1, _OUT_PAD), lambda i: (0, 0)),      # FC bias
            ],
            out_specs=pl.BlockSpec((B, _OUT_PAD), lambda i: (0, 0)),
        ),
        compiler_params=pltpu.CompilerParams(
            dimension_semantics=("arbitrary",)),               # serial recurrence
    )(xp, p["whh0"], p["wih1"], p["whh1"], p["b1"], p["wfc"], p["bfc"])

    return out_pad[:, :1]


# Whole forward (pad/transpose/projection + pallas_call + head slice) in one jit.
lstm_forward = jax.jit(_lstm_forward_impl)


def lstm_ref(x, params):
    """Pure-JAX reference (same math as PyTorch nn.LSTM + Linear)."""
    H = params["hidden_size"]
    B, T, _ = x.shape

    def cell(x_in, h, c, wih, whh, b):
        gates = x_in @ wih + h @ whh + b
        i = jax.nn.sigmoid(gates[:, 0:H])
        f = jax.nn.sigmoid(gates[:, H:2 * H])
        g = jnp.tanh(gates[:, 2 * H:3 * H])
        o = jax.nn.sigmoid(gates[:, 3 * H:4 * H])
        c = f * c + i * g
        h = o * jnp.tanh(c)
        return h, c

    h0 = c0 = h1 = c1 = jnp.zeros((B, H), jnp.float32)
    for t in range(T):
        h0, c0 = cell(x[:, t], h0, c0, params["wih0"], params["whh0"], params["b0"])
        h1, c1 = cell(h0, h1, c1, params["wih1"], params["whh1"], params["b1"])
    return h1 @ params["wfc"] + params["bfc"]


if __name__ == "__main__":
    B, T, I, H = 2, 8, 18, 50  # batch, seq_len, input_size, hidden_size

    key = jax.random.PRNGKey(0)
    ks = jax.random.split(key, 10)
    std = 1.0 / jnp.sqrt(jnp.float32(H))  # PyTorch default U(-1/sqrt(H), 1/sqrt(H))

    def u(k, shape):
        return jax.random.uniform(k, shape, jnp.float32, -std, std)

    params = dict(
        hidden_size=H,
        wih0=u(ks[0], (I, 4 * H)),     # (in_features, 4H): gates = x @ W
        whh0=u(ks[1], (H, 4 * H)),
        b0=u(ks[2], (1, 4 * H)),       # b_ih + b_hh folded
        wih1=u(ks[3], (H, 4 * H)),
        whh1=u(ks[4], (H, 4 * H)),
        b1=u(ks[5], (1, 4 * H)),
        wfc=u(ks[6], (H, 1)),
        bfc=u(ks[7], (1, 1)),
    )

    x = jax.random.normal(ks[8], (B, T, I), jnp.float32)

    # One-time (cached) weight preparation -- off the per-call path.
    prepped = prepare_params(params)
    prepped = jax.tree_util.tree_map(jax.block_until_ready, prepped)

    out = jax.block_until_ready(lstm_forward(x, prepped))
    ref = jax.block_until_ready(lstm_ref(x, params))

    assert out.shape == (B, 1), out.shape
    assert jnp.allclose(out, ref, atol=1e-5, rtol=1e-5), (out, ref)
    print("KERNEL_OK")
</pallas_src>

<mosaic_0001>
module attributes {stable_mosaic.version = 11 : i64} {
  func.func @lstm_kernel(%arg0: i32, %arg1: memref<8x2x512xf32, #tpu.memory_space<vmem>>, %arg2: memref<128x512xf32, #tpu.memory_space<vmem>>, %arg3: memref<128x512xf32, #tpu.memory_space<vmem>>, %arg4: memref<128x512xf32, #tpu.memory_space<vmem>>, %arg5: memref<1x512xf32, #tpu.memory_space<vmem>>, %arg6: memref<128x128xf32, #tpu.memory_space<vmem>>, %arg7: memref<1x128xf32, #tpu.memory_space<vmem>>, %arg8: memref<2x128xf32, #tpu.memory_space<vmem>>) attributes {dimension_semantics = [#tpu.dimension_semantics<arbitrary>], iteration_bounds = array<i64: 1>, scalar_prefetch = 0 : i64, scratch_operands = 0 : i64, tpu.core_type = #tpu.core_type<tc>, window_params = [{pipeline_mode = #tpu.pipeline_mode<synchronous>, transform_indices = @transform_0, window_bounds = array<i64: 8, 2, 512>}, {pipeline_mode = #tpu.pipeline_mode<synchronous>, transform_indices = @transform_1, window_bounds = array<i64: 128, 512>}, {pipeline_mode = #tpu.pipeline_mode<synchronous>, transform_indices = @transform_2, window_bounds = array<i64: 128, 512>}, {pipeline_mode = #tpu.pipeline_mode<synchronous>, transform_indices = @transform_3, window_bounds = array<i64: 128, 512>}, {pipeline_mode = #tpu.pipeline_mode<synchronous>, transform_indices = @transform_4, window_bounds = array<i64: 1, 512>}, {pipeline_mode = #tpu.pipeline_mode<synchronous>, transform_indices = @transform_5, window_bounds = array<i64: 128, 128>}, {pipeline_mode = #tpu.pipeline_mode<synchronous>, transform_indices = @transform_6, window_bounds = array<i64: 1, 128>}, {pipeline_mode = #tpu.pipeline_mode<synchronous>, transform_indices = @transform_7, window_bounds = array<i64: 2, 128>}]} {
    %c0 = arith.constant 0 : index
    %c0_0 = arith.constant 0 : index
    %0 = vector.load %arg5[%c0, %c0_0] : memref<1x512xf32, #tpu.memory_space<vmem>>, vector<1x512xf32>
    %1 = vector.shape_cast %0 : vector<1x512xf32> to vector<1x512xf32>
    %2 = vector.broadcast %1 : vector<1x512xf32> to vector<2x512xf32>
    %cst = arith.constant 0.000000e+00 : f32
    %3 = vector.broadcast %cst : f32 to vector<2x128xf32>
    %c0_i32 = arith.constant 0 : i32
    %c0_1 = arith.constant 0 : index
    %c0_2 = arith.constant 0 : index
    %4 = vector.load %arg4[%c0_1, %c0_2] : memref<128x512xf32, #tpu.memory_space<vmem>>, vector<128x512xf32>
    %cst_3 = arith.constant dense<0.000000e+00> : vector<2x512xf32>
    %5 = tpu.matmul %3, %4, %cst_3 {dimension_numbers = #tpu.dot_dimension_numbers<[1], [0], [0], [1], [0, 0, 1, 1], [], []>} : vector<2x128xf32>, vector<128x512xf32>, vector<2x512xf32> -> vector<2x512xf32>
    %6 = arith.index_cast %c0_i32 : i32 to index
    %c0_4 = arith.constant 0 : index
    %c0_5 = arith.constant 0 : index
    %7 = vector.load %arg1[%6, %c0_4, %c0_5] : memref<8x2x512xf32, #tpu.memory_space<vmem>>, vector<1x2x512xf32>
    %8 = vector.shape_cast %7 : vector<1x2x512xf32> to vector<2x512xf32>
    %c0_6 = arith.constant 0 : index
    %c0_7 = arith.constant 0 : index
    %9 = vector.load %arg2[%c0_6, %c0_7] : memref<128x512xf32, #tpu.memory_space<vmem>>, vector<128x512xf32>
    %cst_8 = arith.constant dense<0.000000e+00> : vector<2x512xf32>
    %10 = tpu.matmul %3, %9, %cst_8 {dimension_numbers = #tpu.dot_dimension_numbers<[1], [0], [0], [1], [0, 0, 1, 1], [], []>} : vector<2x128xf32>, vector<128x512xf32>, vector<2x512xf32> -> vector<2x512xf32>
    %11 = arith.addf %8, %10 : vector<2x512xf32>
    %12 = vector.extract_strided_slice %11 {offsets = [0, 0], sizes = [2, 384], strides = [1, 1]} : vector<2x512xf32> to vector<2x384xf32>
    %13 = arith.negf %12 : vector<2x384xf32>
    %14 = math.exp %13 : vector<2x384xf32>
    %cst_9 = arith.constant 1.000000e+00 : f32
    %15 = vector.broadcast %cst_9 : f32 to vector<2x384xf32>
    %16 = arith.addf %15, %14 : vector<2x384xf32>
    %17 = arith.divf %15, %16 : vector<2x384xf32>
    %18 = vector.extract_strided_slice %11 {offsets = [0, 384], sizes = [2, 128], strides = [1, 1]} : vector<2x512xf32> to vector<2x128xf32>
    %19 = math.tanh %18 : vector<2x128xf32>
    %20 = vector.extract_strided_slice %17 {offsets = [0, 0], sizes = [2, 128], strides = [1, 1]} : vector<2x384xf32> to vector<2x128xf32>
    %21 = vector.extract_strided_slice %17 {offsets = [0, 128], sizes = [2, 128], strides = [1, 1]} : vector<2x384xf32> to vector<2x128xf32>
    %22 = vector.extract_strided_slice %17 {offsets = [0, 256], sizes = [2, 128], strides = [1, 1]} : vector<2x384xf32> to vector<2x128xf32>
    %23 = arith.mulf %21, %3 : vector<2x128xf32>
    %24 = arith.mulf %20, %19 : vector<2x128xf32>
    %25 = arith.addf %23, %24 : vector<2x128xf32>
    %26 = math.tanh %25 : vector<2x128xf32>
    %27 = arith.mulf %22, %26 : vector<2x128xf32>
    %28 = arith.addf %5, %2 : vector<2x512xf32>
    %c0_10 = arith.constant 0 : index
    %c0_11 = arith.constant 0 : index
    %29 = vector.load %arg3[%c0_10, %c0_11] : memref<128x512xf32, #tpu.memory_space<vmem>>, vector<128x512xf32>
    %cst_12 = arith.constant dense<0.000000e+00> : vector<2x512xf32>
    %30 = tpu.matmul %27, %29, %cst_12 {dimension_numbers = #tpu.dot_dimension_numbers<[1], [0], [0], [1], [0, 0, 1, 1], [], []>} : vector<2x128xf32>, vector<128x512xf32>, vector<2x512xf32> -> vector<2x512xf32>
    %31 = arith.addf %28, %30 : vector<2x512xf32>
    %32 = vector.extract_strided_slice %31 {offsets = [0, 0], sizes = [2, 384], strides = [1, 1]} : vector<2x512xf32> to vector<2x384xf32>
    %33 = arith.negf %32 : vector<2x384xf32>
    %34 = math.exp %33 : vector<2x384xf32>
    %cst_13 = arith.constant 1.000000e+00 : f32
    %35 = vector.broadcast %cst_13 : f32 to vector<2x384xf32>
    %36 = arith.addf %35, %34 : vector<2x384xf32>
    %37 = arith.divf %35, %36 : vector<2x384xf32>
    %38 = vector.extract_strided_slice %31 {offsets = [0, 384], sizes = [2, 128], strides = [1, 1]} : vector<2x512xf32> to vector<2x128xf32>
    %39 = math.tanh %38 : vector<2x128xf32>
    %40 = vector.extract_strided_slice %37 {offsets = [0, 0], sizes = [2, 128], strides = [1, 1]} : vector<2x384xf32> to vector<2x128xf32>
    %41 = vector.extract_strided_slice %37 {offsets = [0, 128], sizes = [2, 128], strides = [1, 1]} : vector<2x384xf32> to vector<2x128xf32>
    %42 = vector.extract_strided_slice %37 {offsets = [0, 256], sizes = [2, 128], strides = [1, 1]} : vector<2x384xf32> to vector<2x128xf32>
    %43 = arith.mulf %41, %3 : vector<2x128xf32>
    %44 = arith.mulf %40, %39 : vector<2x128xf32>
    %45 = arith.addf %43, %44 : vector<2x128xf32>
    %46 = math.tanh %45 : vector<2x128xf32>
    %47 = arith.mulf %42, %46 : vector<2x128xf32>
    %c1_i32 = arith.constant 1 : i32
    %c0_14 = arith.constant 0 : index
    %c0_15 = arith.constant 0 : index
    %48 = vector.load %arg4[%c0_14, %c0_15] : memref<128x512xf32, #tpu.memory_space<vmem>>, vector<128x512xf32>
    %cst_16 = arith.constant dense<0.000000e+00> : vector<2x512xf32>
    %49 = tpu.matmul %47, %48, %cst_16 {dimension_numbers = #tpu.dot_dimension_numbers<[1], [0], [0], [1], [0, 0, 1, 1], [], []>} : vector<2x128xf32>, vector<128x512xf32>, vector<2x512xf32> -> vector<2x512xf32>
    %50 = arith.index_cast %c1_i32 : i32 to index
    %c0_17 = arith.constant 0 : index
    %c0_18 = arith.constant 0 : index
    %51 = vector.load %arg1[%50, %c0_17, %c0_18] : memref<8x2x512xf32, #tpu.memory_space<vmem>>, vector<1x2x512xf32>
    %52 = vector.shape_cast %51 : vector<1x2x512xf32> to vector<2x512xf32>
    %c0_19 = arith.constant 0 : index
    %c0_20 = arith.constant 0 : index
    %53 = vector.load %arg2[%c0_19, %c0_20] : memref<128x512xf32, #tpu.memory_space<vmem>>, vector<128x512xf32>
    %cst_21 = arith.constant dense<0.000000e+00> : vector<2x512xf32>
    %54 = tpu.matmul %27, %53, %cst_21 {dimension_numbers = #tpu.dot_dimension_numbers<[1], [0], [0], [1], [0, 0, 1, 1], [], []>} : vector<2x128xf32>, vector<128x512xf32>, vector<2x512xf32> -> vector<2x512xf32>
    %55 = arith.addf %52, %54 : vector<2x512xf32>
    %56 = vector.extract_strided_slice %55 {offsets = [0, 0], sizes = [2, 384], strides = [1, 1]} : vector<2x512xf32> to vector<2x384xf32>
    %57 = arith.negf %56 : vector<2x384xf32>
    %58 = math.exp %57 : vector<2x384xf32>
    %cst_22 = arith.constant 1.000000e+00 : f32
    %59 = vector.broadcast %cst_22 : f32 to vector<2x384xf32>
    %60 = arith.addf %59, %58 : vector<2x384xf32>
    %61 = arith.divf %59, %60 : vector<2x384xf32>
    %62 = vector.extract_strided_slice %55 {offsets = [0, 384], sizes = [2, 128], strides = [1, 1]} : vector<2x512xf32> to vector<2x128xf32>
    %63 = math.tanh %62 : vector<2x128xf32>
    %64 = vector.extract_strided_slice %61 {offsets = [0, 0], sizes = [2, 128], strides = [1, 1]} : vector<2x384xf32> to vector<2x128xf32>
    %65 = vector.extract_strided_slice %61 {offsets = [0, 128], sizes = [2, 128], strides = [1, 1]} : vector<2x384xf32> to vector<2x128xf32>
    %66 = vector.extract_strided_slice %61 {offsets = [0, 256], sizes = [2, 128], strides = [1, 1]} : vector<2x384xf32> to vector<2x128xf32>
    %67 = arith.mulf %65, %25 : vector<2x128xf32>
    %68 = arith.mulf %64, %63 : vector<2x128xf32>
    %69 = arith.addf %67, %68 : vector<2x128xf32>
    %70 = math.tanh %69 : vector<2x128xf32>
    %71 = arith.mulf %66, %70 : vector<2x128xf32>
    %72 = arith.addf %49, %2 : vector<2x512xf32>
    %c0_23 = arith.constant 0 : index
    %c0_24 = arith.constant 0 : index
    %73 = vector.load %arg3[%c0_23, %c0_24] : memref<128x512xf32, #tpu.memory_space<vmem>>, vector<128x512xf32>
    %cst_25 = arith.constant dense<0.000000e+00> : vector<2x512xf32>
    %74 = tpu.matmul %71, %73, %cst_25 {dimension_numbers = #tpu.dot_dimension_numbers<[1], [0], [0], [1], [0, 0, 1, 1], [], []>} : vector<2x128xf32>, vector<128x512xf32>, vector<2x512xf32> -> vector<2x512xf32>
    %75 = arith.addf %72, %74 : vector<2x512xf32>
    %76 = vector.extract_strided_slice %75 {offsets = [0, 0], sizes = [2, 384], strides = [1, 1]} : vector<2x512xf32> to vector<2x384xf32>
    %77 = arith.negf %76 : vector<2x384xf32>
    %78 = math.exp %77 : vector<2x384xf32>
    %cst_26 = arith.constant 1.000000e+00 : f32
    %79 = vector.broadcast %cst_26 : f32 to vector<2x384xf32>
    %80 = arith.addf %79, %78 : vector<2x384xf32>
    %81 = arith.divf %79, %80 : vector<2x384xf32>
    %82 = vector.extract_strided_slice %75 {offsets = [0, 384], sizes = [2, 128], strides = [1, 1]} : vector<2x512xf32> to vector<2x128xf32>
    %83 = math.tanh %82 : vector<2x128xf32>
    %84 = vector.extract_strided_slice %81 {offsets = [0, 0], sizes = [2, 128], strides = [1, 1]} : vector<2x384xf32> to vector<2x128xf32>
    %85 = vector.extract_strided_slice %81 {offsets = [0, 128], sizes = [2, 128], strides = [1, 1]} : vector<2x384xf32> to vector<2x128xf32>
    %86 = vector.extract_strided_slice %81 {offsets = [0, 256], sizes = [2, 128], strides = [1, 1]} : vector<2x384xf32> to vector<2x128xf32>
    %87 = arith.mulf %85, %45 : vector<2x128xf32>
    %88 = arith.mulf %84, %83 : vector<2x128xf32>
    %89 = arith.addf %87, %88 : vector<2x128xf32>
    %90 = math.tanh %89 : vector<2x128xf32>
    %91 = arith.mulf %86, %90 : vector<2x128xf32>
    %c2_i32 = arith.constant 2 : i32
    %c0_27 = arith.constant 0 : index
    %c0_28 = arith.constant 0 : index
    %92 = vector.load %arg4[%c0_27, %c0_28] : memref<128x512xf32, #tpu.memory_space<vmem>>, vector<128x512xf32>
    %cst_29 = arith.constant dense<0.000000e+00> : vector<2x512xf32>
    %93 = tpu.matmul %91, %92, %cst_29 {dimension_numbers = #tpu.dot_dimension_numbers<[1], [0], [0], [1], [0, 0, 1, 1], [], []>} : vector<2x128xf32>, vector<128x512xf32>, vector<2x512xf32> -> vector<2x512xf32>
    %94 = arith.index_cast %c2_i32 : i32 to index
    %c0_30 = arith.constant 0 : index
    %c0_31 = arith.constant 0 : index
    %95 = vector.load %arg1[%94, %c0_30, %c0_31] : memref<8x2x512xf32, #tpu.memory_space<vmem>>, vector<1x2x512xf32>
    %96 = vector.shape_cast %95 : vector<1x2x512xf32> to vector<2x512xf32>
    %c0_32 = arith.constant 0 : index
    %c0_33 = arith.constant 0 : index
    %97 = vector.load %arg2[%c0_32, %c0_33] : memref<128x512xf32, #tpu.memory_space<vmem>>, vector<128x512xf32>
    %cst_34 = arith.constant dense<0.000000e+00> : vector<2x512xf32>
    %98 = tpu.matmul %71, %97, %cst_34 {dimension_numbers = #tpu.dot_dimension_numbers<[1], [0], [0], [1], [0, 0, 1, 1], [], []>} : vector<2x128xf32>, vector<128x512xf32>, vector<2x512xf32> -> vector<2x512xf32>
    %99 = arith.addf %96, %98 : vector<2x512xf32>
    %100 = vector.extract_strided_slice %99 {offsets = [0, 0], sizes = [2, 384], strides = [1, 1]} : vector<2x512xf32> to vector<2x384xf32>
    %101 = arith.negf %100 : vector<2x384xf32>
    %102 = math.exp %101 : vector<2x384xf32>
    %cst_35 = arith.constant 1.000000e+00 : f32
    %103 = vector.broadcast %cst_35 : f32 to vector<2x384xf32>
    %104 = arith.addf %103, %102 : vector<2x384xf32>
    %105 = arith.divf %103, %104 : vector<2x384xf32>
    %106 = vector.extract_strided_slice %99 {offsets = [0, 384], sizes = [2, 128], strides = [1, 1]} : vector<2x512xf32> to vector<2x128xf32>
    %107 = math.tanh %106 : vector<2x128xf32>
    %108 = vector.extract_strided_slice %105 {offsets = [0, 0], sizes = [2, 128], strides = [1, 1]} : vector<2x384xf32> to vector<2x128xf32>
    %109 = vector.extract_strided_slice %105 {offsets = [0, 128], sizes = [2, 128], strides = [1, 1]} : vector<2x384xf32> to vector<2x128xf32>
    %110 = vector.extract_strided_slice %105 {offsets = [0, 256], sizes = [2, 128], strides = [1, 1]} : vector<2x384xf32> to vector<2x128xf32>
    %111 = arith.mulf %109, %69 : vector<2x128xf32>
    %112 = arith.mulf %108, %107 : vector<2x128xf32>
    %113 = arith.addf %111, %112 : vector<2x128xf32>
    %114 = math.tanh %113 : vector<2x128xf32>
    %115 = arith.mulf %110, %114 : vector<2x128xf32>
    %116 = arith.addf %93, %2 : vector<2x512xf32>
    %c0_36 = arith.constant 0 : index
    %c0_37 = arith.constant 0 : index
    %117 = vector.load %arg3[%c0_36, %c0_37] : memref<128x512xf32, #tpu.memory_space<vmem>>, vector<128x512xf32>
    %cst_38 = arith.constant dense<0.000000e+00> : vector<2x512xf32>
    %118 = tpu.matmul %115, %117, %cst_38 {dimension_numbers = #tpu.dot_dimension_numbers<[1], [0], [0], [1], [0, 0, 1, 1], [], []>} : vector<2x128xf32>, vector<128x512xf32>, vector<2x512xf32> -> vector<2x512xf32>
    %119 = arith.addf %116, %118 : vector<2x512xf32>
    %120 = vector.extract_strided_slice %119 {offsets = [0, 0], sizes = [2, 384], strides = [1, 1]} : vector<2x512xf32> to vector<2x384xf32>
    %121 = arith.negf %120 : vector<2x384xf32>
    %122 = math.exp %121 : vector<2x384xf32>
    %cst_39 = arith.constant 1.000000e+00 : f32
    %123 = vector.broadcast %cst_39 : f32 to vector<2x384xf32>
    %124 = arith.addf %123, %122 : vector<2x384xf32>
    %125 = arith.divf %123, %124 : vector<2x384xf32>
    %126 = vector.extract_strided_slice %119 {offsets = [0, 384], sizes = [2, 128], strides = [1, 1]} : vector<2x512xf32> to vector<2x128xf32>
    %127 = math.tanh %126 : vector<2x128xf32>
    %128 = vector.extract_strided_slice %125 {offsets = [0, 0], sizes = [2, 128], strides = [1, 1]} : vector<2x384xf32> to vector<2x128xf32>
    %129 = vector.extract_strided_slice %125 {offsets = [0, 128], sizes = [2, 128], strides = [1, 1]} : vector<2x384xf32> to vector<2x128xf32>
    %130 = vector.extract_strided_slice %125 {offsets = [0, 256], sizes = [2, 128], strides = [1, 1]} : vector<2x384xf32> to vector<2x128xf32>
    %131 = arith.mulf %129, %89 : vector<2x128xf32>
    %132 = arith.mulf %128, %127 : vector<2x128xf32>
    %133 = arith.addf %131, %132 : vector<2x128xf32>
    %134 = math.tanh %133 : vector<2x128xf32>
    %135 = arith.mulf %130, %134 : vector<2x128xf32>
    %c3_i32 = arith.constant 3 : i32
    %c0_40 = arith.constant 0 : index
    %c0_41 = arith.constant 0 : index
    %136 = vector.load %arg4[%c0_40, %c0_41] : memref<128x512xf32, #tpu.memory_space<vmem>>, vector<128x512xf32>
    %cst_42 = arith.constant dense<0.000000e+00> : vector<2x512xf32>
    %137 = tpu.matmul %135, %136, %cst_42 {dimension_numbers = #tpu.dot_dimension_numbers<[1], [0], [0], [1], [0, 0, 1, 1], [], []>} : vector<2x128xf32>, vector<128x512xf32>, vector<2x512xf32> -> vector<2x512xf32>
    %138 = arith.index_cast %c3_i32 : i32 to index
    %c0_43 = arith.constant 0 : index
    %c0_44 = arith.constant 0 : index
    %139 = vector.load %arg1[%138, %c0_43, %c0_44] : memref<8x2x512xf32, #tpu.memory_space<vmem>>, vector<1x2x512xf32>
    %140 = vector.shape_cast %139 : vector<1x2x512xf32> to vector<2x512xf32>
    %c0_45 = arith.constant 0 : index
    %c0_46 = arith.constant 0 : index
    %141 = vector.load %arg2[%c0_45, %c0_46] : memref<128x512xf32, #tpu.memory_space<vmem>>, vector<128x512xf32>
    %cst_47 = arith.constant dense<0.000000e+00> : vector<2x512xf32>
    %142 = tpu.matmul %115, %141, %cst_47 {dimension_numbers = #tpu.dot_dimension_numbers<[1], [0], [0], [1], [0, 0, 1, 1], [], []>} : vector<2x128xf32>, vector<128x512xf32>, vector<2x512xf32> -> vector<2x512xf32>
    %143 = arith.addf %140, %142 : vector<2x512xf32>
    %144 = vector.extract_strided_slice %143 {offsets = [0, 0], sizes = [2, 384], strides = [1, 1]} : vector<2x512xf32> to vector<2x384xf32>
    %145 = arith.negf %144 : vector<2x384xf32>
    %146 = math.exp %145 : vector<2x384xf32>
    %cst_48 = arith.constant 1.000000e+00 : f32
    %147 = vector.broadcast %cst_48 : f32 to vector<2x384xf32>
    %148 = arith.addf %147, %146 : vector<2x384xf32>
    %149 = arith.divf %147, %148 : vector<2x384xf32>
    %150 = vector.extract_strided_slice %143 {offsets = [0, 384], sizes = [2, 128], strides = [1, 1]} : vector<2x512xf32> to vector<2x128xf32>
    %151 = math.tanh %150 : vector<2x128xf32>
    %152 = vector.extract_strided_slice %149 {offsets = [0, 0], sizes = [2, 128], strides = [1, 1]} : vector<2x384xf32> to vector<2x128xf32>
    %153 = vector.extract_strided_slice %149 {offsets = [0, 128], sizes = [2, 128], strides = [1, 1]} : vector<2x384xf32> to vector<2x128xf32>
    %154 = vector.extract_strided_slice %149 {offsets = [0, 256], sizes = [2, 128], strides = [1, 1]} : vector<2x384xf32> to vector<2x128xf32>
    %155 = arith.mulf %153, %113 : vector<2x128xf32>
    %156 = arith.mulf %152, %151 : vector<2x128xf32>
    %157 = arith.addf %155, %156 : vector<2x128xf32>
    %158 = math.tanh %157 : vector<2x128xf32>
    %159 = arith.mulf %154, %158 : vector<2x128xf32>
    %160 = arith.addf %137, %2 : vector<2x512xf32>
    %c0_49 = arith.constant 0 : index
    %c0_50 = arith.constant 0 : index
    %161 = vector.load %arg3[%c0_49, %c0_50] : memref<128x512xf32, #tpu.memory_space<vmem>>, vector<128x512xf32>
    %cst_51 = arith.constant dense<0.000000e+00> : vector<2x512xf32>
    %162 = tpu.matmul %159, %161, %cst_51 {dimension_numbers = #tpu.dot_dimension_numbers<[1], [0], [0], [1], [0, 0, 1, 1], [], []>} : vector<2x128xf32>, vector<128x512xf32>, vector<2x512xf32> -> vector<2x512xf32>
    %163 = arith.addf %160, %162 : vector<2x512xf32>
    %164 = vector.extract_strided_slice %163 {offsets = [0, 0], sizes = [2, 384], strides = [1, 1]} : vector<2x512xf32> to vector<2x384xf32>
    %165 = arith.negf %164 : vector<2x384xf32>
    %166 = math.exp %165 : vector<2x384xf32>
    %cst_52 = arith.constant 1.000000e+00 : f32
    %167 = vector.broadcast %cst_52 : f32 to vector<2x384xf32>
    %168 = arith.addf %167, %166 : vector<2x384xf32>
    %169 = arith.divf %167, %168 : vector<2x384xf32>
    %170 = vector.extract_strided_slice %163 {offsets = [0, 384], sizes = [2, 128], strides = [1, 1]} : vector<2x512xf32> to vector<2x128xf32>
    %171 = math.tanh %170 : vector<2x128xf32>
    %172 = vector.extract_strided_slice %169 {offsets = [0, 0], sizes = [2, 128], strides = [1, 1]} : vector<2x384xf32> to vector<2x128xf32>
    %173 = vector.extract_strided_slice %169 {offsets = [0, 128], sizes = [2, 128], strides = [1, 1]} : vector<2x384xf32> to vector<2x128xf32>
    %174 = vector.extract_strided_slice %169 {offsets = [0, 256], sizes = [2, 128], strides = [1, 1]} : vector<2x384xf32> to vector<2x128xf32>
    %175 = arith.mulf %173, %133 : vector<2x128xf32>
    %176 = arith.mulf %172, %171 : vector<2x128xf32>
    %177 = arith.addf %175, %176 : vector<2x128xf32>
    %178 = math.tanh %177 : vector<2x128xf32>
    %179 = arith.mulf %174, %178 : vector<2x128xf32>
    %c4_i32 = arith.constant 4 : i32
    %c0_53 = arith.constant 0 : index
    %c0_54 = arith.constant 0 : index
    %180 = vector.load %arg4[%c0_53, %c0_54] : memref<128x512xf32, #tpu.memory_space<vmem>>, vector<128x512xf32>
    %cst_55 = arith.constant dense<0.000000e+00> : vector<2x512xf32>
    %181 = tpu.matmul %179, %180, %cst_55 {dimension_numbers = #tpu.dot_dimension_numbers<[1], [0], [0], [1], [0, 0, 1, 1], [], []>} : vector<2x128xf32>, vector<128x512xf32>, vector<2x512xf32> -> vector<2x512xf32>
    %182 = arith.index_cast %c4_i32 : i32 to index
    %c0_56 = arith.constant 0 : index
    %c0_57 = arith.constant 0 : index
    %183 = vector.load %arg1[%182, %c0_56, %c0_57] : memref<8x2x512xf32, #tpu.memory_space<vmem>>, vector<1x2x512xf32>
    %184 = vector.shape_cast %183 : vector<1x2x512xf32> to vector<2x512xf32>
    %c0_58 = arith.constant 0 : index
    %c0_59 = arith.constant 0 : index
    %185 = vector.load %arg2[%c0_58, %c0_59] : memref<128x512xf32, #tpu.memory_space<vmem>>, vector<128x512xf32>
    %cst_60 = arith.constant dense<0.000000e+00> : vector<2x512xf32>
    %186 = tpu.matmul %159, %185, %cst_60 {dimension_numbers = #tpu.dot_dimension_numbers<[1], [0], [0], [1], [0, 0, 1, 1], [], []>} : vector<2x128xf32>, vector<128x512xf32>, vector<2x512xf32> -> vector<2x512xf32>
    %187 = arith.addf %184, %186 : vector<2x512xf32>
    %188 = vector.extract_strided_slice %187 {offsets = [0, 0], sizes = [2, 384], strides = [1, 1]} : vector<2x512xf32> to vector<2x384xf32>
    %189 = arith.negf %188 : vector<2x384xf32>
    %190 = math.exp %189 : vector<2x384xf32>
    %cst_61 = arith.constant 1.000000e+00 : f32
    %191 = vector.broadcast %cst_61 : f32 to vector<2x384xf32>
    %192 = arith.addf %191, %190 : vector<2x384xf32>
    %193 = arith.divf %191, %192 : vector<2x384xf32>
    %194 = vector.extract_strided_slice %187 {offsets = [0, 384], sizes = [2, 128], strides = [1, 1]} : vector<2x512xf32> to vector<2x128xf32>
    %195 = math.tanh %194 : vector<2x128xf32>
    %196 = vector.extract_strided_slice %193 {offsets = [0, 0], sizes = [2, 128], strides = [1, 1]} : vector<2x384xf32> to vector<2x128xf32>
    %197 = vector.extract_strided_slice %193 {offsets = [0, 128], sizes = [2, 128], strides = [1, 1]} : vector<2x384xf32> to vector<2x128xf32>
    %198 = vector.extract_strided_slice %193 {offsets = [0, 256], sizes = [2, 128], strides = [1, 1]} : vector<2x384xf32> to vector<2x128xf32>
    %199 = arith.mulf %197, %157 : vector<2x128xf32>
    %200 = arith.mulf %196, %195 : vector<2x128xf32>
    %201 = arith.addf %199, %200 : vector<2x128xf32>
    %202 = math.tanh %201 : vector<2x128xf32>
    %203 = arith.mulf %198, %202 : vector<2x128xf32>
    %204 = arith.addf %181, %2 : vector<2x512xf32>
    %c0_62 = arith.constant 0 : index
    %c0_63 = arith.constant 0 : index
    %205 = vector.load %arg3[%c0_62, %c0_63] : memref<128x512xf32, #tpu.memory_space<vmem>>, vector<128x512xf32>
    %cst_64 = arith.constant dense<0.000000e+00> : vector<2x512xf32>
    %206 = tpu.matmul %203, %205, %cst_64 {dimension_numbers = #tpu.dot_dimension_numbers<[1], [0], [0], [1], [0, 0, 1, 1], [], []>} : vector<2x128xf32>, vector<128x512xf32>, vector<2x512xf32> -> vector<2x512xf32>
    %207 = arith.addf %204, %206 : vector<2x512xf32>
    %208 = vector.extract_strided_slice %207 {offsets = [0, 0], sizes = [2, 384], strides = [1, 1]} : vector<2x512xf32> to vector<2x384xf32>
    %209 = arith.negf %208 : vector<2x384xf32>
    %210 = math.exp %209 : vector<2x384xf32>
    %cst_65 = arith.constant 1.000000e+00 : f32
    %211 = vector.broadcast %cst_65 : f32 to vector<2x384xf32>
    %212 = arith.addf %211, %210 : vector<2x384xf32>
    %213 = arith.divf %211, %212 : vector<2x384xf32>
    %214 = vector.extract_strided_slice %207 {offsets = [0, 384], sizes = [2, 128], strides = [1, 1]} : vector<2x512xf32> to vector<2x128xf32>
    %215 = math.tanh %214 : vector<2x128xf32>
    %216 = vector.extract_strided_slice %213 {offsets = [0, 0], sizes = [2, 128], strides = [1, 1]} : vector<2x384xf32> to vector<2x128xf32>
    %217 = vector.extract_strided_slice %213 {offsets = [0, 128], sizes = [2, 128], strides = [1, 1]} : vector<2x384xf32> to vector<2x128xf32>
    %218 = vector.extract_strided_slice %213 {offsets = [0, 256], sizes = [2, 128], strides = [1, 1]} : vector<2x384xf32> to vector<2x128xf32>
    %219 = arith.mulf %217, %177 : vector<2x128xf32>
    %220 = arith.mulf %216, %215 : vector<2x128xf32>
    %221 = arith.addf %219, %220 : vector<2x128xf32>
    %222 = math.tanh %221 : vector<2x128xf32>
    %223 = arith.mulf %218, %222 : vector<2x128xf32>
    %c5_i32 = arith.constant 5 : i32
    %c0_66 = arith.constant 0 : index
    %c0_67 = arith.constant 0 : index
    %224 = vector.load %arg4[%c0_66, %c0_67] : memref<128x512xf32, #tpu.memory_space<vmem>>, vector<128x512xf32>
    %cst_68 = arith.constant dense<0.000000e+00> : vector<2x512xf32>
    %225 = tpu.matmul %223, %224, %cst_68 {dimension_numbers = #tpu.dot_dimension_numbers<[1], [0], [0], [1], [0, 0, 1, 1], [], []>} : vector<2x128xf32>, vector<128x512xf32>, vector<2x512xf32> -> vector<2x512xf32>
    %226 = arith.index_cast %c5_i32 : i32 to index
    %c0_69 = arith.constant 0 : index
    %c0_70 = arith.constant 0 : index
    %227 = vector.load %arg1[%226, %c0_69, %c0_70] : memref<8x2x512xf32, #tpu.memory_space<vmem>>, vector<1x2x512xf32>
    %228 = vector.shape_cast %227 : vector<1x2x512xf32> to vector<2x512xf32>
    %c0_71 = arith.constant 0 : index
    %c0_72 = arith.constant 0 : index
    %229 = vector.load %arg2[%c0_71, %c0_72] : memref<128x512xf32, #tpu.memory_space<vmem>>, vector<128x512xf32>
    %cst_73 = arith.constant dense<0.000000e+00> : vector<2x512xf32>
    %230 = tpu.matmul %203, %229, %cst_73 {dimension_numbers = #tpu.dot_dimension_numbers<[1], [0], [0], [1], [0, 0, 1, 1], [], []>} : vector<2x128xf32>, vector<128x512xf32>, vector<2x512xf32> -> vector<2x512xf32>
    %231 = arith.addf %228, %230 : vector<2x512xf32>
    %232 = vector.extract_strided_slice %231 {offsets = [0, 0], sizes = [2, 384], strides = [1, 1]} : vector<2x512xf32> to vector<2x384xf32>
    %233 = arith.negf %232 : vector<2x384xf32>
    %234 = math.exp %233 : vector<2x384xf32>
    %cst_74 = arith.constant 1.000000e+00 : f32
    %235 = vector.broadcast %cst_74 : f32 to vector<2x384xf32>
    %236 = arith.addf %235, %234 : vector<2x384xf32>
    %237 = arith.divf %235, %236 : vector<2x384xf32>
    %238 = vector.extract_strided_slice %231 {offsets = [0, 384], sizes = [2, 128], strides = [1, 1]} : vector<2x512xf32> to vector<2x128xf32>
    %239 = math.tanh %238 : vector<2x128xf32>
    %240 = vector.extract_strided_slice %237 {offsets = [0, 0], sizes = [2, 128], strides = [1, 1]} : vector<2x384xf32> to vector<2x128xf32>
    %241 = vector.extract_strided_slice %237 {offsets = [0, 128], sizes = [2, 128], strides = [1, 1]} : vector<2x384xf32> to vector<2x128xf32>
    %242 = vector.extract_strided_slice %237 {offsets = [0, 256], sizes = [2, 128], strides = [1, 1]} : vector<2x384xf32> to vector<2x128xf32>
    %243 = arith.mulf %241, %201 : vector<2x128xf32>
    %244 = arith.mulf %240, %239 : vector<2x128xf32>
    %245 = arith.addf %243, %244 : vector<2x128xf32>
    %246 = math.tanh %245 : vector<2x128xf32>
    %247 = arith.mulf %242, %246 : vector<2x128xf32>
    %248 = arith.addf %225, %2 : vector<2x512xf32>
    %c0_75 = arith.constant 0 : index
    %c0_76 = arith.constant 0 : index
    %249 = vector.load %arg3[%c0_75, %c0_76] : memref<128x512xf32, #tpu.memory_space<vmem>>, vector<128x512xf32>
    %cst_77 = arith.constant dense<0.000000e+00> : vector<2x512xf32>
    %250 = tpu.matmul %247, %249, %cst_77 {dimension_numbers = #tpu.dot_dimension_numbers<[1], [0], [0], [1], [0, 0, 1, 1], [], []>} : vector<2x128xf32>, vector<128x512xf32>, vector<2x512xf32> -> vector<2x512xf32>
    %251 = arith.addf %248, %250 : vector<2x512xf32>
    %252 = vector.extract_strided_slice %251 {offsets = [0, 0], sizes = [2, 384], strides = [1, 1]} : vector<2x512xf32> to vector<2x384xf32>
    %253 = arith.negf %252 : vector<2x384xf32>
    %254 = math.exp %253 : vector<2x384xf32>
    %cst_78 = arith.constant 1.000000e+00 : f32
    %255 = vector.broadcast %cst_78 : f32 to vector<2x384xf32>
    %256 = arith.addf %255, %254 : vector<2x384xf32>
    %257 = arith.divf %255, %256 : vector<2x384xf32>
    %258 = vector.extract_strided_slice %251 {offsets = [0, 384], sizes = [2, 128], strides = [1, 1]} : vector<2x512xf32> to vector<2x128xf32>
    %259 = math.tanh %258 : vector<2x128xf32>
    %260 = vector.extract_strided_slice %257 {offsets = [0, 0], sizes = [2, 128], strides = [1, 1]} : vector<2x384xf32> to vector<2x128xf32>
    %261 = vector.extract_strided_slice %257 {offsets = [0, 128], sizes = [2, 128], strides = [1, 1]} : vector<2x384xf32> to vector<2x128xf32>
    %262 = vector.extract_strided_slice %257 {offsets = [0, 256], sizes = [2, 128], strides = [1, 1]} : vector<2x384xf32> to vector<2x128xf32>
    %263 = arith.mulf %261, %221 : vector<2x128xf32>
    %264 = arith.mulf %260, %259 : vector<2x128xf32>
    %265 = arith.addf %263, %264 : vector<2x128xf32>
    %266 = math.tanh %265 : vector<2x128xf32>
    %267 = arith.mulf %262, %266 : vector<2x128xf32>
    %c6_i32 = arith.constant 6 : i32
    %c0_79 = arith.constant 0 : index
    %c0_80 = arith.constant 0 : index
    %268 = vector.load %arg4[%c0_79, %c0_80] : memref<128x512xf32, #tpu.memory_space<vmem>>, vector<128x512xf32>
    %cst_81 = arith.constant dense<0.000000e+00> : vector<2x512xf32>
    %269 = tpu.matmul %267, %268, %cst_81 {dimension_numbers = #tpu.dot_dimension_numbers<[1], [0], [0], [1], [0, 0, 1, 1], [], []>} : vector<2x128xf32>, vector<128x512xf32>, vector<2x512xf32> -> vector<2x512xf32>
    %270 = arith.index_cast %c6_i32 : i32 to index
    %c0_82 = arith.constant 0 : index
    %c0_83 = arith.constant 0 : index
    %271 = vector.load %arg1[%270, %c0_82, %c0_83] : memref<8x2x512xf32, #tpu.memory_space<vmem>>, vector<1x2x512xf32>
    %272 = vector.shape_cast %271 : vector<1x2x512xf32> to vector<2x512xf32>
    %c0_84 = arith.constant 0 : index
    %c0_85 = arith.constant 0 : index
    %273 = vector.load %arg2[%c0_84, %c0_85] : memref<128x512xf32, #tpu.memory_space<vmem>>, vector<128x512xf32>
    %cst_86 = arith.constant dense<0.000000e+00> : vector<2x512xf32>
    %274 = tpu.matmul %247, %273, %cst_86 {dimension_numbers = #tpu.dot_dimension_numbers<[1], [0], [0], [1], [0, 0, 1, 1], [], []>} : vector<2x128xf32>, vector<128x512xf32>, vector<2x512xf32> -> vector<2x512xf32>
    %275 = arith.addf %272, %274 : vector<2x512xf32>
    %276 = vector.extract_strided_slice %275 {offsets = [0, 0], sizes = [2, 384], strides = [1, 1]} : vector<2x512xf32> to vector<2x384xf32>
    %277 = arith.negf %276 : vector<2x384xf32>
    %278 = math.exp %277 : vector<2x384xf32>
    %cst_87 = arith.constant 1.000000e+00 : f32
    %279 = vector.broadcast %cst_87 : f32 to vector<2x384xf32>
    %280 = arith.addf %279, %278 : vector<2x384xf32>
    %281 = arith.divf %279, %280 : vector<2x384xf32>
    %282 = vector.extract_strided_slice %275 {offsets = [0, 384], sizes = [2, 128], strides = [1, 1]} : vector<2x512xf32> to vector<2x128xf32>
    %283 = math.tanh %282 : vector<2x128xf32>
    %284 = vector.extract_strided_slice %281 {offsets = [0, 0], sizes = [2, 128], strides = [1, 1]} : vector<2x384xf32> to vector<2x128xf32>
    %285 = vector.extract_strided_slice %281 {offsets = [0, 128], sizes = [2, 128], strides = [1, 1]} : vector<2x384xf32> to vector<2x128xf32>
    %286 = vector.extract_strided_slice %281 {offsets = [0, 256], sizes = [2, 128], strides = [1, 1]} : vector<2x384xf32> to vector<2x128xf32>
    %287 = arith.mulf %285, %245 : vector<2x128xf32>
    %288 = arith.mulf %284, %283 : vector<2x128xf32>
    %289 = arith.addf %287, %288 : vector<2x128xf32>
    %290 = math.tanh %289 : vector<2x128xf32>
    %291 = arith.mulf %286, %290 : vector<2x128xf32>
    %292 = arith.addf %269, %2 : vector<2x512xf32>
    %c0_88 = arith.constant 0 : index
    %c0_89 = arith.constant 0 : index
    %293 = vector.load %arg3[%c0_88, %c0_89] : memref<128x512xf32, #tpu.memory_space<vmem>>, vector<128x512xf32>
    %cst_90 = arith.constant dense<0.000000e+00> : vector<2x512xf32>
    %294 = tpu.matmul %291, %293, %cst_90 {dimension_numbers = #tpu.dot_dimension_numbers<[1], [0], [0], [1], [0, 0, 1, 1], [], []>} : vector<2x128xf32>, vector<128x512xf32>, vector<2x512xf32> -> vector<2x512xf32>
    %295 = arith.addf %292, %294 : vector<2x512xf32>
    %296 = vector.extract_strided_slice %295 {offsets = [0, 0], sizes = [2, 384], strides = [1, 1]} : vector<2x512xf32> to vector<2x384xf32>
    %297 = arith.negf %296 : vector<2x384xf32>
    %298 = math.exp %297 : vector<2x384xf32>
    %cst_91 = arith.constant 1.000000e+00 : f32
    %299 = vector.broadcast %cst_91 : f32 to vector<2x384xf32>
    %300 = arith.addf %299, %298 : vector<2x384xf32>
    %301 = arith.divf %299, %300 : vector<2x384xf32>
    %302 = vector.extract_strided_slice %295 {offsets = [0, 384], sizes = [2, 128], strides = [1, 1]} : vector<2x512xf32> to vector<2x128xf32>
    %303 = math.tanh %302 : vector<2x128xf32>
    %304 = vector.extract_strided_slice %301 {offsets = [0, 0], sizes = [2, 128], strides = [1, 1]} : vector<2x384xf32> to vector<2x128xf32>
    %305 = vector.extract_strided_slice %301 {offsets = [0, 128], sizes = [2, 128], strides = [1, 1]} : vector<2x384xf32> to vector<2x128xf32>
    %306 = vector.extract_strided_slice %301 {offsets = [0, 256], sizes = [2, 128], strides = [1, 1]} : vector<2x384xf32> to vector<2x128xf32>
    %307 = arith.mulf %305, %265 : vector<2x128xf32>
    %308 = arith.mulf %304, %303 : vector<2x128xf32>
    %309 = arith.addf %307, %308 : vector<2x128xf32>
    %310 = math.tanh %309 : vector<2x128xf32>
    %311 = arith.mulf %306, %310 : vector<2x128xf32>
    %c7_i32 = arith.constant 7 : i32
    %c0_92 = arith.constant 0 : index
    %c0_93 = arith.constant 0 : index
    %312 = vector.load %arg4[%c0_92, %c0_93] : memref<128x512xf32, #tpu.memory_space<vmem>>, vector<128x512xf32>
    %cst_94 = arith.constant dense<0.000000e+00> : vector<2x512xf32>
    %313 = tpu.matmul %311, %312, %cst_94 {dimension_numbers = #tpu.dot_dimension_numbers<[1], [0], [0], [1], [0, 0, 1, 1], [], []>} : vector<2x128xf32>, vector<128x512xf32>, vector<2x512xf32> -> vector<2x512xf32>
    %314 = arith.index_cast %c7_i32 : i32 to index
    %c0_95 = arith.constant 0 : index
    %c0_96 = arith.constant 0 : index
    %315 = vector.load %arg1[%314, %c0_95, %c0_96] : memref<8x2x512xf32, #tpu.memory_space<vmem>>, vector<1x2x512xf32>
    %316 = vector.shape_cast %315 : vector<1x2x512xf32> to vector<2x512xf32>
    %c0_97 = arith.constant 0 : index
    %c0_98 = arith.constant 0 : index
    %317 = vector.load %arg2[%c0_97, %c0_98] : memref<128x512xf32, #tpu.memory_space<vmem>>, vector<128x512xf32>
    %cst_99 = arith.constant dense<0.000000e+00> : vector<2x512xf32>
    %318 = tpu.matmul %291, %317, %cst_99 {dimension_numbers = #tpu.dot_dimension_numbers<[1], [0], [0], [1], [0, 0, 1, 1], [], []>} : vector<2x128xf32>, vector<128x512xf32>, vector<2x512xf32> -> vector<2x512xf32>
    %319 = arith.addf %316, %318 : vector<2x512xf32>
    %320 = vector.extract_strided_slice %319 {offsets = [0, 0], sizes = [2, 384], strides = [1, 1]} : vector<2x512xf32> to vector<2x384xf32>
    %321 = arith.negf %320 : vector<2x384xf32>
    %322 = math.exp %321 : vector<2x384xf32>
    %cst_100 = arith.constant 1.000000e+00 : f32
    %323 = vector.broadcast %cst_100 : f32 to vector<2x384xf32>
    %324 = arith.addf %323, %322 : vector<2x384xf32>
    %325 = arith.divf %323, %324 : vector<2x384xf32>
    %326 = vector.extract_strided_slice %319 {offsets = [0, 384], sizes = [2, 128], strides = [1, 1]} : vector<2x512xf32> to vector<2x128xf32>
    %327 = math.tanh %326 : vector<2x128xf32>
    %328 = vector.extract_strided_slice %325 {offsets = [0, 0], sizes = [2, 128], strides = [1, 1]} : vector<2x384xf32> to vector<2x128xf32>
    %329 = vector.extract_strided_slice %325 {offsets = [0, 128], sizes = [2, 128], strides = [1, 1]} : vector<2x384xf32> to vector<2x128xf32>
    %330 = vector.extract_strided_slice %325 {offsets = [0, 256], sizes = [2, 128], strides = [1, 1]} : vector<2x384xf32> to vector<2x128xf32>
    %331 = arith.mulf %329, %289 : vector<2x128xf32>
    %332 = arith.mulf %328, %327 : vector<2x128xf32>
    %333 = arith.addf %331, %332 : vector<2x128xf32>
    %334 = math.tanh %333 : vector<2x128xf32>
    %335 = arith.mulf %330, %334 : vector<2x128xf32>
    %336 = arith.addf %313, %2 : vector<2x512xf32>
    %c0_101 = arith.constant 0 : index
    %c0_102 = arith.constant 0 : index
    %337 = vector.load %arg3[%c0_101, %c0_102] : memref<128x512xf32, #tpu.memory_space<vmem>>, vector<128x512xf32>
    %cst_103 = arith.constant dense<0.000000e+00> : vector<2x512xf32>
    %338 = tpu.matmul %335, %337, %cst_103 {dimension_numbers = #tpu.dot_dimension_numbers<[1], [0], [0], [1], [0, 0, 1, 1], [], []>} : vector<2x128xf32>, vector<128x512xf32>, vector<2x512xf32> -> vector<2x512xf32>
    %339 = arith.addf %336, %338 : vector<2x512xf32>
    %340 = vector.extract_strided_slice %339 {offsets = [0, 0], sizes = [2, 384], strides = [1, 1]} : vector<2x512xf32> to vector<2x384xf32>
    %341 = arith.negf %340 : vector<2x384xf32>
    %342 = math.exp %341 : vector<2x384xf32>
    %cst_104 = arith.constant 1.000000e+00 : f32
    %343 = vector.broadcast %cst_104 : f32 to vector<2x384xf32>
    %344 = arith.addf %343, %342 : vector<2x384xf32>
    %345 = arith.divf %343, %344 : vector<2x384xf32>
    %346 = vector.extract_strided_slice %339 {offsets = [0, 384], sizes = [2, 128], strides = [1, 1]} : vector<2x512xf32> to vector<2x128xf32>
    %347 = math.tanh %346 : vector<2x128xf32>
    %348 = vector.extract_strided_slice %345 {offsets = [0, 0], sizes = [2, 128], strides = [1, 1]} : vector<2x384xf32> to vector<2x128xf32>
    %349 = vector.extract_strided_slice %345 {offsets = [0, 128], sizes = [2, 128], strides = [1, 1]} : vector<2x384xf32> to vector<2x128xf32>
    %350 = vector.extract_strided_slice %345 {offsets = [0, 256], sizes = [2, 128], strides = [1, 1]} : vector<2x384xf32> to vector<2x128xf32>
    %351 = arith.mulf %349, %309 : vector<2x128xf32>
    %352 = arith.mulf %348, %347 : vector<2x128xf32>
    %353 = arith.addf %351, %352 : vector<2x128xf32>
    %354 = math.tanh %353 : vector<2x128xf32>
    %355 = arith.mulf %350, %354 : vector<2x128xf32>
    %c8_i32 = arith.constant 8 : i32
    %c0_105 = arith.constant 0 : index
    %c0_106 = arith.constant 0 : index
    %356 = vector.load %arg6[%c0_105, %c0_106] : memref<128x128xf32, #tpu.memory_space<vmem>>, vector<128x128xf32>
    %cst_107 = arith.constant dense<0.000000e+00> : vector<2x128xf32>
    %357 = tpu.matmul %355, %356, %cst_107 {dimension_numbers = #tpu.dot_dimension_numbers<[1], [0], [0], [1], [0, 0, 1, 1], [], []>} : vector<2x128xf32>, vector<128x128xf32>, vector<2x128xf32> -> vector<2x128xf32>
    %c0_108 = arith.constant 0 : index
    %c0_109 = arith.constant 0 : index
    %358 = vector.load %arg7[%c0_108, %c0_109] : memref<1x128xf32, #tpu.memory_space<vmem>>, vector<1x128xf32>
    %359 = vector.broadcast %358 : vector<1x128xf32> to vector<2x128xf32>
    %360 = arith.addf %357, %359 : vector<2x128xf32>
    %c0_110 = arith.constant 0 : index
    %c0_111 = arith.constant 0 : index
    %361 = vector.load %arg8[%c0_110, %c0_111] : memref<2x128xf32, #tpu.memory_space<vmem>>, vector<2x128xf32>
    tpu.vector_store %arg8[%c0_110, %c0_111], %360 {strides = array<i32>} : memref<2x128xf32, #tpu.memory_space<vmem>>, vector<2x128xf32>,
    return
  }
  func.func @transform_0(%arg0: i32) -> (i32, i32, i32) {
    %c0_i32 = arith.constant 0 : i32
    %c0_i32_0 = arith.constant 0 : i32
    %c0_i32_1 = arith.constant 0 : i32
    %c0_i32_2 = arith.constant 0 : i32
    return %c0_i32, %c0_i32_0, %c0_i32_1 : i32, i32, i32
  }
  func.func @transform_1(%arg0: i32) -> (i32, i32) {
    %c0_i32 = arith.constant 0 : i32
    %c0_i32_0 = arith.constant 0 : i32
    %c0_i32_1 = arith.constant 0 : i32
    return %c0_i32, %c0_i32_0 : i32, i32
  }
  func.func @transform_2(%arg0: i32) -> (i32, i32) {
    %c0_i32 = arith.constant 0 : i32
    %c0_i32_0 = arith.constant 0 : i32
    %c0_i32_1 = arith.constant 0 : i32
    return %c0_i32, %c0_i32_0 : i32, i32
  }
  func.func @transform_3(%arg0: i32) -> (i32, i32) {
    %c0_i32 = arith.constant 0 : i32
    %c0_i32_0 = arith.constant 0 : i32
    %c0_i32_1 = arith.constant 0 : i32
    return %c0_i32, %c0_i32_0 : i32, i32
  }
  func.func @transform_4(%arg0: i32) -> (i32, i32) {
    %c0_i32 = arith.constant 0 : i32
    %c0_i32_0 = arith.constant 0 : i32
    %c0_i32_1 = arith.constant 0 : i32
    return %c0_i32, %c0_i32_0 : i32, i32
  }
  func.func @transform_5(%arg0: i32) -> (i32, i32) {
    %c0_i32 = arith.constant 0 : i32
    %c0_i32_0 = arith.constant 0 : i32
    %c0_i32_1 = arith.constant 0 : i32
    return %c0_i32, %c0_i32_0 : i32, i32
  }
  func.func @transform_6(%arg0: i32) -> (i32, i32) {
    %c0_i32 = arith.constant 0 : i32
    %c0_i32_0 = arith.constant 0 : i32
    %c0_i32_1 = arith.constant 0 : i32
    return %c0_i32, %c0_i32_0 : i32, i32
  }
  func.func @transform_7(%arg0: i32) -> (i32, i32) {
    %c0_i32 = arith.constant 0 : i32
    %c0_i32_0 = arith.constant 0 : i32
    %c0_i32_1 = arith.constant 0 : i32
    return %c0_i32, %c0_i32_0 : i32, i32
  }
}

</mosaic_0001>

<bundles_post_ra>
// kernel: _lstm_forward_impl.1
= control target key start
LH: loop header
LB: loop body
LE: loop exit
PB: predicated region body
PF: predicated region fallthrough
CT: control target
= control target key end

     0   :  { %12 = vsyncpa [#allocation3], 0  ;;  %s7675_s0 = inlined_call_operand.vmem [shape: f32[8,2,512], index: 0, kind: input, shape index: {}]   ;;  %s7676_s1 = inlined_call_operand.hbm [shape: f32[128,512], index: 1, kind: input, shape index: {}]   ;;  %s7677_s2 = inlined_call_operand.hbm [shape: f32[128,512], index: 2, kind: input, shape index: {}]   ;;  %s7678_s3 = inlined_call_operand.hbm [shape: f32[128,512], index: 3, kind: input, shape index: {}]   ;;  %s7679_s4 = inlined_call_operand.vmem [shape: f32[1,512], index: 4, kind: input, shape index: {}]   ;;  %s7680_s5 = inlined_call_operand.vmem [shape: f32[128,128], index: 5, kind: input, shape index: {}]   ;;  %s7681_s6 = inlined_call_operand.vmem [shape: f32[1,128], index: 6, kind: input, shape index: {}]   ;;  %s7682_s7 = inlined_call_operand.vmem [shape: f32[2,128], index: 7, kind: output, shape index: {}]  }
   0x1   :  { %13 = vsyncpa [#allocation5], 0  ;;  %s6359_s24 = smov [#allocation4]   ;;  %s6360_s26 = smov [#allocation2]  }
   0x2   :  { %s33_s25 = sshll.u32 %s6359_s24, 4  ;;  %s21_s27 = sshll.u32 %s6360_s26, 4  ;;  %s34_s25 = int_to_ptr.vmem [resolvable:$true] %s33_s25  ;;  %s6408_s27 = int_to_ptr.vmem [resolvable:$true] %s21_s27 }
   0x3   :  { %s6289_s30 = scalar_lea.hbm %s7677_s2, 8192 }
   0x4   :  { %p6290_p0 = scmp.ne.s32.totalorder %s7677_s2, %s6289_s30  ;;  %p6293_p1 = scmp.lt.u32.totalorder %s6289_s30, %s7677_s2 }
   0x6   :  { %p6295_p2 = pnand %p6293_p1, %p6290_p0 }
   0x8   :  { %6298 = shalt.err (!%p6295_p2)
}
   0x9   :  { %s6299_s12 = scalar_lea.vmem %s34_s25, 8192  ;;  %p6304_p4 = scmp.lt.s32.totalorder %s34_s25, %s34_s25 }
   0xa   :  { %p6300_p3 = scmp.ne.s32.totalorder %s34_s25, %s6299_s12  ;;  %p6305_p5 = scmp.lt.s32.totalorder %s6299_s12, %s6299_s12 }
   0xc   :  { %p6306_p6 = por %p6305_p5, %p6304_p4 }
   0xe   :  { %p6307_p7 = pnand %p6306_p6, %p6300_p3 }
  0x10   :  { %6310 = shalt.err (!%p6307_p7)
}
  0x11   :  { %s6361_s13 = smov 512   ;;  %s6362_s14 = smov 32  }
  0x12   :  { %39 = dma.hbm_to_vmem [thread:$0]  %s7677_s2, 8192, %s34_s25, [#allocation5], %s6361_s13, %s6361_s13, %s6362_s14  }
  0x13   :  { %s6311_s19 = scalar_lea.hbm %s7676_s1, 8192 }
  0x14   :  { %p6312_p8 = scmp.ne.s32.totalorder %s7676_s1, %s6311_s19  ;;  %p6315_p9 = scmp.lt.u32.totalorder %s6311_s19, %s7676_s1 }
  0x16   :  { %p6317_p10 = pnand %p6315_p9, %p6312_p8 }
  0x18   :  { %6320 = shalt.err (!%p6317_p10)
}
  0x19   :  { %s6321_s24 = scalar_lea.vmem %s6408_s27, 8192  ;;  %p6326_p12 = scmp.lt.s32.totalorder %s6408_s27, %s6408_s27 }
  0x1a   :  { %p6322_p11 = scmp.ne.s32.totalorder %s6408_s27, %s6321_s24  ;;  %p6327_p13 = scmp.lt.s32.totalorder %s6321_s24, %s6321_s24 }
  0x1c   :  { %p6328_p0 = por %p6327_p13, %p6326_p12 }
  0x1e   :  { %p6329_p1 = pnand %p6328_p0, %p6322_p11 }
  0x20   :  { %6332 = shalt.err (!%p6329_p1)
}
  0x21   :  { %27 = dma.hbm_to_vmem [thread:$0]  %s7676_s1, 8192, %s6408_s27, [#allocation3], %s6361_s13, %s6361_s13, %s6362_s14  }
  0x22   :  { %s6363_s26 = smov [#allocation6]   ;;  %s6333_s8 = scalar_lea.hbm %s7678_s3, 8192 }
  0x23   :  { %s45_s28 = sshll.u32 %s6363_s26, 4  ;;  %p6334_p2 = scmp.ne.s32.totalorder %s7678_s3, %s6333_s8  ;;  %s46_s28 = int_to_ptr.vmem [resolvable:$true] %s45_s28 }
  0x24   :  { %p6337_p3 = scmp.lt.u32.totalorder %s6333_s8, %s7678_s3 }
  0x26   :  { %p6339_p4 = pnand %p6337_p3, %p6334_p2 }
  0x28   :  { %6342 = shalt.err (!%p6339_p4)
}
  0x29   :  { %s6343_s15 = scalar_lea.vmem %s46_s28, 8192  ;;  %p6348_p6 = scmp.lt.s32.totalorder %s46_s28, %s46_s28 }
  0x2a   :  { %p6344_p5 = scmp.ne.s32.totalorder %s46_s28, %s6343_s15  ;;  %p6349_p7 = scmp.lt.s32.totalorder %s6343_s15, %s6343_s15 }
  0x2c   :  { %p6350_p8 = por %p6349_p7, %p6348_p6 }
  0x2e   :  { %p6351_p9 = pnand %p6350_p8, %p6344_p5 }
  0x30   :  { %6354 = shalt.err (!%p6351_p9)
}
  0x31   :  { %51 = dma.hbm_to_vmem [thread:$0]  %s7678_s3, 8192, %s46_s28, [#allocation5], %s6361_s13, %s6361_s13, %s6362_s14  }
  0x32   :  { %6355 = dma.done.wait [#allocation3], 8192  }
  0x33   :  { %6356 = vsyncadd [#allocation3], 4294959104 }
  0x34   :  { %6357 = dma.done.wait [#allocation5], 16384  }
  0x35   :  { %6358 = vsyncadd [#allocation5], 4294950912  ;;  %v7683_v0 = vmov 0.0   ;;  %v155_v1 = vld [vmem:[#allocation2 + $0x8] sm:$0xff]  ;;  %v157_v3 = vld [vmem:[#allocation2 + $0x18] sm:$0xff]  ;;  %vm6367_vm0 = vmmov 0  }
  0x36   :  { %282 = vmatprep.mubr.f32.mxu0 %v7683_v0  ;;  %353 = vmatprep.mubr.f32.mxu1 %v7683_v0  ;;  %v159_v2 = vld [vmem:[#allocation2 + $0x28] sm:$0xff]  ;;  %v161_v5 = vld [vmem:[#allocation2 + $0x38] sm:$0xff]  ;;  %v154_v6 = vld [vmem:[#allocation2] sm:$0xff] }
  0x37   :  { %v6462_v4 = vpack.c.bf16 %v159_v2, %v155_v1  ;;  %v158_v7 = vld [vmem:[#allocation2 + $0x20] sm:$0xff]  ;;  %v6464_v8 = vpack.c.bf16 %v161_v5, %v157_v3  ;;  %v156_v10 = vld [vmem:[#allocation2 + $0x10] sm:$0xff]  ;;  %v163_v12 = vld [vmem:[#allocation2 + $0x48] sm:$0xff] }
  0x38   :  { %v6466_v9 = vpack.c.bf16 %v158_v7, %v154_v6  ;;  %v160_v11 = vld [vmem:[#allocation2 + $0x30] sm:$0xff]  ;;  %v167_v14 = vld [vmem:[#allocation2 + $0x68] sm:$0xff]  ;;  %v165_v15 = vld [vmem:[#allocation2 + $0x58] sm:$0xff] }
  0x39   :  { %7862 = vst [vmem:[#allocation9_spill] sm:$0xff] %v6462_v4  ;;  %7863 = vst [vmem:[#allocation10_spill] sm:$0xff] %v6464_v8  ;;  %4465 = vmatprep.subr.bf16.mxu0 %v6462_v4  ;;  %v6469_v13 = vpack.c.bf16 %v160_v11, %v156_v10  ;;  %v169_v16 = vld [vmem:[#allocation2 + $0x78] sm:$0xff]  ;;  %4497 = vmatprep.subr.bf16.mxu1 %v6464_v8  ;;  %v6473_v17 = vpack.c.bf16 %v167_v14, %v163_v12  ;;  %v162_v19 = vld [vmem:[#allocation2 + $0x40] sm:$0xff] }
  0x3a   :  { %4467 = vmatpush1.bf16.msra.mxu0 %v6466_v9  ;;  %v6475_v18 = vpack.c.bf16 %v169_v16, %v165_v15  ;;  %v166_v20 = vld [vmem:[#allocation2 + $0x60] sm:$0xff]  ;;  %v164_v21 = vld [vmem:[#allocation2 + $0x50] sm:$0xff]  ;;  %v171_v24 = vld [vmem:[#allocation2 + $0x88] sm:$0xff] }
  0x3b   :  { %4499 = vmatpush1.bf16.msra.mxu1 %v6469_v13  ;;  %v6478_v22 = vpack.c.bf16 %v166_v20, %v162_v19  ;;  %v168_v23 = vld [vmem:[#allocation2 + $0x70] sm:$0xff]  ;;  %v175_v25 = vld [vmem:[#allocation2 + $0xa8] sm:$0xff]  ;;  %4469 = vmatprep.subr.bf16.mxu0 %v6473_v17  ;;  %v173_v28 = vld [vmem:[#allocation2 + $0x98] sm:$0xff] }
  0x3c   :  { %4501 = vmatprep.subr.bf16.mxu1 %v6475_v18  ;;  %v6482_v26 = vpack.c.bf16 %v168_v23, %v164_v21  ;;  %v6484_v27 = vpack.c.bf16 %v175_v25, %v171_v24  ;;  %v177_v29 = vld [vmem:[#allocation2 + $0xb8] sm:$0xff]  ;;  %v170_v30 = vld [vmem:[#allocation2 + $0x80] sm:$0xff]  ;;  %v172_v33 = vld [vmem:[#allocation2 + $0x90] sm:$0xff] }
  0x3d   :  { %v6486_v31 = vpack.c.bf16 %v177_v29, %v173_v28  ;;  %v174_v32 = vld [vmem:[#allocation2 + $0xa0] sm:$0xff]  ;;  %v176_v34 = vld [vmem:[#allocation2 + $0xb0] sm:$0xff]  ;;  %v179_v36 = vld [vmem:[#allocation2 + $0xc8] sm:$0xff] }
  0x3e   :  { %4471 = vmatpush1.bf16.msra.mxu0 %v6478_v22  ;;  %v6489_v35 = vpack.c.bf16 %v174_v32, %v170_v30  ;;  %v183_v37 = vld [vmem:[#allocation2 + $0xe8] sm:$0xff]  ;;  %v181_v38 = vld [vmem:[#allocation2 + $0xd8] sm:$0xff]  ;;  %v6493_v39 = vpack.c.bf16 %v176_v34, %v172_v33  ;;  %v178_v42 = vld [vmem:[#allocation2 + $0xc0] sm:$0xff] }
  0x3f   :  { %4503 = vmatpush1.bf16.msra.mxu1 %v6482_v26  ;;  %4473 = vmatprep.subr.bf16.mxu0 %v6484_v27  ;;  %v6495_v40 = vpack.c.bf16 %v183_v37, %v179_v36  ;;  %v185_v41 = vld [vmem:[#allocation2 + $0xf8] sm:$0xff]  ;;  %v182_v43 = vld [vmem:[#allocation2 + $0xe0] sm:$0xff]  ;;  %v180_v45 = vld [vmem:[#allocation2 + $0xd0] sm:$0xff] }
  0x40   :  { %7864 = vst [vmem:[#allocation11_spill] sm:$0xff] %v6493_v39  ;;  %4505 = vmatprep.subr.bf16.mxu1 %v6486_v31  ;;  %v6498_v44 = vpack.c.bf16 %v185_v41, %v181_v38  ;;  %v184_v46 = vld [vmem:[#allocation2 + $0xf0] sm:$0xff]  ;;  %v187_v47 = vld [vmem:[#allocation2 + $0x108] sm:$0xff]  ;;  %v189_v49 = vld [vmem:[#allocation2 + $0x118] sm:$0xff]  ;;  %v6501_v51 = vpack.c.bf16 %v182_v43, %v178_v42 }
  0x41   :  { %7865 = vst [vmem:[#allocation12_spill] sm:$0xff] %v6495_v40  ;;  %v191_v48 = vld [vmem:[#allocation2 + $0x128] sm:$0xff]  ;;  %v193_v50 = vld [vmem:[#allocation2 + $0x138] sm:$0xff]  ;;  %v6505_v52 = vpack.c.bf16 %v184_v46, %v180_v45  ;;  %v186_v54 = vld [vmem:[#allocation2 + $0x100] sm:$0xff] }
  0x42   :  { %7866 = vst [vmem:[#allocation13_spill] sm:$0xff] %v6498_v44  ;;  %4475 = vmatpush1.bf16.msra.mxu0 %v6489_v35  ;;  %7867 = vst [vmem:[#allocation14_spill] sm:$0xff] %v6501_v51  ;;  %v6507_v53 = vpack.c.bf16 %v191_v48, %v187_v47  ;;  %v190_v55 = vld [vmem:[#allocation2 + $0x120] sm:$0xff]  ;;  %v188_v56 = vld [vmem:[#allocation2 + $0x110] sm:$0xff]  ;;  %v6510_v57 = vpack.c.bf16 %v193_v50, %v189_v49 }
  0x43   :  { %4507 = vmatpush1.bf16.msra.mxu1 %v6493_v39  ;;  %4477 = vmatprep.subr.bf16.mxu0 %v6495_v40  ;;  %7868 = vst [vmem:[#allocation15_spill] sm:$0xff] %v6505_v52  ;;  %v192_v58 = vld [vmem:[#allocation2 + $0x130] sm:$0xff]  ;;  %v195_v59 = vld [vmem:[#allocation2 + $0x148] sm:$0xff]  ;;  %v197_v61 = vld [vmem:[#allocation2 + $0x158] sm:$0xff]  ;;  %v6513_v63 = vpack.c.bf16 %v190_v55, %v186_v54 }
  0x44   :  { %7869 = vst [vmem:[#allocation16_spill] sm:$0xff] %v6507_v53  ;;  %4509 = vmatprep.subr.bf16.mxu1 %v6498_v44  ;;  %7870 = vst [vmem:[#allocation17_spill] sm:$0xff] %v6510_v57  ;;  %v199_v60 = vld [vmem:[#allocation2 + $0x168] sm:$0xff]  ;;  %v201_v62 = vld [vmem:[#allocation2 + $0x178] sm:$0xff]  ;;  %v6517_v1 = vpack.c.bf16 %v192_v58, %v188_v56 }
  0x45   :  { %7871 = vst [vmem:[#allocation18_spill] sm:$0xff] %v6513_v63  ;;  %v6519_v2 = vpack.c.bf16 %v199_v60, %v195_v59  ;;  %v194_v3 = vld [vmem:[#allocation2 + $0x140] sm:$0xff]  ;;  %v196_v6 = vld [vmem:[#allocation2 + $0x150] sm:$0xff]  ;;  %v6522_v7 = vpack.c.bf16 %v201_v62, %v197_v61  ;;  %v203_v11 = vld [vmem:[#allocation2 + $0x188] sm:$0xff] }
  0x46   :  { %4479 = vmatpush1.bf16.msra.mxu0 %v6501_v51  ;;  %7872 = vst [vmem:[#allocation19_spill] sm:$0xff] %v6517_v1  ;;  %v198_v5 = vld [vmem:[#allocation2 + $0x160] sm:$0xff]  ;;  %v200_v10 = vld [vmem:[#allocation2 + $0x170] sm:$0xff]  ;;  %v207_v12 = vld [vmem:[#allocation2 + $0x1a8] sm:$0xff] }
  0x47   :  { %4511 = vmatpush1.bf16.msra.mxu1 %v6505_v52  ;;  %4481 = vmatprep.subr.bf16.mxu0 %v6507_v53  ;;  %7873 = vst [vmem:[#allocation20_spill] sm:$0xff] %v6519_v2  ;;  %7874 = vst [vmem:[#allocation21_spill] sm:$0xff] %v6522_v7  ;;  %v205_v14 = vld [vmem:[#allocation2 + $0x198] sm:$0xff]  ;;  %v6525_v16 = vpack.c.bf16 %v198_v5, %v194_v3  ;;  %v6529_v19 = vpack.c.bf16 %v200_v10, %v196_v6  ;;  %v202_v21 = vld [vmem:[#allocation2 + $0x180] sm:$0xff] }
  0x48   :  { %4513 = vmatprep.subr.bf16.mxu1 %v6510_v57  ;;  %v209_v15 = vld [vmem:[#allocation2 + $0x1b8] sm:$0xff]  ;;  %v6531_v20 = vpack.c.bf16 %v207_v12, %v203_v11  ;;  %v206_v23 = vld [vmem:[#allocation2 + $0x1a0] sm:$0xff]  ;;  %v204_v24 = vld [vmem:[#allocation2 + $0x190] sm:$0xff] }
  0x49   :  { %7875 = vst [vmem:[#allocation22_spill] sm:$0xff] %v6525_v16  ;;  %7876 = vst [vmem:[#allocation23_spill] sm:$0xff] %v6529_v19  ;;  %v6534_v25 = vpack.c.bf16 %v209_v15, %v205_v14  ;;  %v208_v28 = vld [vmem:[#allocation2 + $0x1b0] sm:$0xff]  ;;  %v211_v29 = vld [vmem:[#allocation2 + $0x1c8] sm:$0xff]  ;;  %v6537_v34 = vpack.c.bf16 %v206_v23, %v202_v21 }
  0x4a   :  { %4483 = vmatpush1.bf16.msra.mxu0 %v6513_v63  ;;  %7877 = vst [vmem:[#allocation24_spill] sm:$0xff] %v6531_v20  ;;  %v215_v30 = vld [vmem:[#allocation2 + $0x1e8] sm:$0xff]  ;;  %v213_v32 = vld [vmem:[#allocation2 + $0x1d8] sm:$0xff]  ;;  %v6541_v36 = vpack.c.bf16 %v208_v28, %v204_v24  ;;  %v210_v38 = vld [vmem:[#allocation2 + $0x1c0] sm:$0xff] }
  0x4b   :  { %4515 = vmatpush1.bf16.msra.mxu1 %v6517_v1  ;;  %4485 = vmatprep.subr.bf16.mxu0 %v6519_v2  ;;  %7878 = vst [vmem:[#allocation25_spill] sm:$0xff] %v6534_v25  ;;  %v217_v33 = vld [vmem:[#allocation2 + $0x1f8] sm:$0xff]  ;;  %7879 = vst [vmem:[#allocation26_spill] sm:$0xff] %v6537_v34  ;;  %v6543_v37 = vpack.c.bf16 %v215_v30, %v211_v29  ;;  %v214_v41 = vld [vmem:[#allocation2 + $0x1e0] sm:$0xff] }
  0x4c   :  { %4517 = vmatprep.subr.bf16.mxu1 %v6522_v7  ;;  %7880 = vst [vmem:[#allocation27_spill] sm:$0xff] %v6541_v36  ;;  %v212_v42 = vld [vmem:[#allocation2 + $0x1d0] sm:$0xff]  ;;  %v6546_v43 = vpack.c.bf16 %v217_v33, %v213_v32  ;;  %v90_v46 = vld [vmem:[#allocation6 + $0x8] sm:$0xff]  ;;  %v92_v48 = vld [vmem:[#allocation6 + $0x18] sm:$0xff]  ;;  %v6549_v50 = vpack.c.bf16 %v214_v41, %v210_v38 }
  0x4d   :  { %7881 = vst [vmem:[#allocation28_spill] sm:$0xff] %v6543_v37  ;;  %v216_v45 = vld [vmem:[#allocation2 + $0x1f0] sm:$0xff]  ;;  %v94_v47 = vld [vmem:[#allocation6 + $0x28] sm:$0xff]  ;;  %v96_v49 = vld [vmem:[#allocation6 + $0x38] sm:$0xff] }
  0x4e   :  { %4487 = vmatpush1.bf16.msra.mxu0 %v6525_v16  ;;  %7882 = vst [vmem:[#allocation29_spill] sm:$0xff] %v6546_v43  ;;  %7883 = vst [vmem:[#allocation30_spill] sm:$0xff] %v6549_v50  ;;  %v6553_v54 = vpack.c.bf16 %v216_v45, %v212_v42  ;;  %v6555_v55 = vpack.c.bf16 %v94_v47, %v90_v46  ;;  %v89_v56 = vld [vmem:[#allocation6] sm:$0xff]  ;;  %v91_v59 = vld [vmem:[#allocation6 + $0x10] sm:$0xff]  ;;  %v6558_v60 = vpack.c.bf16 %v96_v49, %v92_v48 }
  0x4f   :  { %4519 = vmatpush1.bf16.msra.mxu1 %v6529_v19  ;;  %4489 = vmatprep.subr.bf16.mxu0 %v6531_v20  ;;  %v93_v58 = vld [vmem:[#allocation6 + $0x20] sm:$0xff]  ;;  %v95_v61 = vld [vmem:[#allocation6 + $0x30] sm:$0xff]  ;;  %v98_v62 = vld [vmem:[#allocation6 + $0x48] sm:$0xff] }
  0x50   :  { %4521 = vmatprep.subr.bf16.mxu1 %v6534_v25  ;;  %7884 = vst [vmem:[#allocation31_spill] sm:$0xff] %v6553_v54  ;;  %7885 = vst [vmem:[#allocation32_spill] sm:$0xff] %v6555_v55  ;;  %v102_v3 = vld [vmem:[#allocation6 + $0x68] sm:$0xff]  ;;  %v100_v5 = vld [vmem:[#allocation6 + $0x58] sm:$0xff]  ;;  %v6561_v10 = vpack.c.bf16 %v93_v58, %v89_v56  ;;  %v6565_v11 = vpack.c.bf16 %v95_v61, %v91_v59 }
  0x51   :  { %7886 = vst [vmem:[#allocation33_spill] sm:$0xff] %v6558_v60  ;;  %v104_v6 = vld [vmem:[#allocation6 + $0x78] sm:$0xff]  ;;  %v6567_v12 = vpack.c.bf16 %v102_v3, %v98_v62  ;;  %v97_v14 = vld [vmem:[#allocation6 + $0x40] sm:$0xff]  ;;  %v99_v21 = vld [vmem:[#allocation6 + $0x50] sm:$0xff] }
  0x52   :  { %4491 = vmatpush1.bf16.msra.mxu0 %v6537_v34  ;;  %7887 = vst [vmem:[#allocation34_spill] sm:$0xff] %v6561_v10  ;;  %7888 = vst [vmem:[#allocation35_spill] sm:$0xff] %v6565_v11  ;;  %v101_v15 = vld [vmem:[#allocation6 + $0x60] sm:$0xff]  ;;  %v6570_v23 = vpack.c.bf16 %v104_v6, %v100_v5  ;;  %v103_v24 = vld [vmem:[#allocation6 + $0x70] sm:$0xff] }
  0x53   :  { %4523 = vmatpush1.bf16.msra.mxu1 %v6541_v36  ;;  %4493 = vmatprep.subr.bf16.mxu0 %v6543_v37  ;;  %7889 = vst [vmem:[#allocation36_spill] sm:$0xff] %v6567_v12  ;;  %v106_v28 = vld [vmem:[#allocation6 + $0x88] sm:$0xff]  ;;  %v108_v30 = vld [vmem:[#allocation6 + $0x98] sm:$0xff]  ;;  %v6575_v33 = vpack.c.bf16 %v101_v15, %v97_v14  ;;  %v6579_v38 = vpack.c.bf16 %v103_v24, %v99_v21  ;;  %v105_v42 = vld [vmem:[#allocation6 + $0x80] sm:$0xff] }
  0x54   :  { %4525 = vmatprep.subr.bf16.mxu1 %v6546_v43  ;;  %7890 = vst [vmem:[#allocation37_spill] sm:$0xff] %v6570_v23  ;;  %v110_v29 = vld [vmem:[#allocation6 + $0xa8] sm:$0xff]  ;;  %v112_v32 = vld [vmem:[#allocation6 + $0xb8] sm:$0xff]  ;;  %v109_v45 = vld [vmem:[#allocation6 + $0xa0] sm:$0xff] }
  0x55   :  { %7891 = vst [vmem:[#allocation38_spill] sm:$0xff] %v6575_v33  ;;  %7892 = vst [vmem:[#allocation39_spill] sm:$0xff] %v6579_v38  ;;  %v6581_v41 = vpack.c.bf16 %v110_v29, %v106_v28  ;;  %v6584_v46 = vpack.c.bf16 %v112_v32, %v108_v30  ;;  %v107_v47 = vld [vmem:[#allocation6 + $0x90] sm:$0xff]  ;;  %v6589_v49 = vpack.c.bf16 %v109_v45, %v105_v42  ;;  %v114_v58 = vld [vmem:[#allocation6 + $0xc8] sm:$0xff] }
  0x56   :  { %4495 = vmatpush1.bf16.msra.mxu0 %v6549_v50  ;;  %v111_v48 = vld [vmem:[#allocation6 + $0xb0] sm:$0xff]  ;;  %v118_v59 = vld [vmem:[#allocation6 + $0xe8] sm:$0xff]  ;;  %v116_v61 = vld [vmem:[#allocation6 + $0xd8] sm:$0xff] }
  0x57   :  { %4527 = vmatpush1.bf16.msra.mxu1 %v6553_v54  ;;  %4529 = vmatprep.subr.bf16.mxu0 %v6555_v55  ;;  %7893 = vst [vmem:[#allocation40_spill] sm:$0xff] %v6581_v41  ;;  %7894 = vst [vmem:[#allocation41_spill] sm:$0xff] %v6584_v46  ;;  %v6593_v56 = vpack.c.bf16 %v111_v48, %v107_v47  ;;  %v6598_v62 = vpack.c.bf16 %v118_v59, %v114_v58  ;;  %v120_v3 = vld [vmem:[#allocation6 + $0xf8] sm:$0xff]  ;;  %v113_v5 = vld [vmem:[#allocation6 + $0xc0] sm:$0xff] }
  0x58   :  { %4561 = vmatprep.subr.bf16.mxu1 %v6558_v60  ;;  %7895 = vst [vmem:[#allocation42_spill] sm:$0xff] %v6589_v49  ;;  %v117_v6 = vld [vmem:[#allocation6 + $0xe0] sm:$0xff]  ;;  %v6600_v14 = vpack.c.bf16 %v120_v3, %v116_v61  ;;  %v115_v21 = vld [vmem:[#allocation6 + $0xd0] sm:$0xff]  ;;  %v122_v29 = vld [vmem:[#allocation6 + $0x108] sm:$0xff] }
  0x59   :  { %283 = vmatmul.mubr.f32.vlgmr.msra.gmra.mrb[0].mxu0 %v7683_v0  ;;  %7896 = vst [vmem:[#allocation43_spill] sm:$0xff] %v6593_v56  ;;  %7897 = vst [vmem:[#allocation44_spill] sm:$0xff] %v6598_v62  ;;  %v6602_v15 = vpack.c.bf16 %v117_v6, %v113_v5  ;;  %v119_v24 = vld [vmem:[#allocation6 + $0xf0] sm:$0xff]  ;;  %v126_v30 = vld [vmem:[#allocation6 + $0x128] sm:$0xff] }
  0x5a   :  { %354 = vmatmul.mubr.f32.vlgmr.msra.gmra.mrb[0].mxu1 %v7683_v0  ;;  %4531 = vmatpush1.bf16.msra.mxu0 %v6561_v10  ;;  %7898 = vst [vmem:[#allocation45_spill] sm:$0xff] %v6600_v14  ;;  %v6605_v28 = vpack.c.bf16 %v119_v24, %v115_v21  ;;  %v124_v32 = vld [vmem:[#allocation6 + $0x118] sm:$0xff]  ;;  %v6610_v42 = vpack.c.bf16 %v126_v30, %v122_v29  ;;  %v121_v47 = vld [vmem:[#allocation6 + $0x100] sm:$0xff]  ;;  %v123_v61 = vld [vmem:[#allocation6 + $0x110] sm:$0xff] }
  0x5b   :  { %4563 = vmatpush1.bf16.msra.mxu1 %v6565_v11  ;;  %4533 = vmatprep.subr.bf16.mxu0 %v6567_v12  ;;  %7899 = vst [vmem:[#allocation46_spill] sm:$0xff] %v6602_v15  ;;  %v128_v45 = vld [vmem:[#allocation6 + $0x138] sm:$0xff]  ;;  %v125_v48 = vld [vmem:[#allocation6 + $0x120] sm:$0xff]  ;;  %v127_v3 = vld [vmem:[#allocation6 + $0x130] sm:$0xff] }
  0x5c   :  { %4565 = vmatprep.subr.bf16.mxu1 %v6570_v23  ;;  %467 = vmatprep.mubr.f32.mxu0 %v7683_v0  ;;  %7900 = vst [vmem:[#allocation47_spill] sm:$0xff] %v6605_v28  ;;  %7901 = vst [vmem:[#allocation48_spill] sm:$0xff] %v6610_v42  ;;  %v6612_v58 = vpack.c.bf16 %v128_v45, %v124_v32  ;;  %v6614_v59 = vpack.c.bf16 %v125_v48, %v121_v47  ;;  %v130_v6 = vld [vmem:[#allocation6 + $0x148] sm:$0xff]  ;;  %v132_v24 = vld [vmem:[#allocation6 + $0x158] sm:$0xff] }
  0x5d   :  { %538 = vmatprep.mubr.f32.mxu1 %v7683_v0  ;;  %v6617_v5 = vpack.c.bf16 %v127_v3, %v123_v61  ;;  %v134_v21 = vld [vmem:[#allocation6 + $0x168] sm:$0xff]  ;;  %v136_v30 = vld [vmem:[#allocation6 + $0x178] sm:$0xff]  ;;  %v129_v32 = vld [vmem:[#allocation6 + $0x140] sm:$0xff] }
  0x5e   :  { %4535 = vmatpush1.bf16.msra.mxu0 %v6575_v33  ;;  %7902 = vst [vmem:[#allocation49_spill] sm:$0xff] %v6612_v58  ;;  %7903 = vst [vmem:[#allocation50_spill] sm:$0xff] %v6614_v59  ;;  %v6622_v29 = vpack.c.bf16 %v134_v21, %v130_v6  ;;  %v133_v45 = vld [vmem:[#allocation6 + $0x160] sm:$0xff]  ;;  %v6624_v47 = vpack.c.bf16 %v136_v30, %v132_v24  ;;  %v131_v61 = vld [vmem:[#allocation6 + $0x150] sm:$0xff] }
  0x5f   :  { %4567 = vmatpush1.bf16.msra.mxu1 %v6579_v38  ;;  %4537 = vmatprep.subr.bf16.mxu0 %v6581_v41  ;;  %7904 = vst [vmem:[#allocation51_spill] sm:$0xff] %v6617_v5  ;;  %v6626_v48 = vpack.c.bf16 %v133_v45, %v129_v32  ;;  %v135_v3 = vld [vmem:[#allocation6 + $0x170] sm:$0xff]  ;;  %v142_v6 = vld [vmem:[#allocation6 + $0x1a8] sm:$0xff]  ;;  %v140_v21 = vld [vmem:[#allocation6 + $0x198] sm:$0xff] }
  0x60   :  { %4569 = vmatprep.subr.bf16.mxu1 %v6584_v46  ;;  %7905 = vst [vmem:[#allocation52_spill] sm:$0xff] %v6622_v29  ;;  %7906 = vst [vmem:[#allocation53_spill] sm:$0xff] %v6624_v47  ;;  %v6629_v0 = vpack.c.bf16 %v135_v3, %v131_v61  ;;  %v144_v24 = vld [vmem:[#allocation6 + $0x1b8] sm:$0xff]  ;;  %v137_v30 = vld [vmem:[#allocation6 + $0x180] sm:$0xff] }
  0x61   :  { %7907 = vst [vmem:[#allocation54_spill] sm:$0xff] %v6626_v48  ;;  %v141_v32 = vld [vmem:[#allocation6 + $0x1a0] sm:$0xff]  ;;  %v6636_v45 = vpack.c.bf16 %v144_v24, %v140_v21  ;;  %v139_v61 = vld [vmem:[#allocation6 + $0x190] sm:$0xff]  ;;  %v152_v21 = vld [vmem:[#allocation6 + $0x1f8] sm:$0xff] }
  0x62   :  { %4539 = vmatpush1.bf16.msra.mxu0 %v6589_v49  ;;  %7908 = vst [vmem:[#allocation55_spill] sm:$0xff] %v6629_v0  ;;  %v143_v3 = vld [vmem:[#allocation6 + $0x1b0] sm:$0xff]  ;;  %v145_v24 = vld [vmem:[#allocation6 + $0x1c0] sm:$0xff] }
  0x63   :  { %4571 = vmatpush1.bf16.msra.mxu1 %v6593_v56  ;;  %4541 = vmatprep.subr.bf16.mxu0 %v6598_v62  ;;  %7910 = vst [vmem:[#allocation57_spill] sm:$0xff] %v6636_v45  ;;  %v604_v62 = vld [vmem:[#allocation4 + $0x1d8] sm:$0xff]  ;;  %v607_v56 = vld [vmem:[#allocation4 + $0x1f0] sm:$0xff] }
  0x64   :  { %4573 = vmatprep.subr.bf16.mxu1 %v6600_v14  ;;  %v606_v14 = vld [vmem:[#allocation4 + $0x1e8] sm:$0xff] }
  0x66   :  { %4543 = vmatpush1.bf16.msra.mxu0 %v6602_v15  ;;  %v592_v15 = vld [vmem:[#allocation4 + $0x178] sm:$0xff] }
  0x67   :  { %4575 = vmatpush1.bf16.msra.mxu1 %v6605_v28  ;;  %4545 = vmatprep.subr.bf16.mxu0 %v6610_v42  ;;  %v590_v28 = vld [vmem:[#allocation4 + $0x168] sm:$0xff] }
  0x68   :  { %4577 = vmatprep.subr.bf16.mxu1 %v6612_v58  ;;  %v6638_v58 = vpack.c.bf16 %v141_v32, %v137_v30  ;;  %v149_v30 = vld [vmem:[#allocation6 + $0x1e0] sm:$0xff] }
  0x6a   :  { %4547 = vmatpush1.bf16.msra.mxu0 %v6614_v59  ;;  %7911 = vst [vmem:[#allocation58_spill] sm:$0xff] %v6638_v58 }
  0x6b   :  { %4579 = vmatpush1.bf16.msra.mxu1 %v6617_v5  ;;  %4549 = vmatprep.subr.bf16.mxu0 %v6622_v29  ;;  %v138_v5 = vld [vmem:[#allocation6 + $0x188] sm:$0xff]  ;;  %v6650_v29 = vpack.c.bf16 %v149_v30, %v145_v24  ;;  %v549_v24 = vld [vmem:[#allocation4 + $0x20] sm:$0xff] }
  0x6c   :  { %4581 = vmatprep.subr.bf16.mxu1 %v6624_v47  ;;  %v6634_v59 = vpack.c.bf16 %v142_v6, %v138_v5  ;;  %v6641_v47 = vpack.c.bf16 %v143_v3, %v139_v61  ;;  %v150_v5 = vld [vmem:[#allocation6 + $0x1e8] sm:$0xff]  ;;  %v148_v6 = vld [vmem:[#allocation6 + $0x1d8] sm:$0xff]  ;;  %v147_v61 = vld [vmem:[#allocation6 + $0x1d0] sm:$0xff] }
  0x6d   :  { %v6648_v32 = vpack.c.bf16 %v152_v21, %v148_v6  ;;  %7915 = vst [vmem:[#allocation62_spill] sm:$0xff] %v6650_v29  ;;  %v151_v3 = vld [vmem:[#allocation6 + $0x1f0] sm:$0xff]  ;;  %v552_v6 = vld [vmem:[#allocation4 + $0x38] sm:$0xff]  ;;  %v545_v21 = vld [vmem:[#allocation4] sm:$0xff] }
  0x6e   :  { %4551 = vmatpush1.bf16.msra.mxu0 %v6626_v48  ;;  %7909 = vst [vmem:[#allocation56_spill] sm:$0xff] %v6634_v59  ;;  %7912 = vst [vmem:[#allocation59_spill] sm:$0xff] %v6641_v47 }
  0x6f   :  { %4583 = vmatpush1.bf16.msra.mxu1 %v6629_v0  ;;  %4553 = vmatprep.subr.bf16.mxu0 %v6634_v59  ;;  %v146_v0 = vld [vmem:[#allocation6 + $0x1c8] sm:$0xff]  ;;  %7914 = vst [vmem:[#allocation61_spill] sm:$0xff] %v6648_v32  ;;  %v6662_v59 = vpack.c.bf16 %v549_v24, %v545_v21  ;;  %v553_v21 = vld [vmem:[#allocation4 + $0x40] sm:$0xff] }
  0x70   :  { %4585 = vmatprep.subr.bf16.mxu1 %v6636_v45  ;;  %v6646_v48 = vpack.c.bf16 %v150_v5, %v146_v0  ;;  %v6653_v45 = vpack.c.bf16 %v151_v3, %v147_v61  ;;  %v550_v0 = vld [vmem:[#allocation4 + $0x28] sm:$0xff]  ;;  %v548_v5 = vld [vmem:[#allocation4 + $0x18] sm:$0xff]  ;;  %v547_v61 = vld [vmem:[#allocation4 + $0x10] sm:$0xff] }
  0x71   :  { %v6660_v30 = vpack.c.bf16 %v552_v6, %v548_v5  ;;  %7919 = vst [vmem:[#allocation66_spill] sm:$0xff] %v6662_v59  ;;  %v551_v3 = vld [vmem:[#allocation4 + $0x30] sm:$0xff]  ;;  %v560_v6 = vld [vmem:[#allocation4 + $0x78] sm:$0xff]  ;;  %v557_v24 = vld [vmem:[#allocation4 + $0x60] sm:$0xff] }
  0x72   :  { %4555 = vmatpush1.bf16.msra.mxu0 %v6638_v58  ;;  %7913 = vst [vmem:[#allocation60_spill] sm:$0xff] %v6646_v48  ;;  %7916 = vst [vmem:[#allocation63_spill] sm:$0xff] %v6653_v45 }
  0x73   :  { %4587 = vmatpush1.bf16.msra.mxu1 %v6641_v47  ;;  %4557 = vmatprep.subr.bf16.mxu0 %v6646_v48  ;;  %v546_v47 = vld [vmem:[#allocation4 + $0x8] sm:$0xff]  ;;  %7918 = vst [vmem:[#allocation65_spill] sm:$0xff] %v6660_v30 }
  0x74   :  { %4589 = vmatprep.subr.bf16.mxu1 %v6648_v32  ;;  %v6658_v58 = vpack.c.bf16 %v550_v0, %v546_v47  ;;  %v7920_v32 = vmov 0.0   ;;  %v554_v47 = vld [vmem:[#allocation4 + $0x48] sm:$0xff] }
  0x75   :  { %v558_v0 = vld [vmem:[#allocation4 + $0x68] sm:$0xff] }
  0x76   :  { %4559 = vmatpush1.bf16.msra.mxu0 %v6650_v29  ;;  %7917 = vst [vmem:[#allocation64_spill] sm:$0xff] %v6658_v58  ;;  %v6666_v29 = vpack.c.bf16 %v551_v3, %v547_v61  ;;  %v6672_v5 = vpack.c.bf16 %v558_v0, %v554_v47  ;;  %v6676_v61 = vpack.c.bf16 %v557_v24, %v553_v21  ;;  %v555_v3 = vld [vmem:[#allocation4 + $0x50] sm:$0xff]  ;;  %v562_v47 = vld [vmem:[#allocation4 + $0x88] sm:$0xff]  ;;  %v561_v21 = vld [vmem:[#allocation4 + $0x80] sm:$0xff] }
  0x77   :  { %4591 = vmatpush1.bf16.msra.mxu1 %v6653_v45  ;;  %4593 = vmatprep.subr.bf16.mxu0 %v6658_v58  ;;  %v556_v45 = vld [vmem:[#allocation4 + $0x58] sm:$0xff]  ;;  %v566_v0 = vld [vmem:[#allocation4 + $0xa8] sm:$0xff]  ;;  %v565_v24 = vld [vmem:[#allocation4 + $0xa0] sm:$0xff] }
  0x78   :  { %7921 = vst [vmem:[#allocation67_spill] sm:$0xff] %v6666_v29  ;;  %4625 = vmatprep.subr.bf16.mxu1 %v6660_v30  ;;  %7922 = vst [vmem:[#allocation68_spill] sm:$0xff] %v6672_v5  ;;  %v6674_v58 = vpack.c.bf16 %v560_v6, %v556_v45  ;;  %v559_v30 = vld [vmem:[#allocation4 + $0x70] sm:$0xff]  ;;  %v6686_v45 = vpack.c.bf16 %v566_v0, %v562_v47  ;;  %v568_v6 = vld [vmem:[#allocation4 + $0xb8] sm:$0xff]  ;;  %v6690_v42 = vpack.c.bf16 %v565_v24, %v561_v21 }
  0x79   :  { %468 = vmatmul.mubr.f32.vlgmr.msra.gmra.mrb[2].mxu0 %v7920_v32  ;;  %7924 = vst [vmem:[#allocation70_spill] sm:$0xff] %v6676_v61  ;;  %v569_v0 = vld [vmem:[#allocation4 + $0xc0] sm:$0xff] }
  0x7a   :  { %539 = vmatmul.mubr.f32.vlgmr.msra.gmra.mrb[2].mxu1 %v7920_v32  ;;  %4595 = vmatpush1.bf16.msra.mxu0 %v6662_v59  ;;  %7923 = vst [vmem:[#allocation69_spill] sm:$0xff] %v6674_v58  ;;  %v6681_v59 = vpack.c.bf16 %v559_v30, %v555_v3  ;;  %7926 = vst [vmem:[#allocation72_spill] sm:$0xff] %v6686_v45  ;;  %v563_v30 = vld [vmem:[#allocation4 + $0x90] sm:$0xff] }
  0x7b   :  { %4627 = vmatpush1.bf16.msra.mxu1 %v6666_v29  ;;  %673 = vmatprep.mubr.f32.mxu0 %v7920_v32  ;;  %v564_v29 = vld [vmem:[#allocation4 + $0x98] sm:$0xff]  ;;  %7928 = vst [vmem:[#allocation74_spill] sm:$0xff] %v6690_v42  ;;  %v567_v3 = vld [vmem:[#allocation4 + $0xb0] sm:$0xff] }
  0x7c   :  { %744 = vmatprep.mubr.f32.mxu1 %v7920_v32  ;;  %4597 = vmatprep.subr.bf16.mxu0 %v6672_v5  ;;  %7925 = vst [vmem:[#allocation71_spill] sm:$0xff] %v6681_v59  ;;  %v6688_v48 = vpack.c.bf16 %v568_v6, %v564_v29  ;;  %v574_v5 = vld [vmem:[#allocation4 + $0xe8] sm:$0xff]  ;;  %v576_v29 = vld [vmem:[#allocation4 + $0xf8] sm:$0xff]  ;;  %v573_v6 = vld [vmem:[#allocation4 + $0xe0] sm:$0xff] }
  0x7d   :  { %4629 = vmatprep.subr.bf16.mxu1 %v6674_v58  ;;  %v6693_v58 = vpack.c.bf16 %v567_v3, %v563_v30  ;;  %v6702_v24 = vpack.c.bf16 %v573_v6, %v569_v0  ;;  %v571_v30 = vld [vmem:[#allocation4 + $0xd0] sm:$0xff] }
  0x7e   :  { %4599 = vmatpush1.bf16.msra.mxu0 %v6676_v61  ;;  %7927 = vst [vmem:[#allocation73_spill] sm:$0xff] %v6688_v48  ;;  %v570_v61 = vld [vmem:[#allocation4 + $0xc8] sm:$0xff]  ;;  %v575_v3 = vld [vmem:[#allocation4 + $0xf0] sm:$0xff] }
  0x7f   :  { %4631 = vmatpush1.bf16.msra.mxu1 %v6681_v59  ;;  %4601 = vmatprep.subr.bf16.mxu0 %v6686_v45  ;;  %7929 = vst [vmem:[#allocation75_spill] sm:$0xff] %v6693_v58  ;;  %v572_v59 = vld [vmem:[#allocation4 + $0xd8] sm:$0xff]  ;;  %v6698_v47 = vpack.c.bf16 %v574_v5, %v570_v61  ;;  %7932 = vst [vmem:[#allocation78_spill] sm:$0xff] %v6702_v24  ;;  %v582_v45 = vld [vmem:[#allocation4 + $0x128] sm:$0xff] }
  0x80   :  { %4633 = vmatprep.subr.bf16.mxu1 %v6688_v48  ;;  %v6700_v21 = vpack.c.bf16 %v576_v29, %v572_v59  ;;  %v6705_v48 = vpack.c.bf16 %v575_v3, %v571_v30  ;;  %v584_v59 = vld [vmem:[#allocation4 + $0x138] sm:$0xff]  ;;  %v577_v61 = vld [vmem:[#allocation4 + $0x100] sm:$0xff]  ;;  %v579_v30 = vld [vmem:[#allocation4 + $0x110] sm:$0xff] }
  0x81   :  { %7930 = vst [vmem:[#allocation76_spill] sm:$0xff] %v6698_v47  ;;  %v581_v29 = vld [vmem:[#allocation4 + $0x120] sm:$0xff]  ;;  %v583_v3 = vld [vmem:[#allocation4 + $0x130] sm:$0xff] }
  0x82   :  { %4603 = vmatpush1.bf16.msra.mxu0 %v6690_v42  ;;  %7931 = vst [vmem:[#allocation77_spill] sm:$0xff] %v6700_v21  ;;  %7933 = vst [vmem:[#allocation79_spill] sm:$0xff] %v6705_v48  ;;  %v578_v42 = vld [vmem:[#allocation4 + $0x108] sm:$0xff]  ;;  %v6714_v6 = vpack.c.bf16 %v581_v29, %v577_v61  ;;  %v587_v61 = vld [vmem:[#allocation4 + $0x150] sm:$0xff] }
  0x83   :  { %4635 = vmatpush1.bf16.msra.mxu1 %v6693_v58  ;;  %4605 = vmatprep.subr.bf16.mxu0 %v6698_v47  ;;  %v580_v58 = vld [vmem:[#allocation4 + $0x118] sm:$0xff]  ;;  %v6710_v5 = vpack.c.bf16 %v582_v45, %v578_v42  ;;  %v586_v47 = vld [vmem:[#allocation4 + $0x148] sm:$0xff] }
  0x84   :  { %4637 = vmatprep.subr.bf16.mxu1 %v6700_v21  ;;  %v6712_v0 = vpack.c.bf16 %v584_v59, %v580_v58  ;;  %7936 = vst [vmem:[#allocation82_spill] sm:$0xff] %v6714_v6  ;;  %v6717_v21 = vpack.c.bf16 %v583_v3, %v579_v30  ;;  %v6720_v42 = vpack.c.bf16 %v590_v28, %v586_v47  ;;  %v585_v58 = vld [vmem:[#allocation4 + $0x140] sm:$0xff]  ;;  %v591_v30 = vld [vmem:[#allocation4 + $0x170] sm:$0xff]  ;;  %v594_v3 = vld [vmem:[#allocation4 + $0x188] sm:$0xff] }
  0x85   :  { %7934 = vst [vmem:[#allocation80_spill] sm:$0xff] %v6710_v5  ;;  %v589_v59 = vld [vmem:[#allocation4 + $0x160] sm:$0xff]  ;;  %v6730_v28 = vpack.c.bf16 %v591_v30, %v587_v61  ;;  %v596_v47 = vld [vmem:[#allocation4 + $0x198] sm:$0xff] }
  0x86   :  { %4607 = vmatpush1.bf16.msra.mxu0 %v6702_v24  ;;  %7935 = vst [vmem:[#allocation81_spill] sm:$0xff] %v6712_v0  ;;  %7937 = vst [vmem:[#allocation83_spill] sm:$0xff] %v6717_v21  ;;  %v588_v24 = vld [vmem:[#allocation4 + $0x158] sm:$0xff]  ;;  %v6726_v29 = vpack.c.bf16 %v589_v59, %v585_v58  ;;  %v599_v58 = vld [vmem:[#allocation4 + $0x1b0] sm:$0xff] }
  0x87   :  { %4639 = vmatpush1.bf16.msra.mxu1 %v6705_v48  ;;  %4609 = vmatprep.subr.bf16.mxu0 %v6710_v5  ;;  %7938 = vst [vmem:[#allocation84_spill] sm:$0xff] %v6720_v42  ;;  %v6722_v45 = vpack.c.bf16 %v592_v15, %v588_v24  ;;  %v598_v5 = vld [vmem:[#allocation4 + $0x1a8] sm:$0xff]  ;;  %7940 = vst [vmem:[#allocation86_spill] sm:$0xff] %v6730_v28  ;;  %v600_v24 = vld [vmem:[#allocation4 + $0x1b8] sm:$0xff] }
  0x88   :  { %4641 = vmatprep.subr.bf16.mxu1 %v6712_v0  ;;  %v6732_v15 = vpack.c.bf16 %v598_v5, %v594_v3  ;;  %v593_v0 = vld [vmem:[#allocation4 + $0x180] sm:$0xff]  ;;  %v6734_v48 = vpack.c.bf16 %v600_v24, %v596_v47  ;;  %v602_v59 = vld [vmem:[#allocation4 + $0x1c8] sm:$0xff]  ;;  %v608_v5 = vld [vmem:[#allocation4 + $0x1f8] sm:$0xff] }
  0x89   :  { %7939 = vst [vmem:[#allocation85_spill] sm:$0xff] %v6722_v45  ;;  %v601_v30 = vld [vmem:[#allocation4 + $0x1c0] sm:$0xff]  ;;  %v6744_v3 = vpack.c.bf16 %v606_v14, %v602_v59  ;;  %v6746_v47 = vpack.c.bf16 %v608_v5, %v604_v62  ;;  %v69_v62 = vlaneseq  ;;  %v6365_v14 = vmov 1983009808  }
  0x8a   :  { %4611 = vmatpush1.bf16.msra.mxu0 %v6714_v6  ;;  %7941 = vst [vmem:[#allocation87_spill] sm:$0xff] %v6732_v15  ;;  %7942 = vst [vmem:[#allocation88_spill] sm:$0xff] %v6734_v48  ;;  %v597_v6 = vld [vmem:[#allocation4 + $0x1a0] sm:$0xff] }
  0x8b   :  { %4643 = vmatpush1.bf16.msra.mxu1 %v6717_v21  ;;  %4613 = vmatprep.subr.bf16.mxu0 %v6720_v42  ;;  %v595_v21 = vld [vmem:[#allocation4 + $0x190] sm:$0xff]  ;;  %7945 = vst [vmem:[#allocation91_spill] sm:$0xff] %v6744_v3  ;;  %7946 = vst [vmem:[#allocation92_spill] sm:$0xff] %v6746_v47  ;;  %v605_v24 = vld [vmem:[#allocation4 + $0x1e0] sm:$0xff] }
  0x8c   :  { %4645 = vmatprep.subr.bf16.mxu1 %v6722_v45  ;;  %v6738_v45 = vpack.c.bf16 %v597_v6, %v593_v0  ;;  %v6740_v61 = vpack.c.bf16 %v599_v58, %v595_v21  ;;  %v603_v42 = vld [vmem:[#allocation4 + $0x1d0] sm:$0xff]  ;;  %v6750_v0 = vpack.c.bf16 %v605_v24, %v601_v30  ;;  %v367_v6 = vunpack.c.l.s4 %v6365_v14  ;;  %v153_v14 = vld [vmem:[%s7675_s0] sm:$0xff] }
  0x8d   :  { %v6752_v21 = vpack.c.bf16 %v607_v56, %v603_v42  ;;  %v6760_v58 = vshrl.u32 %v69_v62, 7 }
  0x8e   :  { %4615 = vmatpush1.bf16.msra.mxu0 %v6726_v29  ;;  %7943 = vst [vmem:[#allocation89_spill] sm:$0xff] %v6738_v45  ;;  %7944 = vst [vmem:[#allocation90_spill] sm:$0xff] %v6740_v61  ;;  %v368_v59 = vunpack.c.0.s8 %v367_v6 }
  0x8f   :  { %4647 = vmatpush1.bf16.msra.mxu1 %v6730_v28  ;;  %4617 = vmatprep.subr.bf16.mxu0 %v6732_v15  ;;  %7947 = vst [vmem:[#allocation93_spill] sm:$0xff] %v6750_v0  ;;  %7948 = vst [vmem:[#allocation94_spill] sm:$0xff] %v6752_v21 }
  0x90   :  { %4649 = vmatprep.subr.bf16.mxu1 %v6734_v48  ;;  %v6763_v42 = vsub.s32 %v368_v59, %v6760_v58 }
  0x92   :  { %4619 = vmatpush1.bf16.msra.mxu0 %v6738_v45 }
  0x93   :  { %4651 = vmatpush1.bf16.msra.mxu1 %v6740_v61  ;;  %4621 = vmatprep.subr.bf16.mxu0 %v6744_v3 }
  0x94   :  { %4653 = vmatprep.subr.bf16.mxu1 %v6746_v47 }
  0x96   :  { %4623 = vmatpush1.bf16.msra.mxu0 %v6750_v0 }
  0x97   :  { %4655 = vmatpush1.bf16.msra.mxu1 %v6752_v21  ;;  %4657 = vmatprep.subr.bf16.mxu0 %v6462_v4 }
  0x98   :  { %4689 = vmatprep.subr.bf16.mxu1 %v6464_v8 }
 0x12c   :  { %v284_v56 = vpop.f32.mrb[0].mxu0 }
 0x12d   :  { %v355_v5 = vpop.f32.mrb[0].mxu1  ;;  %v286_v30 = vpop.f32.mrb[1].mxu0 }
 0x12e   :  { %v364_v24 = vcombine.low %v284_v56, %v286_v30  ;;  %v357_v0 = vpop.f32.mrb[1].mxu1 }
 0x12f   :  { %v365_v47 = vcombine.low %v355_v5, %v357_v0 }
 0x130   :  { %v372_v21 = vrot.slane %v364_v24, %v6763_v42 }
 0x131   :  { %v379_v4 = vrot.slane %v365_v47, %v6763_v42 }
 0x133   :  { %v380_v62 = vcombine.low %v372_v21, %v379_v4  ;;  %v7953_v21 = vld [vmem:[#allocation47_spill] sm:$0xff] }
 0x135   :  { %v382_v8 = vadd.f32 %v380_v62, %v153_v14  ;;  %v7954_v14 = vld [vmem:[#allocation48_spill] sm:$0xff]  ;;  %v7955_v62 = vld [vmem:[#allocation49_spill] sm:$0xff] }
 0x137   :  { %v4372_v6 = vmul.f32 -1.442695, %v382_v8  ;;  %v390_v61 = vrot.slane %v382_v8, 6  ;;  %v7949_v8 = vld [vmem:[#allocation43_spill] sm:$0xff] }
 0x139   :  { %6097 = vpow2.f32 %v4372_v6  ;;  %v7956_v6 = vld [vmem:[#allocation50_spill] sm:$0xff] }
 0x143   :  { %v6098_v3 = vpop.eup %6097 }
 0x144   :  { %v386_v59 = vadd.f32 1.0, %v6098_v3  ;;  %v7952_v3 = vld [vmem:[#allocation46_spill] sm:$0xff] }
 0x146   :  { %6099 = vrcp.f32 %v386_v59  ;;  %v7957_v59 = vld [vmem:[#allocation51_spill] sm:$0xff] }
 0x147   :  { %6101 = vtanh.f32 %v390_v61  ;;  %v7951_v61 = vld [vmem:[#allocation45_spill] sm:$0xff] }
 0x150   :  { %v6100_v56 = vpop.eup %6099 }
 0x151   :  { %v394_v30 = vrot.slane %v6100_v56, 2  ;;  %v6102_v0 = vpop.eup %6101  ;;  %v400_v47 = vrot.slane %v6100_v56, 4 }
 0x152   :  { %v397_v5 = vmul.f32 %v6102_v0, %v6100_v56  ;;  %v7958_v56 = vld [vmem:[#allocation52_spill] sm:$0xff]  ;;  %v7960_v0 = vld [vmem:[#allocation54_spill] sm:$0xff] }
 0x153   :  { %v396_v24 = vmul.f32 0.0, %v394_v30  ;;  %v7959_v30 = vld [vmem:[#allocation53_spill] sm:$0xff] }
 0x155   :  { %v6770_v45 = vadd.f32 %v397_v5, %v396_v24  ;;  %v7961_v5 = vld [vmem:[#allocation55_spill] sm:$0xff]  ;;  %v7962_v24 = vld [vmem:[#allocation56_spill] sm:$0xff] }
 0x157   :  { %6103 = vtanh.f32 %v6770_v45 }
 0x161   :  { %v6104_v48 = vpop.eup %6103 }
 0x162   :  { %v402_v4 = vmul.f32 %v6104_v48, %v400_v47  ;;  %v7950_v48 = vld [vmem:[#allocation44_spill] sm:$0xff]  ;;  %v7963_v47 = vld [vmem:[#allocation57_spill] sm:$0xff] }
 0x164   :  { %674 = vmatmul.mubr.f32.vlgmr.msra.gmra.mrb[2].mxu0 %v402_v4  ;;  %745 = vmatmul.mubr.f32.vlgmr.msra.gmra.mrb[2].mxu1 %v402_v4 }
 0x165   :  { %4659 = vmatpush1.bf16.msra.mxu0 %v6466_v9  ;;  %4691 = vmatpush1.bf16.msra.mxu1 %v6469_v13 }
 0x166   :  { %4661 = vmatprep.subr.bf16.mxu0 %v6473_v17  ;;  %4693 = vmatprep.subr.bf16.mxu1 %v6475_v18 }
 0x167   :  { %845 = vmatprep.mubr.f32.mxu0 %v7920_v32  ;;  %916 = vmatprep.mubr.f32.mxu1 %v7920_v32 }
 0x169   :  { %4663 = vmatpush1.bf16.msra.mxu0 %v6478_v22  ;;  %4695 = vmatpush1.bf16.msra.mxu1 %v6482_v26 }
 0x16a   :  { %4665 = vmatprep.subr.bf16.mxu0 %v6484_v27  ;;  %4697 = vmatprep.subr.bf16.mxu1 %v6486_v31 }
 0x16d   :  { %4667 = vmatpush1.bf16.msra.mxu0 %v6489_v35  ;;  %4699 = vmatpush1.bf16.msra.mxu1 %v6493_v39 }
 0x16e   :  { %4669 = vmatprep.subr.bf16.mxu0 %v6495_v40  ;;  %4701 = vmatprep.subr.bf16.mxu1 %v6498_v44 }
 0x171   :  { %4671 = vmatpush1.bf16.msra.mxu0 %v6501_v51  ;;  %4703 = vmatpush1.bf16.msra.mxu1 %v6505_v52 }
 0x172   :  { %4673 = vmatprep.subr.bf16.mxu0 %v6507_v53  ;;  %4705 = vmatprep.subr.bf16.mxu1 %v6510_v57 }
 0x175   :  { %4675 = vmatpush1.bf16.msra.mxu0 %v6513_v63  ;;  %4707 = vmatpush1.bf16.msra.mxu1 %v6517_v1 }
 0x176   :  { %4677 = vmatprep.subr.bf16.mxu0 %v6519_v2  ;;  %4709 = vmatprep.subr.bf16.mxu1 %v6522_v7 }
 0x179   :  { %4679 = vmatpush1.bf16.msra.mxu0 %v6525_v16  ;;  %4711 = vmatpush1.bf16.msra.mxu1 %v6529_v19 }
 0x17a   :  { %4681 = vmatprep.subr.bf16.mxu0 %v6531_v20  ;;  %4713 = vmatprep.subr.bf16.mxu1 %v6534_v25 }
 0x17d   :  { %4683 = vmatpush1.bf16.msra.mxu0 %v6537_v34  ;;  %4715 = vmatpush1.bf16.msra.mxu1 %v6541_v36 }
 0x17e   :  { %4685 = vmatprep.subr.bf16.mxu0 %v6543_v37  ;;  %4717 = vmatprep.subr.bf16.mxu1 %v6546_v43 }
 0x181   :  { %4687 = vmatpush1.bf16.msra.mxu0 %v6549_v50  ;;  %4719 = vmatpush1.bf16.msra.mxu1 %v6553_v54 }
 0x182   :  { %4721 = vmatprep.subr.bf16.mxu0 %v6555_v55  ;;  %4753 = vmatprep.subr.bf16.mxu1 %v6558_v60 }
 0x184   :  { %846 = vmatmul.mubr.f32.vlgmr.msra.gmra.mrb[4].mxu0 %v402_v4  ;;  %917 = vmatmul.mubr.f32.vlgmr.msra.gmra.mrb[4].mxu1 %v402_v4  ;;  %v7964_v4 = vld [vmem:[#allocation58_spill] sm:$0xff] }
 0x185   :  { %4723 = vmatpush1.bf16.msra.mxu0 %v6561_v10  ;;  %4755 = vmatpush1.bf16.msra.mxu1 %v6565_v11 }
 0x186   :  { %4725 = vmatprep.subr.bf16.mxu0 %v6567_v12  ;;  %4757 = vmatprep.subr.bf16.mxu1 %v6570_v23 }
 0x187   :  { %1030 = vmatprep.mubr.f32.mxu0 %v7920_v32  ;;  %1101 = vmatprep.mubr.f32.mxu1 %v7920_v32 }
 0x189   :  { %4727 = vmatpush1.bf16.msra.mxu0 %v6575_v33  ;;  %4759 = vmatpush1.bf16.msra.mxu1 %v6579_v38 }
 0x18a   :  { %4729 = vmatprep.subr.bf16.mxu0 %v6581_v41  ;;  %4761 = vmatprep.subr.bf16.mxu1 %v6584_v46 }
 0x18d   :  { %4731 = vmatpush1.bf16.msra.mxu0 %v6589_v49  ;;  %4763 = vmatpush1.bf16.msra.mxu1 %v7949_v8 }
 0x18e   :  { %4733 = vmatprep.subr.bf16.mxu0 %v7950_v48  ;;  %4765 = vmatprep.subr.bf16.mxu1 %v7951_v61  ;;  %v83_v48 = vsub.s32 3, %v6760_v58 }
 0x191   :  { %4735 = vmatpush1.bf16.msra.mxu0 %v7952_v3  ;;  %4767 = vmatpush1.bf16.msra.mxu1 %v7953_v21 }
 0x192   :  { %4737 = vmatprep.subr.bf16.mxu0 %v7954_v14  ;;  %4769 = vmatprep.subr.bf16.mxu1 %v7955_v62  ;;  %v7965_v14 = vld [vmem:[#allocation59_spill] sm:$0xff]  ;;  %v7966_v62 = vld [vmem:[#allocation60_spill] sm:$0xff] }
 0x195   :  { %4739 = vmatpush1.bf16.msra.mxu0 %v7956_v6  ;;  %4771 = vmatpush1.bf16.msra.mxu1 %v7957_v59  ;;  %v7967_v6 = vld [vmem:[#allocation61_spill] sm:$0xff]  ;;  %v7968_v59 = vld [vmem:[#allocation62_spill] sm:$0xff] }
 0x196   :  { %4741 = vmatprep.subr.bf16.mxu0 %v7958_v56  ;;  %4773 = vmatprep.subr.bf16.mxu1 %v7959_v30  ;;  %v7969_v56 = vld [vmem:[#allocation63_spill] sm:$0xff]  ;;  %v7970_v30 = vld [vmem:[#allocation64_spill] sm:$0xff] }
 0x199   :  { %4743 = vmatpush1.bf16.msra.mxu0 %v7960_v0  ;;  %4775 = vmatpush1.bf16.msra.mxu1 %v7961_v5  ;;  %v7971_v0 = vld [vmem:[#allocation65_spill] sm:$0xff] }
 0x19a   :  { %4745 = vmatprep.subr.bf16.mxu0 %v7962_v24  ;;  %4777 = vmatprep.subr.bf16.mxu1 %v7963_v47  ;;  %v71_v24 = vsub.s32 0, %v6760_v58 }
 0x19d   :  { %4747 = vmatpush1.bf16.msra.mxu0 %v7964_v4  ;;  %4779 = vmatpush1.bf16.msra.mxu1 %v7965_v14  ;;  %v67_v4 = vld [vmem:[%s7679_s4] sm:$0xf]  ;;  %v75_v14 = vsub.s32 1, %v6760_v58 }
 0x19e   :  { %4749 = vmatprep.subr.bf16.mxu0 %v7966_v62  ;;  %4781 = vmatprep.subr.bf16.mxu1 %v7967_v6  ;;  %v6846_v47 = vrot.slane %v67_v4, %v71_v24 }
 0x19f   :  { %v6848_v62 = vrot.slane %v67_v4, %v75_v14  ;;  %v6856_v14 = vrot.slane %v67_v4, %v83_v48 }
 0x1a0   :  { %7972 = vst [vmem:[#allocation95_spill] sm:$0xff] %v6846_v47 }
 0x1a1   :  { %4751 = vmatpush1.bf16.msra.mxu0 %v7968_v59  ;;  %4783 = vmatpush1.bf16.msra.mxu1 %v7969_v56 }
 0x1a2   :  { %4785 = vmatprep.subr.bf16.mxu0 %v7970_v30  ;;  %4817 = vmatprep.subr.bf16.mxu1 %v7971_v0  ;;  %v79_v30 = vsub.s32 2, %v6760_v58 }
 0x1a4   :  { %v6854_v8 = vrot.slane %v67_v4, %v79_v30 }
 0x1a6   :  { %7973 = vst [vmem:[#allocation96_spill] sm:$0xff] %v6854_v8 }
 0x237   :  { %v675_v6 = vpop.f32.mrb[2].mxu0  ;;  %v746_v59 = vpop.f32.mrb[2].mxu1 }
 0x238   :  { %v6024_v56 = vadd.f32 %v675_v6, %v6846_v47  ;;  %v677_v5 = vpop.f32.mrb[3].mxu0  ;;  %v748_v0 = vpop.f32.mrb[3].mxu1  ;;  %v6026_v24 = vadd.f32 %v746_v59, %v6854_v8 }
 0x239   :  { %v6025_v21 = vadd.f32 %v677_v5, %v6848_v62  ;;  %v6027_v6 = vadd.f32 %v748_v0, %v6856_v14 }
 0x23a   :  { %v4373_v3 = vmul.f32 -1.442695, %v6024_v56  ;;  %v4375_v47 = vmul.f32 -1.442695, %v6026_v24 }
 0x23b   :  { %v4374_v61 = vmul.f32 -1.442695, %v6025_v21 }
 0x23c   :  { %6105 = vpow2.f32 %v4373_v3 }
 0x23d   :  { %6107 = vpow2.f32 %v4374_v61 }
 0x23e   :  { %6109 = vtanh.f32 %v6027_v6 }
 0x23f   :  { %6111 = vpow2.f32 %v4375_v47  ;;  %v4376_v47 = vld [vmem:[%s7675_s0 + $0x8] sm:$0xff] }
 0x246   :  { %v6106_v49 = vpop.eup %6105 }
 0x247   :  { %v764_v46 = vadd.f32 1.0, %v6106_v49  ;;  %v6108_v41 = vpop.eup %6107 }
 0x248   :  { %v765_v21 = vadd.f32 1.0, %v6108_v41  ;;  %v6110_v58 = vpop.eup %6109 }
 0x249   :  { %6113 = vrcp.f32 %v764_v46  ;;  %v6112_v3 = vpop.eup %6111 }
 0x24a   :  { %6115 = vrcp.f32 %v765_v21  ;;  %v766_v48 = vadd.f32 1.0, %v6112_v3 }
 0x24c   :  { %6117 = vrcp.f32 %v766_v48  ;;  %v7974_v48 = vld [vmem:[#allocation66_spill] sm:$0xff] }
 0x253   :  { %v6114_v56 = vpop.eup %6113 }
 0x254   :  { %v775_v30 = vmul.f32 %v6114_v56, %v6110_v58  ;;  %v6116_v61 = vpop.eup %6115 }
 0x255   :  { %v774_v5 = vmul.f32 0.0, %v6116_v61 }
 0x256   :  { %v6118_v56 = vpop.eup %6117 }
 0x257   :  { %v847_v4 = vpop.f32.mrb[4].mxu0  ;;  %v918_v59 = vpop.f32.mrb[4].mxu1  ;;  %v6860_v8 = vadd.f32 %v775_v30, %v774_v5  ;;  %v7975_v5 = vld [vmem:[#allocation67_spill] sm:$0xff] }
 0x258   :  { %v849_v0 = vpop.f32.mrb[5].mxu0  ;;  %v920_v24 = vpop.f32.mrb[5].mxu1 }
 0x259   :  { %v927_v49 = vcombine.low %v847_v4, %v849_v0  ;;  %v928_v6 = vcombine.low %v918_v59, %v920_v24  ;;  %6119 = vtanh.f32 %v6860_v8  ;;  %v7976_v4 = vld [vmem:[#allocation68_spill] sm:$0xff]  ;;  %v7977_v59 = vld [vmem:[#allocation69_spill] sm:$0xff]  ;;  %v7978_v0 = vld [vmem:[#allocation70_spill] sm:$0xff] }
 0x25a   :  { %v7979_v24 = vld [vmem:[#allocation71_spill] sm:$0xff] }
 0x25b   :  { %v935_v41 = vrot.slane %v927_v49, %v6763_v42  ;;  %v942_v46 = vrot.slane %v928_v6, %v6763_v42  ;;  %v7980_v6 = vld [vmem:[#allocation72_spill] sm:$0xff] }
 0x25d   :  { %v943_v21 = vcombine.low %v935_v41, %v942_v46  ;;  %v7981_v41 = vld [vmem:[#allocation73_spill] sm:$0xff] }
 0x25f   :  { %v945_v58 = vadd.f32 %v4376_v47, %v943_v21  ;;  %v7982_v21 = vld [vmem:[#allocation74_spill] sm:$0xff] }
 0x261   :  { %v4377_v3 = vmul.f32 -1.442695, %v945_v58  ;;  %v953_v47 = vrot.slane %v945_v58, 6  ;;  %v7991_v58 = vld [vmem:[#allocation83_spill] sm:$0xff] }
 0x263   :  { %6121 = vpow2.f32 %v4377_v3  ;;  %v6120_v30 = vpop.eup %6119  ;;  %v7983_v3 = vld [vmem:[#allocation75_spill] sm:$0xff] }
 0x264   :  { %v778_v61 = vmul.f32 %v6120_v30, %v6118_v56  ;;  %v7984_v56 = vld [vmem:[#allocation76_spill] sm:$0xff]  ;;  %v7985_v30 = vld [vmem:[#allocation77_spill] sm:$0xff] }
 0x266   :  { %1031 = vmatmul.mubr.f32.vlgmr.msra.gmra.mrb[6].mxu0 %v778_v61  ;;  %1102 = vmatmul.mubr.f32.vlgmr.msra.gmra.mrb[6].mxu1 %v778_v61  ;;  %v7986_v61 = vld [vmem:[#allocation78_spill] sm:$0xff] }
 0x267   :  { %4787 = vmatpush1.bf16.msra.mxu0 %v7974_v48  ;;  %4819 = vmatpush1.bf16.msra.mxu1 %v7975_v5 }
 0x268   :  { %4789 = vmatprep.subr.bf16.mxu0 %v7976_v4  ;;  %4821 = vmatprep.subr.bf16.mxu1 %v7977_v59 }
 0x269   :  { %1172 = vmatprep.mubr.f32.mxu0 %v7920_v32  ;;  %1243 = vmatprep.mubr.f32.mxu1 %v7920_v32 }
 0x26b   :  { %4791 = vmatpush1.bf16.msra.mxu0 %v7978_v0  ;;  %4823 = vmatpush1.bf16.msra.mxu1 %v7979_v24  ;;  %v7987_v24 = vld [vmem:[#allocation79_spill] sm:$0xff]  ;;  %v7988_v0 = vld [vmem:[#allocation80_spill] sm:$0xff] }
 0x26c   :  { %4793 = vmatprep.subr.bf16.mxu0 %v7980_v6  ;;  %4825 = vmatprep.subr.bf16.mxu1 %v7981_v41  ;;  %v7989_v6 = vld [vmem:[#allocation81_spill] sm:$0xff] }
 0x26d   :  { %v6122_v49 = vpop.eup %6121 }
 0x26e   :  { %v949_v46 = vadd.f32 1.0, %v6122_v49  ;;  %v7990_v49 = vld [vmem:[#allocation82_spill] sm:$0xff] }
 0x26f   :  { %4795 = vmatpush1.bf16.msra.mxu0 %v7982_v21  ;;  %4827 = vmatpush1.bf16.msra.mxu1 %v7983_v3  ;;  %v7993_v3 = vld [vmem:[#allocation85_spill] sm:$0xff] }
 0x270   :  { %6123 = vrcp.f32 %v949_v46  ;;  %4797 = vmatprep.subr.bf16.mxu0 %v7984_v56  ;;  %4829 = vmatprep.subr.bf16.mxu1 %v7985_v30  ;;  %v7992_v46 = vld [vmem:[#allocation84_spill] sm:$0xff] }
 0x271   :  { %6125 = vtanh.f32 %v953_v47 }
 0x273   :  { %4799 = vmatpush1.bf16.msra.mxu0 %v7986_v61  ;;  %4831 = vmatpush1.bf16.msra.mxu1 %v7987_v24  ;;  %v7998_v24 = vld [vmem:[#allocation92_spill] sm:$0xff] }
 0x274   :  { %4801 = vmatprep.subr.bf16.mxu0 %v7988_v0  ;;  %4833 = vmatprep.subr.bf16.mxu1 %v7989_v6  ;;  %v7994_v0 = vld [vmem:[#allocation88_spill] sm:$0xff] }
 0x277   :  { %4803 = vmatpush1.bf16.msra.mxu0 %v7990_v49  ;;  %4835 = vmatpush1.bf16.msra.mxu1 %v7991_v58  ;;  %v7995_v58 = vld [vmem:[#allocation89_spill] sm:$0xff] }
 0x278   :  { %4805 = vmatprep.subr.bf16.mxu0 %v7992_v46  ;;  %4837 = vmatprep.subr.bf16.mxu1 %v7993_v3  ;;  %v7996_v46 = vld [vmem:[#allocation90_spill] sm:$0xff]  ;;  %v7997_v3 = vld [vmem:[#allocation91_spill] sm:$0xff] }
 0x27a   :  { %v6124_v56 = vpop.eup %6123 }
 0x27b   :  { %v957_v21 = vrot.slane %v6124_v56, 2  ;;  %v6126_v30 = vpop.eup %6125  ;;  %4807 = vmatpush1.bf16.msra.mxu0 %v6726_v29  ;;  %4839 = vmatpush1.bf16.msra.mxu1 %v6730_v28  ;;  %v7999_v28 = vld [vmem:[#allocation93_spill] sm:$0xff] }
 0x27c   :  { %v960_v47 = vmul.f32 %v6126_v30, %v6124_v56  ;;  %4809 = vmatprep.subr.bf16.mxu0 %v6732_v15  ;;  %4841 = vmatprep.subr.bf16.mxu1 %v7994_v0  ;;  %v8000_v30 = vld [vmem:[#allocation94_spill] sm:$0xff]  ;;  %v8001_v15 = vld [vmem:[#allocation9_spill] sm:$0xff] }
 0x27d   :  { %v959_v49 = vmul.f32 %v957_v21, %v6770_v45  ;;  %v8002_v0 = vld [vmem:[#allocation10_spill] sm:$0xff]  ;;  %v963_v45 = vrot.slane %v6124_v56, 4  ;;  %v8003_v56 = vld [vmem:[#allocation40_spill] sm:$0xff] }
 0x27f   :  { %v6895_v6 = vadd.f32 %v960_v47, %v959_v49  ;;  %4811 = vmatpush1.bf16.msra.mxu0 %v7995_v58  ;;  %4843 = vmatpush1.bf16.msra.mxu1 %v7996_v46  ;;  %v8004_v47 = vld [vmem:[#allocation41_spill] sm:$0xff] }
 0x280   :  { %4813 = vmatprep.subr.bf16.mxu0 %v7997_v3  ;;  %4845 = vmatprep.subr.bf16.mxu1 %v7998_v24 }
 0x281   :  { %6127 = vtanh.f32 %v6895_v6 }
 0x283   :  { %4815 = vmatpush1.bf16.msra.mxu0 %v7999_v28  ;;  %4847 = vmatpush1.bf16.msra.mxu1 %v8000_v30 }
 0x284   :  { %4849 = vmatprep.subr.bf16.mxu0 %v8001_v15  ;;  %4881 = vmatprep.subr.bf16.mxu1 %v8002_v0 }
 0x28b   :  { %v6128_v21 = vpop.eup %6127 }
 0x28c   :  { %v965_v49 = vmul.f32 %v6128_v21, %v963_v45  ;;  %v8005_v45 = vld [vmem:[#allocation42_spill] sm:$0xff]  ;;  %v8006_v21 = vld [vmem:[#allocation43_spill] sm:$0xff] }
 0x28e   :  { %1173 = vmatmul.mubr.f32.vlgmr.msra.gmra.mrb[6].mxu0 %v965_v49  ;;  %1244 = vmatmul.mubr.f32.vlgmr.msra.gmra.mrb[6].mxu1 %v965_v49 }
 0x28f   :  { %4851 = vmatpush1.bf16.msra.mxu0 %v6466_v9  ;;  %4883 = vmatpush1.bf16.msra.mxu1 %v6469_v13 }
 0x290   :  { %4853 = vmatprep.subr.bf16.mxu0 %v6473_v17  ;;  %4885 = vmatprep.subr.bf16.mxu1 %v6475_v18 }
 0x291   :  { %1344 = vmatprep.mubr.f32.mxu0 %v7920_v32  ;;  %1415 = vmatprep.mubr.f32.mxu1 %v7920_v32 }
 0x293   :  { %4855 = vmatpush1.bf16.msra.mxu0 %v6478_v22  ;;  %4887 = vmatpush1.bf16.msra.mxu1 %v6482_v26 }
 0x294   :  { %4857 = vmatprep.subr.bf16.mxu0 %v6484_v27  ;;  %4889 = vmatprep.subr.bf16.mxu1 %v6486_v31 }
 0x297   :  { %4859 = vmatpush1.bf16.msra.mxu0 %v6489_v35  ;;  %4891 = vmatpush1.bf16.msra.mxu1 %v6493_v39 }
 0x298   :  { %4861 = vmatprep.subr.bf16.mxu0 %v6495_v40  ;;  %4893 = vmatprep.subr.bf16.mxu1 %v6498_v44 }
 0x29b   :  { %4863 = vmatpush1.bf16.msra.mxu0 %v6501_v51  ;;  %4895 = vmatpush1.bf16.msra.mxu1 %v6505_v52 }
 0x29c   :  { %4865 = vmatprep.subr.bf16.mxu0 %v6507_v53  ;;  %4897 = vmatprep.subr.bf16.mxu1 %v6510_v57 }
 0x29f   :  { %4867 = vmatpush1.bf16.msra.mxu0 %v6513_v63  ;;  %4899 = vmatpush1.bf16.msra.mxu1 %v6517_v1 }
 0x2a0   :  { %4869 = vmatprep.subr.bf16.mxu0 %v6519_v2  ;;  %4901 = vmatprep.subr.bf16.mxu1 %v6522_v7 }
 0x2a3   :  { %4871 = vmatpush1.bf16.msra.mxu0 %v6525_v16  ;;  %4903 = vmatpush1.bf16.msra.mxu1 %v6529_v19 }
 0x2a4   :  { %4873 = vmatprep.subr.bf16.mxu0 %v6531_v20  ;;  %4905 = vmatprep.subr.bf16.mxu1 %v6534_v25 }
 0x2a7   :  { %4875 = vmatpush1.bf16.msra.mxu0 %v6537_v34  ;;  %4907 = vmatpush1.bf16.msra.mxu1 %v6541_v36 }
 0x2a8   :  { %4877 = vmatprep.subr.bf16.mxu0 %v6543_v37  ;;  %4909 = vmatprep.subr.bf16.mxu1 %v6546_v43 }
 0x2ab   :  { %4879 = vmatpush1.bf16.msra.mxu0 %v6549_v50  ;;  %4911 = vmatpush1.bf16.msra.mxu1 %v6553_v54 }
 0x2ac   :  { %4913 = vmatprep.subr.bf16.mxu0 %v6555_v55  ;;  %4945 = vmatprep.subr.bf16.mxu1 %v6558_v60  ;;  %v8029_v60 = vld [vmem:[#allocation95_spill] sm:$0xff] }
 0x2ae   :  { %1345 = vmatmul.mubr.f32.vlgmr.msra.gmra.mrb[8].mxu0 %v965_v49  ;;  %1416 = vmatmul.mubr.f32.vlgmr.msra.gmra.mrb[8].mxu1 %v965_v49  ;;  %v8007_v49 = vld [vmem:[#allocation44_spill] sm:$0xff] }
 0x2af   :  { %4915 = vmatpush1.bf16.msra.mxu0 %v6561_v10  ;;  %4947 = vmatpush1.bf16.msra.mxu1 %v6565_v11  ;;  %v8010_v11 = vld [vmem:[#allocation47_spill] sm:$0xff]  ;;  %v8011_v10 = vld [vmem:[#allocation48_spill] sm:$0xff] }
 0x2b0   :  { %4917 = vmatprep.subr.bf16.mxu0 %v6567_v12  ;;  %4949 = vmatprep.subr.bf16.mxu1 %v6570_v23  ;;  %v8008_v12 = vld [vmem:[#allocation45_spill] sm:$0xff]  ;;  %v8009_v23 = vld [vmem:[#allocation46_spill] sm:$0xff] }
 0x2b1   :  { %1529 = vmatprep.mubr.f32.mxu0 %v7920_v32  ;;  %1600 = vmatprep.mubr.f32.mxu1 %v7920_v32 }
 0x2b3   :  { %4919 = vmatpush1.bf16.msra.mxu0 %v6575_v33  ;;  %4951 = vmatpush1.bf16.msra.mxu1 %v6579_v38  ;;  %v8012_v33 = vld [vmem:[#allocation49_spill] sm:$0xff]  ;;  %v8013_v38 = vld [vmem:[#allocation50_spill] sm:$0xff] }
 0x2b4   :  { %4921 = vmatprep.subr.bf16.mxu0 %v8003_v56  ;;  %4953 = vmatprep.subr.bf16.mxu1 %v8004_v47  ;;  %v8014_v56 = vld [vmem:[#allocation51_spill] sm:$0xff]  ;;  %v8015_v47 = vld [vmem:[#allocation52_spill] sm:$0xff] }
 0x2b7   :  { %4923 = vmatpush1.bf16.msra.mxu0 %v8005_v45  ;;  %4955 = vmatpush1.bf16.msra.mxu1 %v8006_v21  ;;  %v8016_v45 = vld [vmem:[#allocation53_spill] sm:$0xff]  ;;  %v8017_v21 = vld [vmem:[#allocation54_spill] sm:$0xff] }
 0x2b8   :  { %4925 = vmatprep.subr.bf16.mxu0 %v8007_v49  ;;  %4957 = vmatprep.subr.bf16.mxu1 %v8008_v12  ;;  %v8018_v49 = vld [vmem:[#allocation55_spill] sm:$0xff]  ;;  %v8019_v12 = vld [vmem:[#allocation56_spill] sm:$0xff] }
 0x2bb   :  { %4927 = vmatpush1.bf16.msra.mxu0 %v8009_v23  ;;  %4959 = vmatpush1.bf16.msra.mxu1 %v8010_v11  ;;  %v8020_v23 = vld [vmem:[#allocation57_spill] sm:$0xff]  ;;  %v8021_v11 = vld [vmem:[#allocation58_spill] sm:$0xff] }
 0x2bc   :  { %4929 = vmatprep.subr.bf16.mxu0 %v8011_v10  ;;  %4961 = vmatprep.subr.bf16.mxu1 %v8012_v33  ;;  %v8022_v10 = vld [vmem:[#allocation59_spill] sm:$0xff]  ;;  %v8023_v33 = vld [vmem:[#allocation60_spill] sm:$0xff] }
 0x2bf   :  { %4931 = vmatpush1.bf16.msra.mxu0 %v8013_v38  ;;  %4963 = vmatpush1.bf16.msra.mxu1 %v8014_v56  ;;  %v8024_v38 = vld [vmem:[#allocation61_spill] sm:$0xff]  ;;  %v8025_v56 = vld [vmem:[#allocation62_spill] sm:$0xff] }
 0x2c0   :  { %4933 = vmatprep.subr.bf16.mxu0 %v8015_v47  ;;  %4965 = vmatprep.subr.bf16.mxu1 %v8016_v45  ;;  %v8026_v47 = vld [vmem:[#allocation63_spill] sm:$0xff]  ;;  %v8027_v45 = vld [vmem:[#allocation64_spill] sm:$0xff] }
 0x2c3   :  { %4935 = vmatpush1.bf16.msra.mxu0 %v8017_v21  ;;  %4967 = vmatpush1.bf16.msra.mxu1 %v8018_v49  ;;  %v8028_v21 = vld [vmem:[#allocation65_spill] sm:$0xff] }
 0x2c4   :  { %4937 = vmatprep.subr.bf16.mxu0 %v8019_v12  ;;  %4969 = vmatprep.subr.bf16.mxu1 %v8020_v23 }
 0x2c7   :  { %4939 = vmatpush1.bf16.msra.mxu0 %v8021_v11  ;;  %4971 = vmatpush1.bf16.msra.mxu1 %v8022_v10 }
 0x2c8   :  { %4941 = vmatprep.subr.bf16.mxu0 %v8023_v33  ;;  %4973 = vmatprep.subr.bf16.mxu1 %v8024_v38  ;;  %v8030_v38 = vld [vmem:[#allocation96_spill] sm:$0xff] }
 0x2cb   :  { %4943 = vmatpush1.bf16.msra.mxu0 %v8025_v56  ;;  %4975 = vmatpush1.bf16.msra.mxu1 %v8026_v47 }
 0x2cc   :  { %4977 = vmatprep.subr.bf16.mxu0 %v8027_v45  ;;  %5009 = vmatprep.subr.bf16.mxu1 %v8028_v21 }
 0x361   :  { %v1174_v49 = vpop.f32.mrb[6].mxu0  ;;  %v1245_v12 = vpop.f32.mrb[6].mxu1 }
 0x362   :  { %v6028_v23 = vadd.f32 %v1174_v49, %v8029_v60  ;;  %v1176_v55 = vpop.f32.mrb[7].mxu0  ;;  %v1247_v11 = vpop.f32.mrb[7].mxu1  ;;  %v6030_v56 = vadd.f32 %v1245_v12, %v8030_v38 }
 0x363   :  { %v6029_v10 = vadd.f32 %v1176_v55, %v6848_v62  ;;  %v6031_v47 = vadd.f32 %v1247_v11, %v6856_v14 }
 0x364   :  { %v4378_v54 = vmul.f32 -1.442695, %v6028_v23  ;;  %v4380_v50 = vmul.f32 -1.442695, %v6030_v56 }
 0x365   :  { %v4379_v33 = vmul.f32 -1.442695, %v6029_v10 }
 0x366   :  { %6129 = vpow2.f32 %v4378_v54 }
 0x367   :  { %6131 = vpow2.f32 %v4379_v33 }
 0x368   :  { %6133 = vtanh.f32 %v6031_v47 }
 0x369   :  { %6135 = vpow2.f32 %v4380_v50 }
 0x370   :  { %v6130_v45 = vpop.eup %6129 }
 0x371   :  { %v1263_v43 = vadd.f32 1.0, %v6130_v45  ;;  %v6132_v21 = vpop.eup %6131 }
 0x372   :  { %v1264_v49 = vadd.f32 1.0, %v6132_v21  ;;  %v6134_v60 = vpop.eup %6133 }
 0x373   :  { %6137 = vrcp.f32 %v1263_v43  ;;  %v6136_v37 = vpop.eup %6135 }
 0x374   :  { %6139 = vrcp.f32 %v1264_v49  ;;  %v1265_v54 = vadd.f32 1.0, %v6136_v37  ;;  %v4381_v37 = vld [vmem:[%s7675_s0 + $0x10] sm:$0xff] }
 0x376   :  { %6141 = vrcp.f32 %v1265_v54  ;;  %v8032_v54 = vld [vmem:[#allocation71_spill] sm:$0xff] }
 0x37d   :  { %v6138_v55 = vpop.eup %6137 }
 0x37e   :  { %v1274_v23 = vmul.f32 %v6138_v55, %v6134_v60  ;;  %v6140_v10 = vpop.eup %6139 }
 0x37f   :  { %v1273_v33 = vmul.f32 %v6140_v10, %v6860_v8 }
 0x380   :  { %v6142_v55 = vpop.eup %6141 }
 0x381   :  { %v1346_v12 = vpop.f32.mrb[8].mxu0  ;;  %v1417_v38 = vpop.f32.mrb[8].mxu1  ;;  %v6979_v11 = vadd.f32 %v1274_v23, %v1273_v33 }
 0x382   :  { %v1348_v56 = vpop.f32.mrb[9].mxu0  ;;  %v1419_v45 = vpop.f32.mrb[9].mxu1 }
 0x383   :  { %v1426_v47 = vcombine.low %v1346_v12, %v1348_v56  ;;  %v1427_v50 = vcombine.low %v1417_v38, %v1419_v45  ;;  %6143 = vtanh.f32 %v6979_v11  ;;  %v8031_v38 = vld [vmem:[#allocation70_spill] sm:$0xff]  ;;  %v8033_v12 = vld [vmem:[#allocation72_spill] sm:$0xff] }
 0x385   :  { %v1434_v43 = vrot.slane %v1426_v47, %v6763_v42  ;;  %v1441_v21 = vrot.slane %v1427_v50, %v6763_v42  ;;  %v8034_v47 = vld [vmem:[#allocation74_spill] sm:$0xff]  ;;  %v8035_v50 = vld [vmem:[#allocation75_spill] sm:$0xff] }
 0x387   :  { %v1442_v60 = vcombine.low %v1434_v43, %v1441_v21  ;;  %v8036_v43 = vld [vmem:[#allocation76_spill] sm:$0xff]  ;;  %v8037_v21 = vld [vmem:[#allocation77_spill] sm:$0xff] }
 0x389   :  { %v1444_v8 = vadd.f32 %v4381_v37, %v1442_v60  ;;  %v8038_v37 = vld [vmem:[#allocation79_spill] sm:$0xff]  ;;  %v8039_v60 = vld [vmem:[#allocation80_spill] sm:$0xff] }
 0x38b   :  { %v4382_v49 = vmul.f32 -1.442695, %v1444_v8  ;;  %v1452_v45 = vrot.slane %v1444_v8, 6  ;;  %v8042_v8 = vld [vmem:[#allocation83_spill] sm:$0xff] }
 0x38d   :  { %6145 = vpow2.f32 %v4382_v49  ;;  %v6144_v23 = vpop.eup %6143  ;;  %v8040_v49 = vld [vmem:[#allocation81_spill] sm:$0xff] }
 0x38e   :  { %v1277_v10 = vmul.f32 %v6144_v23, %v6142_v55  ;;  %v8041_v55 = vld [vmem:[#allocation82_spill] sm:$0xff]  ;;  %v8043_v23 = vld [vmem:[#allocation84_spill] sm:$0xff] }
 0x390   :  { %1530 = vmatmul.mubr.f32.vlgmr.msra.gmra.mrb[10].mxu0 %v1277_v10  ;;  %1601 = vmatmul.mubr.f32.vlgmr.msra.gmra.mrb[10].mxu1 %v1277_v10  ;;  %v8044_v10 = vld [vmem:[#allocation85_spill] sm:$0xff] }
 0x391   :  { %4979 = vmatpush1.bf16.msra.mxu0 %v7974_v48  ;;  %5011 = vmatpush1.bf16.msra.mxu1 %v7975_v5 }
 0x392   :  { %4981 = vmatprep.subr.bf16.mxu0 %v7976_v4  ;;  %5013 = vmatprep.subr.bf16.mxu1 %v7977_v59 }
 0x393   :  { %1671 = vmatprep.mubr.f32.mxu0 %v7920_v32  ;;  %1742 = vmatprep.mubr.f32.mxu1 %v7920_v32 }
 0x395   :  { %4983 = vmatpush1.bf16.msra.mxu0 %v8031_v38  ;;  %5015 = vmatpush1.bf16.msra.mxu1 %v8032_v54 }
 0x396   :  { %4985 = vmatprep.subr.bf16.mxu0 %v8033_v12  ;;  %5017 = vmatprep.subr.bf16.mxu1 %v7981_v41 }
 0x397   :  { %v6146_v33 = vpop.eup %6145 }
 0x398   :  { %v1448_v56 = vadd.f32 1.0, %v6146_v33 }
 0x399   :  { %4987 = vmatpush1.bf16.msra.mxu0 %v8034_v47  ;;  %5019 = vmatpush1.bf16.msra.mxu1 %v8035_v50 }
 0x39a   :  { %6147 = vrcp.f32 %v1448_v56  ;;  %4989 = vmatprep.subr.bf16.mxu0 %v8036_v43  ;;  %5021 = vmatprep.subr.bf16.mxu1 %v8037_v21 }
 0x39b   :  { %6149 = vtanh.f32 %v1452_v45  ;;  %v8045_v45 = vld [vmem:[#allocation86_spill] sm:$0xff] }
 0x39d   :  { %4991 = vmatpush1.bf16.msra.mxu0 %v7986_v61  ;;  %5023 = vmatpush1.bf16.msra.mxu1 %v8038_v37  ;;  %v8046_v61 = vld [vmem:[#allocation87_spill] sm:$0xff] }
 0x39e   :  { %4993 = vmatprep.subr.bf16.mxu0 %v8039_v60  ;;  %5025 = vmatprep.subr.bf16.mxu1 %v8040_v49  ;;  %v8047_v60 = vld [vmem:[#allocation88_spill] sm:$0xff] }
 0x3a1   :  { %4995 = vmatpush1.bf16.msra.mxu0 %v8041_v55  ;;  %5027 = vmatpush1.bf16.msra.mxu1 %v8042_v8 }
 0x3a2   :  { %4997 = vmatprep.subr.bf16.mxu0 %v8043_v23  ;;  %5029 = vmatprep.subr.bf16.mxu1 %v8044_v10 }
 0x3a4   :  { %v6148_v33 = vpop.eup %6147 }
 0x3a5   :  { %v1456_v56 = vrot.slane %v6148_v33, 2  ;;  %v6150_v21 = vpop.eup %6149  ;;  %4999 = vmatpush1.bf16.msra.mxu0 %v6726_v29  ;;  %5031 = vmatpush1.bf16.msra.mxu1 %v8045_v45 }
 0x3a6   :  { %v1459_v37 = vmul.f32 %v6150_v21, %v6148_v33  ;;  %5001 = vmatprep.subr.bf16.mxu0 %v8046_v61  ;;  %5033 = vmatprep.subr.bf16.mxu1 %v8047_v60 }
 0x3a7   :  { %v1458_v55 = vmul.f32 %v1456_v56, %v6895_v6  ;;  %v1462_v6 = vrot.slane %v6148_v33, 4  ;;  %v8049_v33 = vld [vmem:[#allocation29_spill] sm:$0xff]  ;;  %v8050_v56 = vld [vmem:[#allocation30_spill] sm:$0xff] }
 0x3a9   :  { %v7014_v49 = vadd.f32 %v1459_v37, %v1458_v55  ;;  %5003 = vmatpush1.bf16.msra.mxu0 %v7995_v58  ;;  %5035 = vmatpush1.bf16.msra.mxu1 %v7996_v46  ;;  %v8048_v55 = vld [vmem:[#allocation28_spill] sm:$0xff] }
 0x3aa   :  { %5005 = vmatprep.subr.bf16.mxu0 %v7997_v3  ;;  %5037 = vmatprep.subr.bf16.mxu1 %v7998_v24 }
 0x3ab   :  { %6151 = vtanh.f32 %v7014_v49 }
 0x3ad   :  { %5007 = vmatpush1.bf16.msra.mxu0 %v7999_v28  ;;  %5039 = vmatpush1.bf16.msra.mxu1 %v8000_v30 }
 0x3ae   :  { %5041 = vmatprep.subr.bf16.mxu0 %v8001_v15  ;;  %5073 = vmatprep.subr.bf16.mxu1 %v8002_v0 }
 0x3b5   :  { %v6152_v21 = vpop.eup %6151 }
 0x3b6   :  { %v1464_v37 = vmul.f32 %v6152_v21, %v1462_v6  ;;  %v8051_v6 = vld [vmem:[#allocation31_spill] sm:$0xff]  ;;  %v8052_v21 = vld [vmem:[#allocation32_spill] sm:$0xff] }
 0x3b8   :  { %1672 = vmatmul.mubr.f32.vlgmr.msra.gmra.mrb[10].mxu0 %v1464_v37  ;;  %1743 = vmatmul.mubr.f32.vlgmr.msra.gmra.mrb[10].mxu1 %v1464_v37 }
 0x3b9   :  { %5043 = vmatpush1.bf16.msra.mxu0 %v6466_v9  ;;  %5075 = vmatpush1.bf16.msra.mxu1 %v6469_v13 }
 0x3ba   :  { %5045 = vmatprep.subr.bf16.mxu0 %v6473_v17  ;;  %5077 = vmatprep.subr.bf16.mxu1 %v6475_v18 }
 0x3bb   :  { %1843 = vmatprep.mubr.f32.mxu0 %v7920_v32  ;;  %1914 = vmatprep.mubr.f32.mxu1 %v7920_v32 }
 0x3bd   :  { %5047 = vmatpush1.bf16.msra.mxu0 %v6478_v22  ;;  %5079 = vmatpush1.bf16.msra.mxu1 %v6482_v26 }
 0x3be   :  { %5049 = vmatprep.subr.bf16.mxu0 %v6484_v27  ;;  %5081 = vmatprep.subr.bf16.mxu1 %v6486_v31 }
 0x3c1   :  { %5051 = vmatpush1.bf16.msra.mxu0 %v6489_v35  ;;  %5083 = vmatpush1.bf16.msra.mxu1 %v6493_v39 }
 0x3c2   :  { %5053 = vmatprep.subr.bf16.mxu0 %v6495_v40  ;;  %5085 = vmatprep.subr.bf16.mxu1 %v6498_v44 }
 0x3c5   :  { %5055 = vmatpush1.bf16.msra.mxu0 %v6501_v51  ;;  %5087 = vmatpush1.bf16.msra.mxu1 %v6505_v52 }
 0x3c6   :  { %5057 = vmatprep.subr.bf16.mxu0 %v6507_v53  ;;  %5089 = vmatprep.subr.bf16.mxu1 %v6510_v57 }
 0x3c9   :  { %5059 = vmatpush1.bf16.msra.mxu0 %v6513_v63  ;;  %5091 = vmatpush1.bf16.msra.mxu1 %v6517_v1 }
 0x3ca   :  { %5061 = vmatprep.subr.bf16.mxu0 %v6519_v2  ;;  %5093 = vmatprep.subr.bf16.mxu1 %v6522_v7 }
 0x3cd   :  { %5063 = vmatpush1.bf16.msra.mxu0 %v6525_v16  ;;  %5095 = vmatpush1.bf16.msra.mxu1 %v6529_v19  ;;  %v8053_v16 = vld [vmem:[#allocation33_spill] sm:$0xff]  ;;  %v8086_v19 = vld [vmem:[#allocation95_spill] sm:$0xff] }
 0x3ce   :  { %5065 = vmatprep.subr.bf16.mxu0 %v6531_v20  ;;  %5097 = vmatprep.subr.bf16.mxu1 %v6534_v25  ;;  %v8054_v20 = vld [vmem:[#allocation34_spill] sm:$0xff]  ;;  %v8055_v25 = vld [vmem:[#allocation35_spill] sm:$0xff] }
 0x3d1   :  { %5067 = vmatpush1.bf16.msra.mxu0 %v6537_v34  ;;  %5099 = vmatpush1.bf16.msra.mxu1 %v6541_v36  ;;  %v8056_v34 = vld [vmem:[#allocation36_spill] sm:$0xff]  ;;  %v8057_v36 = vld [vmem:[#allocation37_spill] sm:$0xff] }
 0x3d2   :  { %5069 = vmatprep.subr.bf16.mxu0 %v8048_v55  ;;  %5101 = vmatprep.subr.bf16.mxu1 %v8049_v33  ;;  %v8067_v33 = vld [vmem:[#allocation47_spill] sm:$0xff]  ;;  %v8068_v55 = vld [vmem:[#allocation48_spill] sm:$0xff] }
 0x3d5   :  { %5071 = vmatpush1.bf16.msra.mxu0 %v8050_v56  ;;  %5103 = vmatpush1.bf16.msra.mxu1 %v8051_v6  ;;  %v8058_v56 = vld [vmem:[#allocation38_spill] sm:$0xff]  ;;  %v8059_v6 = vld [vmem:[#allocation39_spill] sm:$0xff] }
 0x3d6   :  { %5105 = vmatprep.subr.bf16.mxu0 %v8052_v21  ;;  %5137 = vmatprep.subr.bf16.mxu1 %v8053_v16  ;;  %v8060_v21 = vld [vmem:[#allocation40_spill] sm:$0xff]  ;;  %v8061_v16 = vld [vmem:[#allocation41_spill] sm:$0xff] }
 0x3d8   :  { %1844 = vmatmul.mubr.f32.vlgmr.msra.gmra.mrb[12].mxu0 %v1464_v37  ;;  %1915 = vmatmul.mubr.f32.vlgmr.msra.gmra.mrb[12].mxu1 %v1464_v37  ;;  %v8062_v37 = vld [vmem:[#allocation42_spill] sm:$0xff] }
 0x3d9   :  { %5107 = vmatpush1.bf16.msra.mxu0 %v8054_v20  ;;  %5139 = vmatpush1.bf16.msra.mxu1 %v8055_v25  ;;  %v8063_v20 = vld [vmem:[#allocation43_spill] sm:$0xff]  ;;  %v8064_v25 = vld [vmem:[#allocation44_spill] sm:$0xff] }
 0x3da   :  { %5109 = vmatprep.subr.bf16.mxu0 %v8056_v34  ;;  %5141 = vmatprep.subr.bf16.mxu1 %v8057_v36  ;;  %v8065_v34 = vld [vmem:[#allocation45_spill] sm:$0xff]  ;;  %v8066_v36 = vld [vmem:[#allocation46_spill] sm:$0xff] }
 0x3db   :  { %2028 = vmatprep.mubr.f32.mxu0 %v7920_v32  ;;  %2099 = vmatprep.mubr.f32.mxu1 %v7920_v32 }
 0x3dd   :  { %5111 = vmatpush1.bf16.msra.mxu0 %v8058_v56  ;;  %5143 = vmatpush1.bf16.msra.mxu1 %v8059_v6  ;;  %v8069_v56 = vld [vmem:[#allocation49_spill] sm:$0xff]  ;;  %v8070_v6 = vld [vmem:[#allocation50_spill] sm:$0xff] }
 0x3de   :  { %5113 = vmatprep.subr.bf16.mxu0 %v8060_v21  ;;  %5145 = vmatprep.subr.bf16.mxu1 %v8061_v16  ;;  %v8071_v21 = vld [vmem:[#allocation51_spill] sm:$0xff]  ;;  %v8072_v16 = vld [vmem:[#allocation52_spill] sm:$0xff] }
 0x3e1   :  { %5115 = vmatpush1.bf16.msra.mxu0 %v8062_v37  ;;  %5147 = vmatpush1.bf16.msra.mxu1 %v8063_v20  ;;  %v8073_v37 = vld [vmem:[#allocation53_spill] sm:$0xff]  ;;  %v8074_v20 = vld [vmem:[#allocation54_spill] sm:$0xff] }
 0x3e2   :  { %5117 = vmatprep.subr.bf16.mxu0 %v8064_v25  ;;  %5149 = vmatprep.subr.bf16.mxu1 %v8065_v34  ;;  %v8075_v25 = vld [vmem:[#allocation55_spill] sm:$0xff]  ;;  %v8076_v34 = vld [vmem:[#allocation56_spill] sm:$0xff] }
 0x3e5   :  { %5119 = vmatpush1.bf16.msra.mxu0 %v8066_v36  ;;  %5151 = vmatpush1.bf16.msra.mxu1 %v8067_v33  ;;  %v8077_v36 = vld [vmem:[#allocation57_spill] sm:$0xff]  ;;  %v8078_v33 = vld [vmem:[#allocation58_spill] sm:$0xff] }
 0x3e6   :  { %5121 = vmatprep.subr.bf16.mxu0 %v8068_v55  ;;  %5153 = vmatprep.subr.bf16.mxu1 %v8069_v56  ;;  %v8079_v55 = vld [vmem:[#allocation59_spill] sm:$0xff]  ;;  %v8080_v56 = vld [vmem:[#allocation60_spill] sm:$0xff] }
 0x3e9   :  { %5123 = vmatpush1.bf16.msra.mxu0 %v8070_v6  ;;  %5155 = vmatpush1.bf16.msra.mxu1 %v8071_v21  ;;  %v8081_v6 = vld [vmem:[#allocation61_spill] sm:$0xff]  ;;  %v8082_v21 = vld [vmem:[#allocation62_spill] sm:$0xff] }
 0x3ea   :  { %5125 = vmatprep.subr.bf16.mxu0 %v8072_v16  ;;  %5157 = vmatprep.subr.bf16.mxu1 %v8073_v37  ;;  %v8083_v16 = vld [vmem:[#allocation63_spill] sm:$0xff]  ;;  %v8084_v37 = vld [vmem:[#allocation64_spill] sm:$0xff] }
 0x3ed   :  { %5127 = vmatpush1.bf16.msra.mxu0 %v8074_v20  ;;  %5159 = vmatpush1.bf16.msra.mxu1 %v8075_v25  ;;  %v8085_v20 = vld [vmem:[#allocation65_spill] sm:$0xff] }
 0x3ee   :  { %5129 = vmatprep.subr.bf16.mxu0 %v8076_v34  ;;  %5161 = vmatprep.subr.bf16.mxu1 %v8077_v36 }
 0x3f1   :  { %5131 = vmatpush1.bf16.msra.mxu0 %v8078_v33  ;;  %5163 = vmatpush1.bf16.msra.mxu1 %v8079_v55 }
 0x3f2   :  { %5133 = vmatprep.subr.bf16.mxu0 %v8080_v56  ;;  %5165 = vmatprep.subr.bf16.mxu1 %v8081_v6  ;;  %v8087_v6 = vld [vmem:[#allocation96_spill] sm:$0xff] }
 0x3f5   :  { %5135 = vmatpush1.bf16.msra.mxu0 %v8082_v21  ;;  %5167 = vmatpush1.bf16.msra.mxu1 %v8083_v16 }
 0x3f6   :  { %5169 = vmatprep.subr.bf16.mxu0 %v8084_v37  ;;  %5201 = vmatprep.subr.bf16.mxu1 %v8085_v20 }
 0x48b   :  { %v1673_v25 = vpop.f32.mrb[10].mxu0  ;;  %v1744_v34 = vpop.f32.mrb[10].mxu1 }
 0x48c   :  { %v6032_v36 = vadd.f32 %v1673_v25, %v8086_v19  ;;  %v1675_v7 = vpop.f32.mrb[11].mxu0  ;;  %v1746_v33 = vpop.f32.mrb[11].mxu1  ;;  %v6034_v21 = vadd.f32 %v1744_v34, %v8087_v6 }
 0x48d   :  { %v6033_v55 = vadd.f32 %v1675_v7, %v6848_v62  ;;  %v6035_v16 = vadd.f32 %v1746_v33, %v6856_v14 }
 0x48e   :  { %v4383_v2 = vmul.f32 -1.442695, %v6032_v36  ;;  %v4385_v1 = vmul.f32 -1.442695, %v6034_v21 }
 0x48f   :  { %v4384_v56 = vmul.f32 -1.442695, %v6033_v55 }
 0x490   :  { %6153 = vpow2.f32 %v4383_v2 }
 0x491   :  { %6155 = vpow2.f32 %v4384_v56 }
 0x492   :  { %6157 = vtanh.f32 %v6035_v16 }
 0x493   :  { %6159 = vpow2.f32 %v4385_v1 }
 0x49a   :  { %v6154_v37 = vpop.eup %6153 }
 0x49b   :  { %v1762_v63 = vadd.f32 1.0, %v6154_v37  ;;  %v6156_v20 = vpop.eup %6155 }
 0x49c   :  { %v1763_v25 = vadd.f32 1.0, %v6156_v20  ;;  %v6158_v19 = vpop.eup %6157 }
 0x49d   :  { %6161 = vrcp.f32 %v1762_v63  ;;  %v6160_v57 = vpop.eup %6159 }
 0x49e   :  { %6163 = vrcp.f32 %v1763_v25  ;;  %v1764_v2 = vadd.f32 1.0, %v6160_v57  ;;  %v4386_v57 = vld [vmem:[%s7675_s0 + $0x18] sm:$0xff] }
 0x4a0   :  { %6165 = vrcp.f32 %v1764_v2 }
 0x4a7   :  { %v6162_v7 = vpop.eup %6161 }
 0x4a8   :  { %v1773_v36 = vmul.f32 %v6162_v7, %v6158_v19  ;;  %v6164_v55 = vpop.eup %6163 }
 0x4a9   :  { %v1772_v56 = vmul.f32 %v6164_v55, %v6979_v11 }
 0x4aa   :  { %v6166_v7 = vpop.eup %6165 }
 0x4ab   :  { %v1845_v34 = vpop.f32.mrb[12].mxu0  ;;  %v1916_v6 = vpop.f32.mrb[12].mxu1  ;;  %v7098_v33 = vadd.f32 %v1773_v36, %v1772_v56 }
 0x4ac   :  { %v1847_v21 = vpop.f32.mrb[13].mxu0  ;;  %v1918_v37 = vpop.f32.mrb[13].mxu1 }
 0x4ad   :  { %v1925_v16 = vcombine.low %v1845_v34, %v1847_v21  ;;  %v1926_v1 = vcombine.low %v1916_v6, %v1918_v37  ;;  %6167 = vtanh.f32 %v7098_v33  ;;  %v8088_v34 = vld [vmem:[#allocation77_spill] sm:$0xff]  ;;  %v8089_v21 = vld [vmem:[#allocation78_spill] sm:$0xff]  ;;  %v8090_v37 = vld [vmem:[#allocation79_spill] sm:$0xff] }
 0x4af   :  { %v1933_v63 = vrot.slane %v1925_v16, %v6763_v42  ;;  %v1940_v20 = vrot.slane %v1926_v1, %v6763_v42  ;;  %v8091_v16 = vld [vmem:[#allocation80_spill] sm:$0xff]  ;;  %v8092_v1 = vld [vmem:[#allocation81_spill] sm:$0xff] }
 0x4b1   :  { %v1941_v19 = vcombine.low %v1933_v63, %v1940_v20  ;;  %v8093_v63 = vld [vmem:[#allocation82_spill] sm:$0xff] }
 0x4b3   :  { %v1943_v11 = vadd.f32 %v4386_v57, %v1941_v19 }
 0x4b5   :  { %v4387_v25 = vmul.f32 -1.442695, %v1943_v11  ;;  %v1951_v56 = vrot.slane %v1943_v11, 6 }
 0x4b7   :  { %6169 = vpow2.f32 %v4387_v25  ;;  %v6168_v36 = vpop.eup %6167 }
 0x4b8   :  { %v1776_v55 = vmul.f32 %v6168_v36, %v6166_v7 }
 0x4ba   :  { %2029 = vmatmul.mubr.f32.vlgmr.msra.gmra.mrb[14].mxu0 %v1776_v55  ;;  %2100 = vmatmul.mubr.f32.vlgmr.msra.gmra.mrb[14].mxu1 %v1776_v55 }
 0x4bb   :  { %5171 = vmatpush1.bf16.msra.mxu0 %v7974_v48  ;;  %5203 = vmatpush1.bf16.msra.mxu1 %v7975_v5 }
 0x4bc   :  { %5173 = vmatprep.subr.bf16.mxu0 %v7976_v4  ;;  %5205 = vmatprep.subr.bf16.mxu1 %v7977_v59 }
 0x4bd   :  { %2170 = vmatprep.mubr.f32.mxu0 %v7920_v32  ;;  %2241 = vmatprep.mubr.f32.mxu1 %v7920_v32 }
 0x4bf   :  { %5175 = vmatpush1.bf16.msra.mxu0 %v8031_v38  ;;  %5207 = vmatpush1.bf16.msra.mxu1 %v8032_v54 }
 0x4c0   :  { %5177 = vmatprep.subr.bf16.mxu0 %v8033_v12  ;;  %5209 = vmatprep.subr.bf16.mxu1 %v7981_v41 }
 0x4c1   :  { %v6170_v6 = vpop.eup %6169 }
 0x4c2   :  { %v1947_v2 = vadd.f32 1.0, %v6170_v6  ;;  %v8094_v6 = vld [vmem:[#allocation17_spill] sm:$0xff] }
 0x4c3   :  { %5179 = vmatpush1.bf16.msra.mxu0 %v8034_v47  ;;  %5211 = vmatpush1.bf16.msra.mxu1 %v8035_v50 }
 0x4c4   :  { %6171 = vrcp.f32 %v1947_v2  ;;  %5181 = vmatprep.subr.bf16.mxu0 %v8036_v43  ;;  %5213 = vmatprep.subr.bf16.mxu1 %v8088_v34  ;;  %v8095_v2 = vld [vmem:[#allocation18_spill] sm:$0xff] }
 0x4c5   :  { %6173 = vtanh.f32 %v1951_v56  ;;  %v8096_v56 = vld [vmem:[#allocation19_spill] sm:$0xff] }
 0x4c7   :  { %5183 = vmatpush1.bf16.msra.mxu0 %v8089_v21  ;;  %5215 = vmatpush1.bf16.msra.mxu1 %v8090_v37 }
 0x4c8   :  { %5185 = vmatprep.subr.bf16.mxu0 %v8091_v16  ;;  %5217 = vmatprep.subr.bf16.mxu1 %v8092_v1 }
 0x4cb   :  { %5187 = vmatpush1.bf16.msra.mxu0 %v8093_v63  ;;  %5219 = vmatpush1.bf16.msra.mxu1 %v8042_v8 }
 0x4cc   :  { %5189 = vmatprep.subr.bf16.mxu0 %v8043_v23  ;;  %5221 = vmatprep.subr.bf16.mxu1 %v8044_v10 }
 0x4ce   :  { %v6172_v20 = vpop.eup %6171 }
 0x4cf   :  { %v1955_v57 = vrot.slane %v6172_v20, 2  ;;  %v6174_v19 = vpop.eup %6173  ;;  %5191 = vmatpush1.bf16.msra.mxu0 %v6726_v29  ;;  %5223 = vmatpush1.bf16.msra.mxu1 %v8045_v45 }
 0x4d0   :  { %v1958_v11 = vmul.f32 %v6174_v19, %v6172_v20  ;;  %5193 = vmatprep.subr.bf16.mxu0 %v8046_v61  ;;  %5225 = vmatprep.subr.bf16.mxu1 %v8047_v60  ;;  %v8099_v19 = vld [vmem:[#allocation22_spill] sm:$0xff] }
 0x4d1   :  { %v1957_v25 = vmul.f32 %v1955_v57, %v7014_v49  ;;  %v1961_v49 = vrot.slane %v6172_v20, 4  ;;  %v8097_v20 = vld [vmem:[#allocation20_spill] sm:$0xff]  ;;  %v8098_v57 = vld [vmem:[#allocation21_spill] sm:$0xff] }
 0x4d3   :  { %v7133_v7 = vadd.f32 %v1958_v11, %v1957_v25  ;;  %5195 = vmatpush1.bf16.msra.mxu0 %v7995_v58  ;;  %5227 = vmatpush1.bf16.msra.mxu1 %v7996_v46  ;;  %v8100_v11 = vld [vmem:[#allocation23_spill] sm:$0xff]  ;;  %v8101_v25 = vld [vmem:[#allocation24_spill] sm:$0xff] }
 0x4d4   :  { %5197 = vmatprep.subr.bf16.mxu0 %v7997_v3  ;;  %5229 = vmatprep.subr.bf16.mxu1 %v7998_v24 }
 0x4d5   :  { %6175 = vtanh.f32 %v7133_v7 }
 0x4d7   :  { %5199 = vmatpush1.bf16.msra.mxu0 %v7999_v28  ;;  %5231 = vmatpush1.bf16.msra.mxu1 %v8000_v30 }
 0x4d8   :  { %5233 = vmatprep.subr.bf16.mxu0 %v8001_v15  ;;  %5265 = vmatprep.subr.bf16.mxu1 %v8002_v0 }
 0x4df   :  { %v6176_v36 = vpop.eup %6175 }
 0x4e0   :  { %v1963_v55 = vmul.f32 %v6176_v36, %v1961_v49  ;;  %v8102_v49 = vld [vmem:[#allocation25_spill] sm:$0xff]  ;;  %v8103_v36 = vld [vmem:[#allocation26_spill] sm:$0xff] }
 0x4e2   :  { %2171 = vmatmul.mubr.f32.vlgmr.msra.gmra.mrb[14].mxu0 %v1963_v55  ;;  %2242 = vmatmul.mubr.f32.vlgmr.msra.gmra.mrb[14].mxu1 %v1963_v55 }
 0x4e3   :  { %5235 = vmatpush1.bf16.msra.mxu0 %v6466_v9  ;;  %5267 = vmatpush1.bf16.msra.mxu1 %v6469_v13 }
 0x4e4   :  { %5237 = vmatprep.subr.bf16.mxu0 %v6473_v17  ;;  %5269 = vmatprep.subr.bf16.mxu1 %v6475_v18 }
 0x4e5   :  { %2342 = vmatprep.mubr.f32.mxu0 %v7920_v32  ;;  %2413 = vmatprep.mubr.f32.mxu1 %v7920_v32 }
 0x4e7   :  { %5239 = vmatpush1.bf16.msra.mxu0 %v6478_v22  ;;  %5271 = vmatpush1.bf16.msra.mxu1 %v6482_v26 }
 0x4e8   :  { %5241 = vmatprep.subr.bf16.mxu0 %v6484_v27  ;;  %5273 = vmatprep.subr.bf16.mxu1 %v6486_v31 }
 0x4eb   :  { %5243 = vmatpush1.bf16.msra.mxu0 %v6489_v35  ;;  %5275 = vmatpush1.bf16.msra.mxu1 %v6493_v39 }
 0x4ec   :  { %5245 = vmatprep.subr.bf16.mxu0 %v6495_v40  ;;  %5277 = vmatprep.subr.bf16.mxu1 %v6498_v44 }
 0x4ef   :  { %5247 = vmatpush1.bf16.msra.mxu0 %v6501_v51  ;;  %5279 = vmatpush1.bf16.msra.mxu1 %v6505_v52 }
 0x4f0   :  { %5249 = vmatprep.subr.bf16.mxu0 %v6507_v53  ;;  %5281 = vmatprep.subr.bf16.mxu1 %v8094_v6  ;;  %v8104_v53 = vld [vmem:[#allocation27_spill] sm:$0xff]  ;;  %v8105_v6 = vld [vmem:[#allocation28_spill] sm:$0xff] }
 0x4f3   :  { %5251 = vmatpush1.bf16.msra.mxu0 %v8095_v2  ;;  %5283 = vmatpush1.bf16.msra.mxu1 %v8096_v56  ;;  %v8106_v2 = vld [vmem:[#allocation29_spill] sm:$0xff]  ;;  %v8107_v56 = vld [vmem:[#allocation30_spill] sm:$0xff] }
 0x4f4   :  { %5253 = vmatprep.subr.bf16.mxu0 %v8097_v20  ;;  %5285 = vmatprep.subr.bf16.mxu1 %v8098_v57  ;;  %v8108_v20 = vld [vmem:[#allocation31_spill] sm:$0xff]  ;;  %v8109_v57 = vld [vmem:[#allocation32_spill] sm:$0xff] }
 0x4f7   :  { %5255 = vmatpush1.bf16.msra.mxu0 %v8099_v19  ;;  %5287 = vmatpush1.bf16.msra.mxu1 %v8100_v11  ;;  %v8110_v19 = vld [vmem:[#allocation33_spill] sm:$0xff]  ;;  %v8143_v11 = vld [vmem:[#allocation95_spill] sm:$0xff] }
 0x4f8   :  { %5257 = vmatprep.subr.bf16.mxu0 %v8101_v25  ;;  %5289 = vmatprep.subr.bf16.mxu1 %v8102_v49  ;;  %v8111_v25 = vld [vmem:[#allocation34_spill] sm:$0xff]  ;;  %v8112_v49 = vld [vmem:[#allocation35_spill] sm:$0xff] }
 0x4fb   :  { %5259 = vmatpush1.bf16.msra.mxu0 %v8103_v36  ;;  %5291 = vmatpush1.bf16.msra.mxu1 %v8104_v53  ;;  %v8113_v36 = vld [vmem:[#allocation36_spill] sm:$0xff]  ;;  %v8114_v53 = vld [vmem:[#allocation37_spill] sm:$0xff] }
 0x4fc   :  { %5261 = vmatprep.subr.bf16.mxu0 %v8105_v6  ;;  %5293 = vmatprep.subr.bf16.mxu1 %v8106_v2  ;;  %v8124_v2 = vld [vmem:[#allocation47_spill] sm:$0xff]  ;;  %v8125_v6 = vld [vmem:[#allocation48_spill] sm:$0xff] }
 0x4ff   :  { %5263 = vmatpush1.bf16.msra.mxu0 %v8107_v56  ;;  %5295 = vmatpush1.bf16.msra.mxu1 %v8108_v20  ;;  %v8115_v56 = vld [vmem:[#allocation38_spill] sm:$0xff]  ;;  %v8116_v20 = vld [vmem:[#allocation39_spill] sm:$0xff] }
 0x500   :  { %5297 = vmatprep.subr.bf16.mxu0 %v8109_v57  ;;  %5329 = vmatprep.subr.bf16.mxu1 %v8110_v19  ;;  %v8117_v57 = vld [vmem:[#allocation40_spill] sm:$0xff]  ;;  %v8118_v19 = vld [vmem:[#allocation41_spill] sm:$0xff] }
 0x502   :  { %2343 = vmatmul.mubr.f32.vlgmr.msra.gmra.mrb[16].mxu0 %v1963_v55  ;;  %2414 = vmatmul.mubr.f32.vlgmr.msra.gmra.mrb[16].mxu1 %v1963_v55  ;;  %v8119_v55 = vld [vmem:[#allocation42_spill] sm:$0xff] }
 0x503   :  { %5299 = vmatpush1.bf16.msra.mxu0 %v8111_v25  ;;  %5331 = vmatpush1.bf16.msra.mxu1 %v8112_v49  ;;  %v8120_v25 = vld [vmem:[#allocation43_spill] sm:$0xff]  ;;  %v8121_v49 = vld [vmem:[#allocation44_spill] sm:$0xff] }
 0x504   :  { %5301 = vmatprep.subr.bf16.mxu0 %v8113_v36  ;;  %5333 = vmatprep.subr.bf16.mxu1 %v8114_v53  ;;  %v8122_v36 = vld [vmem:[#allocation45_spill] sm:$0xff]  ;;  %v8123_v53 = vld [vmem:[#allocation46_spill] sm:$0xff] }
 0x505   :  { %2527 = vmatprep.mubr.f32.mxu0 %v7920_v32  ;;  %2598 = vmatprep.mubr.f32.mxu1 %v7920_v32 }
 0x507   :  { %5303 = vmatpush1.bf16.msra.mxu0 %v8115_v56  ;;  %5335 = vmatpush1.bf16.msra.mxu1 %v8116_v20  ;;  %v8126_v56 = vld [vmem:[#allocation49_spill] sm:$0xff]  ;;  %v8127_v20 = vld [vmem:[#allocation50_spill] sm:$0xff] }
 0x508   :  { %5305 = vmatprep.subr.bf16.mxu0 %v8117_v57  ;;  %5337 = vmatprep.subr.bf16.mxu1 %v8118_v19  ;;  %v8128_v57 = vld [vmem:[#allocation51_spill] sm:$0xff]  ;;  %v8129_v19 = vld [vmem:[#allocation52_spill] sm:$0xff] }
 0x50b   :  { %5307 = vmatpush1.bf16.msra.mxu0 %v8119_v55  ;;  %5339 = vmatpush1.bf16.msra.mxu1 %v8120_v25  ;;  %v8130_v55 = vld [vmem:[#allocation53_spill] sm:$0xff]  ;;  %v8131_v25 = vld [vmem:[#allocation54_spill] sm:$0xff] }
 0x50c   :  { %5309 = vmatprep.subr.bf16.mxu0 %v8121_v49  ;;  %5341 = vmatprep.subr.bf16.mxu1 %v8122_v36  ;;  %v8132_v49 = vld [vmem:[#allocation55_spill] sm:$0xff]  ;;  %v8133_v36 = vld [vmem:[#allocation56_spill] sm:$0xff] }
 0x50f   :  { %5311 = vmatpush1.bf16.msra.mxu0 %v8123_v53  ;;  %5343 = vmatpush1.bf16.msra.mxu1 %v8124_v2  ;;  %v8134_v53 = vld [vmem:[#allocation57_spill] sm:$0xff]  ;;  %v8135_v2 = vld [vmem:[#allocation58_spill] sm:$0xff] }
 0x510   :  { %5313 = vmatprep.subr.bf16.mxu0 %v8125_v6  ;;  %5345 = vmatprep.subr.bf16.mxu1 %v8126_v56  ;;  %v8136_v6 = vld [vmem:[#allocation59_spill] sm:$0xff]  ;;  %v8137_v56 = vld [vmem:[#allocation60_spill] sm:$0xff] }
 0x513   :  { %5315 = vmatpush1.bf16.msra.mxu0 %v8127_v20  ;;  %5347 = vmatpush1.bf16.msra.mxu1 %v8128_v57  ;;  %v8138_v20 = vld [vmem:[#allocation61_spill] sm:$0xff]  ;;  %v8139_v57 = vld [vmem:[#allocation62_spill] sm:$0xff] }
 0x514   :  { %5317 = vmatprep.subr.bf16.mxu0 %v8129_v19  ;;  %5349 = vmatprep.subr.bf16.mxu1 %v8130_v55  ;;  %v8140_v19 = vld [vmem:[#allocation63_spill] sm:$0xff]  ;;  %v8141_v55 = vld [vmem:[#allocation64_spill] sm:$0xff] }
 0x517   :  { %5319 = vmatpush1.bf16.msra.mxu0 %v8131_v25  ;;  %5351 = vmatpush1.bf16.msra.mxu1 %v8132_v49  ;;  %v8142_v25 = vld [vmem:[#allocation65_spill] sm:$0xff] }
 0x518   :  { %5321 = vmatprep.subr.bf16.mxu0 %v8133_v36  ;;  %5353 = vmatprep.subr.bf16.mxu1 %v8134_v53 }
 0x51b   :  { %5323 = vmatpush1.bf16.msra.mxu0 %v8135_v2  ;;  %5355 = vmatpush1.bf16.msra.mxu1 %v8136_v6 }
 0x51c   :  { %5325 = vmatprep.subr.bf16.mxu0 %v8137_v56  ;;  %5357 = vmatprep.subr.bf16.mxu1 %v8138_v20  ;;  %v8144_v20 = vld [vmem:[#allocation96_spill] sm:$0xff] }
 0x51f   :  { %5327 = vmatpush1.bf16.msra.mxu0 %v8139_v57  ;;  %5359 = vmatpush1.bf16.msra.mxu1 %v8140_v19 }
 0x520   :  { %5361 = vmatprep.subr.bf16.mxu0 %v8141_v55  ;;  %5393 = vmatprep.subr.bf16.mxu1 %v8142_v25 }
 0x5b5   :  { %v2172_v49 = vpop.f32.mrb[14].mxu0  ;;  %v2243_v36 = vpop.f32.mrb[14].mxu1 }
 0x5b6   :  { %v6036_v53 = vadd.f32 %v2172_v49, %v8143_v11  ;;  %v2174_v52 = vpop.f32.mrb[15].mxu0  ;;  %v2245_v2 = vpop.f32.mrb[15].mxu1  ;;  %v6038_v57 = vadd.f32 %v2243_v36, %v8144_v20 }
 0x5b7   :  { %v6037_v6 = vadd.f32 %v2174_v52, %v6848_v62  ;;  %v6039_v19 = vadd.f32 %v2245_v2, %v6856_v14 }
 0x5b8   :  { %v4388_v51 = vmul.f32 -1.442695, %v6036_v53  ;;  %v4390_v44 = vmul.f32 -1.442695, %v6038_v57 }
 0x5b9   :  { %v4389_v56 = vmul.f32 -1.442695, %v6037_v6 }
 0x5ba   :  { %6177 = vpow2.f32 %v4388_v51 }
 0x5bb   :  { %6179 = vpow2.f32 %v4389_v56 }
 0x5bc   :  { %6181 = vtanh.f32 %v6039_v19 }
 0x5bd   :  { %6183 = vpow2.f32 %v4390_v44 }
 0x5c4   :  { %v6178_v55 = vpop.eup %6177 }
 0x5c5   :  { %v2261_v40 = vadd.f32 1.0, %v6178_v55  ;;  %v6180_v25 = vpop.eup %6179 }
 0x5c6   :  { %v2262_v49 = vadd.f32 1.0, %v6180_v25  ;;  %v6182_v11 = vpop.eup %6181 }
 0x5c7   :  { %6185 = vrcp.f32 %v2261_v40  ;;  %v6184_v39 = vpop.eup %6183 }
 0x5c8   :  { %6187 = vrcp.f32 %v2262_v49  ;;  %v2263_v51 = vadd.f32 1.0, %v6184_v39  ;;  %v4391_v39 = vld [vmem:[%s7675_s0 + $0x20] sm:$0xff] }
 0x5ca   :  { %6189 = vrcp.f32 %v2263_v51 }
 0x5d1   :  { %v6186_v52 = vpop.eup %6185 }
 0x5d2   :  { %v2272_v53 = vmul.f32 %v6186_v52, %v6182_v11  ;;  %v6188_v6 = vpop.eup %6187 }
 0x5d3   :  { %v2271_v56 = vmul.f32 %v6188_v6, %v7098_v33 }
 0x5d4   :  { %v6190_v52 = vpop.eup %6189 }
 0x5d5   :  { %v2344_v36 = vpop.f32.mrb[16].mxu0  ;;  %v2415_v20 = vpop.f32.mrb[16].mxu1  ;;  %v7217_v2 = vadd.f32 %v2272_v53, %v2271_v56 }
 0x5d6   :  { %v2346_v57 = vpop.f32.mrb[17].mxu0  ;;  %v2417_v55 = vpop.f32.mrb[17].mxu1 }
 0x5d7   :  { %v2424_v19 = vcombine.low %v2344_v36, %v2346_v57  ;;  %v2425_v44 = vcombine.low %v2415_v20, %v2417_v55  ;;  %6191 = vtanh.f32 %v7217_v2 }
 0x5d9   :  { %v2432_v40 = vrot.slane %v2424_v19, %v6763_v42  ;;  %v2439_v25 = vrot.slane %v2425_v44, %v6763_v42 }
 0x5db   :  { %v2440_v33 = vcombine.low %v2432_v40, %v2439_v25 }
 0x5dd   :  { %v2442_v11 = vadd.f32 %v4391_v39, %v2440_v33  ;;  %v8145_v33 = vld [vmem:[#allocation11_spill] sm:$0xff] }
 0x5df   :  { %v4392_v49 = vmul.f32 -1.442695, %v2442_v11  ;;  %v2450_v56 = vrot.slane %v2442_v11, 6  ;;  %v8146_v11 = vld [vmem:[#allocation12_spill] sm:$0xff] }
 0x5e1   :  { %6193 = vpow2.f32 %v4392_v49  ;;  %v6192_v53 = vpop.eup %6191  ;;  %v8147_v49 = vld [vmem:[#allocation13_spill] sm:$0xff] }
 0x5e2   :  { %v2275_v6 = vmul.f32 %v6192_v53, %v6190_v52  ;;  %v8148_v52 = vld [vmem:[#allocation14_spill] sm:$0xff]  ;;  %v8149_v53 = vld [vmem:[#allocation15_spill] sm:$0xff] }
 0x5e4   :  { %2528 = vmatmul.mubr.f32.vlgmr.msra.gmra.mrb[18].mxu0 %v2275_v6  ;;  %2599 = vmatmul.mubr.f32.vlgmr.msra.gmra.mrb[18].mxu1 %v2275_v6  ;;  %v8150_v6 = vld [vmem:[#allocation16_spill] sm:$0xff] }
 0x5e5   :  { %5363 = vmatpush1.bf16.msra.mxu0 %v7974_v48  ;;  %5395 = vmatpush1.bf16.msra.mxu1 %v7975_v5 }
 0x5e6   :  { %5365 = vmatprep.subr.bf16.mxu0 %v7976_v4  ;;  %5397 = vmatprep.subr.bf16.mxu1 %v7977_v59 }
 0x5e7   :  { %2669 = vmatprep.mubr.f32.mxu0 %v7920_v32  ;;  %2740 = vmatprep.mubr.f32.mxu1 %v7920_v32 }
 0x5e9   :  { %5367 = vmatpush1.bf16.msra.mxu0 %v8031_v38  ;;  %5399 = vmatpush1.bf16.msra.mxu1 %v8032_v54 }
 0x5ea   :  { %5369 = vmatprep.subr.bf16.mxu0 %v8033_v12  ;;  %5401 = vmatprep.subr.bf16.mxu1 %v7981_v41 }
 0x5eb   :  { %v6194_v20 = vpop.eup %6193 }
 0x5ec   :  { %v2446_v51 = vadd.f32 1.0, %v6194_v20  ;;  %v8151_v20 = vld [vmem:[#allocation17_spill] sm:$0xff] }
 0x5ed   :  { %5371 = vmatpush1.bf16.msra.mxu0 %v8034_v47  ;;  %5403 = vmatpush1.bf16.msra.mxu1 %v8035_v50 }
 0x5ee   :  { %6195 = vrcp.f32 %v2446_v51  ;;  %5373 = vmatprep.subr.bf16.mxu0 %v8036_v43  ;;  %5405 = vmatprep.subr.bf16.mxu1 %v8088_v34  ;;  %v8152_v51 = vld [vmem:[#allocation18_spill] sm:$0xff] }
 0x5ef   :  { %6197 = vtanh.f32 %v2450_v56  ;;  %v8153_v56 = vld [vmem:[#allocation19_spill] sm:$0xff] }
 0x5f1   :  { %5375 = vmatpush1.bf16.msra.mxu0 %v8089_v21  ;;  %5407 = vmatpush1.bf16.msra.mxu1 %v8090_v37 }
 0x5f2   :  { %5377 = vmatprep.subr.bf16.mxu0 %v8091_v16  ;;  %5409 = vmatprep.subr.bf16.mxu1 %v8092_v1 }
 0x5f5   :  { %5379 = vmatpush1.bf16.msra.mxu0 %v8093_v63  ;;  %5411 = vmatpush1.bf16.msra.mxu1 %v8042_v8 }
 0x5f6   :  { %5381 = vmatprep.subr.bf16.mxu0 %v8043_v23  ;;  %5413 = vmatprep.subr.bf16.mxu1 %v8044_v10 }
 0x5f8   :  { %v6196_v36 = vpop.eup %6195 }
 0x5f9   :  { %v2454_v57 = vrot.slane %v6196_v36, 2  ;;  %v6198_v55 = vpop.eup %6197  ;;  %5383 = vmatpush1.bf16.msra.mxu0 %v6726_v29  ;;  %5415 = vmatpush1.bf16.msra.mxu1 %v8045_v45 }
 0x5fa   :  { %v2457_v19 = vmul.f32 %v6198_v55, %v6196_v36  ;;  %5385 = vmatprep.subr.bf16.mxu0 %v8046_v61  ;;  %5417 = vmatprep.subr.bf16.mxu1 %v8047_v60  ;;  %v8156_v55 = vld [vmem:[#allocation22_spill] sm:$0xff] }
 0x5fb   :  { %v2456_v44 = vmul.f32 %v2454_v57, %v7133_v7  ;;  %v2460_v7 = vrot.slane %v6196_v36, 4  ;;  %v8154_v36 = vld [vmem:[#allocation20_spill] sm:$0xff]  ;;  %v8155_v57 = vld [vmem:[#allocation21_spill] sm:$0xff] }
 0x5fd   :  { %v7252_v40 = vadd.f32 %v2457_v19, %v2456_v44  ;;  %5387 = vmatpush1.bf16.msra.mxu0 %v7995_v58  ;;  %5419 = vmatpush1.bf16.msra.mxu1 %v7996_v46  ;;  %v8157_v19 = vld [vmem:[#allocation23_spill] sm:$0xff]  ;;  %v8158_v44 = vld [vmem:[#allocation24_spill] sm:$0xff] }
 0x5fe   :  { %5389 = vmatprep.subr.bf16.mxu0 %v7997_v3  ;;  %5421 = vmatprep.subr.bf16.mxu1 %v7998_v24 }
 0x5ff   :  { %6199 = vtanh.f32 %v7252_v40 }
 0x601   :  { %5391 = vmatpush1.bf16.msra.mxu0 %v7999_v28  ;;  %5423 = vmatpush1.bf16.msra.mxu1 %v8000_v30 }
 0x602   :  { %5425 = vmatprep.subr.bf16.mxu0 %v8001_v15  ;;  %5457 = vmatprep.subr.bf16.mxu1 %v8002_v0 }
 0x609   :  { %v6200_v25 = vpop.eup %6199 }
 0x60a   :  { %v2462_v39 = vmul.f32 %v6200_v25, %v2460_v7  ;;  %v8159_v7 = vld [vmem:[#allocation25_spill] sm:$0xff]  ;;  %v8160_v25 = vld [vmem:[#allocation26_spill] sm:$0xff] }
 0x60c   :  { %2670 = vmatmul.mubr.f32.vlgmr.msra.gmra.mrb[18].mxu0 %v2462_v39  ;;  %2741 = vmatmul.mubr.f32.vlgmr.msra.gmra.mrb[18].mxu1 %v2462_v39 }
 0x60d   :  { %5427 = vmatpush1.bf16.msra.mxu0 %v6466_v9  ;;  %5459 = vmatpush1.bf16.msra.mxu1 %v6469_v13 }
 0x60e   :  { %5429 = vmatprep.subr.bf16.mxu0 %v6473_v17  ;;  %5461 = vmatprep.subr.bf16.mxu1 %v6475_v18 }
 0x60f   :  { %2841 = vmatprep.mubr.f32.mxu0 %v7920_v32  ;;  %2912 = vmatprep.mubr.f32.mxu1 %v7920_v32 }
 0x611   :  { %5431 = vmatpush1.bf16.msra.mxu0 %v6478_v22  ;;  %5463 = vmatpush1.bf16.msra.mxu1 %v6482_v26 }
 0x612   :  { %5433 = vmatprep.subr.bf16.mxu0 %v6484_v27  ;;  %5465 = vmatprep.subr.bf16.mxu1 %v6486_v31 }
 0x615   :  { %5435 = vmatpush1.bf16.msra.mxu0 %v6489_v35  ;;  %5467 = vmatpush1.bf16.msra.mxu1 %v8145_v33 }
 0x616   :  { %5437 = vmatprep.subr.bf16.mxu0 %v8146_v11  ;;  %5469 = vmatprep.subr.bf16.mxu1 %v8147_v49 }
 0x619   :  { %5439 = vmatpush1.bf16.msra.mxu0 %v8148_v52  ;;  %5471 = vmatpush1.bf16.msra.mxu1 %v8149_v53 }
 0x61a   :  { %5441 = vmatprep.subr.bf16.mxu0 %v8150_v6  ;;  %5473 = vmatprep.subr.bf16.mxu1 %v8151_v20  ;;  %v8161_v6 = vld [vmem:[#allocation27_spill] sm:$0xff]  ;;  %v8162_v20 = vld [vmem:[#allocation28_spill] sm:$0xff] }
 0x61d   :  { %5443 = vmatpush1.bf16.msra.mxu0 %v8152_v51  ;;  %5475 = vmatpush1.bf16.msra.mxu1 %v8153_v56  ;;  %v8163_v51 = vld [vmem:[#allocation29_spill] sm:$0xff]  ;;  %v8164_v56 = vld [vmem:[#allocation30_spill] sm:$0xff] }
 0x61e   :  { %5445 = vmatprep.subr.bf16.mxu0 %v8154_v36  ;;  %5477 = vmatprep.subr.bf16.mxu1 %v8155_v57  ;;  %v8165_v36 = vld [vmem:[#allocation31_spill] sm:$0xff]  ;;  %v8166_v57 = vld [vmem:[#allocation32_spill] sm:$0xff] }
 0x621   :  { %5447 = vmatpush1.bf16.msra.mxu0 %v8156_v55  ;;  %5479 = vmatpush1.bf16.msra.mxu1 %v8157_v19  ;;  %v8167_v55 = vld [vmem:[#allocation33_spill] sm:$0xff]  ;;  %v8200_v19 = vld [vmem:[#allocation95_spill] sm:$0xff] }
 0x622   :  { %5449 = vmatprep.subr.bf16.mxu0 %v8158_v44  ;;  %5481 = vmatprep.subr.bf16.mxu1 %v8159_v7  ;;  %v8168_v44 = vld [vmem:[#allocation34_spill] sm:$0xff]  ;;  %v8169_v7 = vld [vmem:[#allocation35_spill] sm:$0xff] }
 0x625   :  { %5451 = vmatpush1.bf16.msra.mxu0 %v8160_v25  ;;  %5483 = vmatpush1.bf16.msra.mxu1 %v8161_v6  ;;  %v8170_v25 = vld [vmem:[#allocation36_spill] sm:$0xff]  ;;  %v8171_v6 = vld [vmem:[#allocation37_spill] sm:$0xff] }
 0x626   :  { %5453 = vmatprep.subr.bf16.mxu0 %v8162_v20  ;;  %5485 = vmatprep.subr.bf16.mxu1 %v8163_v51  ;;  %v8181_v51 = vld [vmem:[#allocation47_spill] sm:$0xff]  ;;  %v8182_v20 = vld [vmem:[#allocation48_spill] sm:$0xff] }
 0x629   :  { %5455 = vmatpush1.bf16.msra.mxu0 %v8164_v56  ;;  %5487 = vmatpush1.bf16.msra.mxu1 %v8165_v36  ;;  %v8172_v56 = vld [vmem:[#allocation38_spill] sm:$0xff]  ;;  %v8173_v36 = vld [vmem:[#allocation39_spill] sm:$0xff] }
 0x62a   :  { %5489 = vmatprep.subr.bf16.mxu0 %v8166_v57  ;;  %5521 = vmatprep.subr.bf16.mxu1 %v8167_v55  ;;  %v8174_v57 = vld [vmem:[#allocation40_spill] sm:$0xff]  ;;  %v8175_v55 = vld [vmem:[#allocation41_spill] sm:$0xff] }
 0x62c   :  { %2842 = vmatmul.mubr.f32.vlgmr.msra.gmra.mrb[20].mxu0 %v2462_v39  ;;  %2913 = vmatmul.mubr.f32.vlgmr.msra.gmra.mrb[20].mxu1 %v2462_v39  ;;  %v8176_v39 = vld [vmem:[#allocation42_spill] sm:$0xff] }
 0x62d   :  { %5491 = vmatpush1.bf16.msra.mxu0 %v8168_v44  ;;  %5523 = vmatpush1.bf16.msra.mxu1 %v8169_v7  ;;  %v8177_v44 = vld [vmem:[#allocation43_spill] sm:$0xff]  ;;  %v8178_v7 = vld [vmem:[#allocation44_spill] sm:$0xff] }
 0x62e   :  { %5493 = vmatprep.subr.bf16.mxu0 %v8170_v25  ;;  %5525 = vmatprep.subr.bf16.mxu1 %v8171_v6  ;;  %v8179_v25 = vld [vmem:[#allocation45_spill] sm:$0xff]  ;;  %v8180_v6 = vld [vmem:[#allocation46_spill] sm:$0xff] }
 0x62f   :  { %3026 = vmatprep.mubr.f32.mxu0 %v7920_v32  ;;  %3097 = vmatprep.mubr.f32.mxu1 %v7920_v32 }
 0x631   :  { %5495 = vmatpush1.bf16.msra.mxu0 %v8172_v56  ;;  %5527 = vmatpush1.bf16.msra.mxu1 %v8173_v36  ;;  %v8183_v56 = vld [vmem:[#allocation49_spill] sm:$0xff]  ;;  %v8184_v36 = vld [vmem:[#allocation50_spill] sm:$0xff] }
 0x632   :  { %5497 = vmatprep.subr.bf16.mxu0 %v8174_v57  ;;  %5529 = vmatprep.subr.bf16.mxu1 %v8175_v55  ;;  %v8185_v57 = vld [vmem:[#allocation51_spill] sm:$0xff]  ;;  %v8186_v55 = vld [vmem:[#allocation52_spill] sm:$0xff] }
 0x635   :  { %5499 = vmatpush1.bf16.msra.mxu0 %v8176_v39  ;;  %5531 = vmatpush1.bf16.msra.mxu1 %v8177_v44  ;;  %v8187_v39 = vld [vmem:[#allocation53_spill] sm:$0xff]  ;;  %v8188_v44 = vld [vmem:[#allocation54_spill] sm:$0xff] }
 0x636   :  { %5501 = vmatprep.subr.bf16.mxu0 %v8178_v7  ;;  %5533 = vmatprep.subr.bf16.mxu1 %v8179_v25  ;;  %v8189_v7 = vld [vmem:[#allocation55_spill] sm:$0xff]  ;;  %v8190_v25 = vld [vmem:[#allocation56_spill] sm:$0xff] }
 0x639   :  { %5503 = vmatpush1.bf16.msra.mxu0 %v8180_v6  ;;  %5535 = vmatpush1.bf16.msra.mxu1 %v8181_v51  ;;  %v8191_v6 = vld [vmem:[#allocation57_spill] sm:$0xff]  ;;  %v8192_v51 = vld [vmem:[#allocation58_spill] sm:$0xff] }
 0x63a   :  { %5505 = vmatprep.subr.bf16.mxu0 %v8182_v20  ;;  %5537 = vmatprep.subr.bf16.mxu1 %v8183_v56  ;;  %v8193_v20 = vld [vmem:[#allocation59_spill] sm:$0xff]  ;;  %v8194_v56 = vld [vmem:[#allocation60_spill] sm:$0xff] }
 0x63d   :  { %5507 = vmatpush1.bf16.msra.mxu0 %v8184_v36  ;;  %5539 = vmatpush1.bf16.msra.mxu1 %v8185_v57  ;;  %v8195_v36 = vld [vmem:[#allocation61_spill] sm:$0xff]  ;;  %v8196_v57 = vld [vmem:[#allocation62_spill] sm:$0xff] }
 0x63e   :  { %5509 = vmatprep.subr.bf16.mxu0 %v8186_v55  ;;  %5541 = vmatprep.subr.bf16.mxu1 %v8187_v39  ;;  %v8197_v55 = vld [vmem:[#allocation63_spill] sm:$0xff]  ;;  %v8198_v39 = vld [vmem:[#allocation64_spill] sm:$0xff] }
 0x641   :  { %5511 = vmatpush1.bf16.msra.mxu0 %v8188_v44  ;;  %5543 = vmatpush1.bf16.msra.mxu1 %v8189_v7  ;;  %v8199_v44 = vld [vmem:[#allocation65_spill] sm:$0xff] }
 0x642   :  { %5513 = vmatprep.subr.bf16.mxu0 %v8190_v25  ;;  %5545 = vmatprep.subr.bf16.mxu1 %v8191_v6 }
 0x645   :  { %5515 = vmatpush1.bf16.msra.mxu0 %v8192_v51  ;;  %5547 = vmatpush1.bf16.msra.mxu1 %v8193_v20 }
 0x646   :  { %5517 = vmatprep.subr.bf16.mxu0 %v8194_v56  ;;  %5549 = vmatprep.subr.bf16.mxu1 %v8195_v36  ;;  %v8201_v36 = vld [vmem:[#allocation96_spill] sm:$0xff] }
 0x649   :  { %5519 = vmatpush1.bf16.msra.mxu0 %v8196_v57  ;;  %5551 = vmatpush1.bf16.msra.mxu1 %v8197_v55 }
 0x64a   :  { %5553 = vmatprep.subr.bf16.mxu0 %v8198_v39  ;;  %5585 = vmatprep.subr.bf16.mxu1 %v8199_v44 }
 0x6df   :  { %v2671_v7 = vpop.f32.mrb[18].mxu0  ;;  %v2742_v25 = vpop.f32.mrb[18].mxu1 }
 0x6e0   :  { %v6040_v6 = vadd.f32 %v2671_v7, %v8200_v19  ;;  %v2673_v53 = vpop.f32.mrb[19].mxu0  ;;  %v2744_v51 = vpop.f32.mrb[19].mxu1  ;;  %v6042_v57 = vadd.f32 %v2742_v25, %v8201_v36 }
 0x6e1   :  { %v6041_v20 = vadd.f32 %v2673_v53, %v6848_v62  ;;  %v6043_v55 = vadd.f32 %v2744_v51, %v6856_v14 }
 0x6e2   :  { %v4393_v52 = vmul.f32 -1.442695, %v6040_v6  ;;  %v4395_v49 = vmul.f32 -1.442695, %v6042_v57 }
 0x6e3   :  { %v4394_v56 = vmul.f32 -1.442695, %v6041_v20 }
 0x6e4   :  { %6201 = vpow2.f32 %v4393_v52 }
 0x6e5   :  { %6203 = vpow2.f32 %v4394_v56 }
 0x6e6   :  { %6205 = vtanh.f32 %v6043_v55 }
 0x6e7   :  { %6207 = vpow2.f32 %v4395_v49 }
 0x6ee   :  { %v6202_v39 = vpop.eup %6201 }
 0x6ef   :  { %v2760_v11 = vadd.f32 1.0, %v6202_v39  ;;  %v6204_v44 = vpop.eup %6203 }
 0x6f0   :  { %v2761_v7 = vadd.f32 1.0, %v6204_v44  ;;  %v6206_v19 = vpop.eup %6205 }
 0x6f1   :  { %6209 = vrcp.f32 %v2760_v11  ;;  %v6208_v33 = vpop.eup %6207 }
 0x6f2   :  { %6211 = vrcp.f32 %v2761_v7  ;;  %v2762_v52 = vadd.f32 1.0, %v6208_v33  ;;  %v4396_v33 = vld [vmem:[%s7675_s0 + $0x28] sm:$0xff] }
 0x6f4   :  { %6213 = vrcp.f32 %v2762_v52 }
 0x6fb   :  { %v6210_v53 = vpop.eup %6209 }
 0x6fc   :  { %v2771_v6 = vmul.f32 %v6210_v53, %v6206_v19  ;;  %v6212_v20 = vpop.eup %6211 }
 0x6fd   :  { %v2770_v56 = vmul.f32 %v6212_v20, %v7217_v2 }
 0x6fe   :  { %v6214_v53 = vpop.eup %6213 }
 0x6ff   :  { %v2843_v25 = vpop.f32.mrb[20].mxu0  ;;  %v2914_v36 = vpop.f32.mrb[20].mxu1  ;;  %v7336_v51 = vadd.f32 %v2771_v6, %v2770_v56 }
 0x700   :  { %v2845_v57 = vpop.f32.mrb[21].mxu0  ;;  %v2916_v39 = vpop.f32.mrb[21].mxu1 }
 0x701   :  { %v2923_v55 = vcombine.low %v2843_v25, %v2845_v57  ;;  %v2924_v49 = vcombine.low %v2914_v36, %v2916_v39  ;;  %6215 = vtanh.f32 %v7336_v51 }
 0x703   :  { %v2931_v11 = vrot.slane %v2923_v55, %v6763_v42  ;;  %v2938_v44 = vrot.slane %v2924_v49, %v6763_v42 }
 0x705   :  { %v2939_v2 = vcombine.low %v2931_v11, %v2938_v44 }
 0x707   :  { %v2941_v19 = vadd.f32 %v4396_v33, %v2939_v2  ;;  %v8202_v2 = vld [vmem:[#allocation11_spill] sm:$0xff] }
 0x709   :  { %v4397_v7 = vmul.f32 -1.442695, %v2941_v19  ;;  %v2949_v56 = vrot.slane %v2941_v19, 6  ;;  %v8203_v19 = vld [vmem:[#allocation12_spill] sm:$0xff] }
 0x70b   :  { %6217 = vpow2.f32 %v4397_v7  ;;  %v6216_v6 = vpop.eup %6215  ;;  %v8204_v7 = vld [vmem:[#allocation13_spill] sm:$0xff] }
 0x70c   :  { %v2774_v20 = vmul.f32 %v6216_v6, %v6214_v53  ;;  %v8205_v53 = vld [vmem:[#allocation14_spill] sm:$0xff]  ;;  %v8206_v6 = vld [vmem:[#allocation15_spill] sm:$0xff] }
 0x70e   :  { %3027 = vmatmul.mubr.f32.vlgmr.msra.gmra.mrb[22].mxu0 %v2774_v20  ;;  %3098 = vmatmul.mubr.f32.vlgmr.msra.gmra.mrb[22].mxu1 %v2774_v20  ;;  %v8207_v20 = vld [vmem:[#allocation16_spill] sm:$0xff] }
 0x70f   :  { %5555 = vmatpush1.bf16.msra.mxu0 %v7974_v48  ;;  %5587 = vmatpush1.bf16.msra.mxu1 %v7975_v5 }
 0x710   :  { %5557 = vmatprep.subr.bf16.mxu0 %v7976_v4  ;;  %5589 = vmatprep.subr.bf16.mxu1 %v7977_v59 }
 0x711   :  { %3168 = vmatprep.mubr.f32.mxu0 %v7920_v32  ;;  %3239 = vmatprep.mubr.f32.mxu1 %v7920_v32 }
 0x713   :  { %5559 = vmatpush1.bf16.msra.mxu0 %v8031_v38  ;;  %5591 = vmatpush1.bf16.msra.mxu1 %v8032_v54 }
 0x714   :  { %5561 = vmatprep.subr.bf16.mxu0 %v8033_v12  ;;  %5593 = vmatprep.subr.bf16.mxu1 %v7981_v41 }
 0x715   :  { %v6218_v36 = vpop.eup %6217 }
 0x716   :  { %v2945_v52 = vadd.f32 1.0, %v6218_v36  ;;  %v8208_v36 = vld [vmem:[#allocation17_spill] sm:$0xff] }
 0x717   :  { %5563 = vmatpush1.bf16.msra.mxu0 %v8034_v47  ;;  %5595 = vmatpush1.bf16.msra.mxu1 %v8035_v50 }
 0x718   :  { %6219 = vrcp.f32 %v2945_v52  ;;  %5565 = vmatprep.subr.bf16.mxu0 %v8036_v43  ;;  %5597 = vmatprep.subr.bf16.mxu1 %v8088_v34  ;;  %v8209_v52 = vld [vmem:[#allocation18_spill] sm:$0xff] }
 0x719   :  { %6221 = vtanh.f32 %v2949_v56  ;;  %v8210_v56 = vld [vmem:[#allocation19_spill] sm:$0xff] }
 0x71b   :  { %5567 = vmatpush1.bf16.msra.mxu0 %v8089_v21  ;;  %5599 = vmatpush1.bf16.msra.mxu1 %v8090_v37 }
 0x71c   :  { %5569 = vmatprep.subr.bf16.mxu0 %v8091_v16  ;;  %5601 = vmatprep.subr.bf16.mxu1 %v8092_v1 }
 0x71f   :  { %5571 = vmatpush1.bf16.msra.mxu0 %v8093_v63  ;;  %5603 = vmatpush1.bf16.msra.mxu1 %v8042_v8 }
 0x720   :  { %5573 = vmatprep.subr.bf16.mxu0 %v8043_v23  ;;  %5605 = vmatprep.subr.bf16.mxu1 %v8044_v10 }
 0x722   :  { %v6220_v25 = vpop.eup %6219 }
 0x723   :  { %v2953_v57 = vrot.slane %v6220_v25, 2  ;;  %v6222_v39 = vpop.eup %6221  ;;  %5575 = vmatpush1.bf16.msra.mxu0 %v6726_v29  ;;  %5607 = vmatpush1.bf16.msra.mxu1 %v8045_v45 }
 0x724   :  { %v2956_v55 = vmul.f32 %v6222_v39, %v6220_v25  ;;  %5577 = vmatprep.subr.bf16.mxu0 %v8046_v61  ;;  %5609 = vmatprep.subr.bf16.mxu1 %v8047_v60  ;;  %v8213_v39 = vld [vmem:[#allocation22_spill] sm:$0xff] }
 0x725   :  { %v2955_v49 = vmul.f32 %v2953_v57, %v7252_v40  ;;  %v2959_v40 = vrot.slane %v6220_v25, 4  ;;  %v8211_v25 = vld [vmem:[#allocation20_spill] sm:$0xff]  ;;  %v8212_v57 = vld [vmem:[#allocation21_spill] sm:$0xff] }
 0x727   :  { %v7371_v11 = vadd.f32 %v2956_v55, %v2955_v49  ;;  %5579 = vmatpush1.bf16.msra.mxu0 %v7995_v58  ;;  %5611 = vmatpush1.bf16.msra.mxu1 %v7996_v46  ;;  %v8214_v55 = vld [vmem:[#allocation23_spill] sm:$0xff]  ;;  %v8215_v49 = vld [vmem:[#allocation24_spill] sm:$0xff] }
 0x728   :  { %5581 = vmatprep.subr.bf16.mxu0 %v7997_v3  ;;  %5613 = vmatprep.subr.bf16.mxu1 %v7998_v24 }
 0x729   :  { %6223 = vtanh.f32 %v7371_v11 }
 0x72b   :  { %5583 = vmatpush1.bf16.msra.mxu0 %v7999_v28  ;;  %5615 = vmatpush1.bf16.msra.mxu1 %v8000_v30 }
 0x72c   :  { %5617 = vmatprep.subr.bf16.mxu0 %v8001_v15  ;;  %5649 = vmatprep.subr.bf16.mxu1 %v8002_v0 }
 0x733   :  { %v6224_v44 = vpop.eup %6223 }
 0x734   :  { %v2961_v33 = vmul.f32 %v6224_v44, %v2959_v40  ;;  %v8216_v40 = vld [vmem:[#allocation25_spill] sm:$0xff]  ;;  %v8217_v44 = vld [vmem:[#allocation26_spill] sm:$0xff] }
 0x736   :  { %3169 = vmatmul.mubr.f32.vlgmr.msra.gmra.mrb[22].mxu0 %v2961_v33  ;;  %3240 = vmatmul.mubr.f32.vlgmr.msra.gmra.mrb[22].mxu1 %v2961_v33 }
 0x737   :  { %5619 = vmatpush1.bf16.msra.mxu0 %v6466_v9  ;;  %5651 = vmatpush1.bf16.msra.mxu1 %v6469_v13 }
 0x738   :  { %5621 = vmatprep.subr.bf16.mxu0 %v6473_v17  ;;  %5653 = vmatprep.subr.bf16.mxu1 %v6475_v18 }
 0x739   :  { %3340 = vmatprep.mubr.f32.mxu0 %v7920_v32  ;;  %3411 = vmatprep.mubr.f32.mxu1 %v7920_v32 }
 0x73b   :  { %5623 = vmatpush1.bf16.msra.mxu0 %v6478_v22  ;;  %5655 = vmatpush1.bf16.msra.mxu1 %v6482_v26 }
 0x73c   :  { %5625 = vmatprep.subr.bf16.mxu0 %v6484_v27  ;;  %5657 = vmatprep.subr.bf16.mxu1 %v6486_v31 }
 0x73f   :  { %5627 = vmatpush1.bf16.msra.mxu0 %v6489_v35  ;;  %5659 = vmatpush1.bf16.msra.mxu1 %v8202_v2 }
 0x740   :  { %5629 = vmatprep.subr.bf16.mxu0 %v8203_v19  ;;  %5661 = vmatprep.subr.bf16.mxu1 %v8204_v7 }
 0x743   :  { %5631 = vmatpush1.bf16.msra.mxu0 %v8205_v53  ;;  %5663 = vmatpush1.bf16.msra.mxu1 %v8206_v6 }
 0x744   :  { %5633 = vmatprep.subr.bf16.mxu0 %v8207_v20  ;;  %5665 = vmatprep.subr.bf16.mxu1 %v8208_v36  ;;  %v8218_v20 = vld [vmem:[#allocation27_spill] sm:$0xff]  ;;  %v8219_v36 = vld [vmem:[#allocation28_spill] sm:$0xff] }
 0x747   :  { %5635 = vmatpush1.bf16.msra.mxu0 %v8209_v52  ;;  %5667 = vmatpush1.bf16.msra.mxu1 %v8210_v56  ;;  %v8220_v52 = vld [vmem:[#allocation29_spill] sm:$0xff]  ;;  %v8221_v56 = vld [vmem:[#allocation30_spill] sm:$0xff] }
 0x748   :  { %5637 = vmatprep.subr.bf16.mxu0 %v8211_v25  ;;  %5669 = vmatprep.subr.bf16.mxu1 %v8212_v57  ;;  %v8222_v25 = vld [vmem:[#allocation31_spill] sm:$0xff]  ;;  %v8223_v57 = vld [vmem:[#allocation32_spill] sm:$0xff] }
 0x74b   :  { %5639 = vmatpush1.bf16.msra.mxu0 %v8213_v39  ;;  %5671 = vmatpush1.bf16.msra.mxu1 %v8214_v55  ;;  %v8224_v39 = vld [vmem:[#allocation33_spill] sm:$0xff]  ;;  %v8257_v55 = vld [vmem:[#allocation95_spill] sm:$0xff] }
 0x74c   :  { %5641 = vmatprep.subr.bf16.mxu0 %v8215_v49  ;;  %5673 = vmatprep.subr.bf16.mxu1 %v8216_v40  ;;  %v8225_v49 = vld [vmem:[#allocation34_spill] sm:$0xff]  ;;  %v8226_v40 = vld [vmem:[#allocation35_spill] sm:$0xff] }
 0x74f   :  { %5643 = vmatpush1.bf16.msra.mxu0 %v8217_v44  ;;  %5675 = vmatpush1.bf16.msra.mxu1 %v8218_v20  ;;  %v8227_v44 = vld [vmem:[#allocation36_spill] sm:$0xff]  ;;  %v8228_v20 = vld [vmem:[#allocation37_spill] sm:$0xff] }
 0x750   :  { %5645 = vmatprep.subr.bf16.mxu0 %v8219_v36  ;;  %5677 = vmatprep.subr.bf16.mxu1 %v8220_v52  ;;  %v8238_v52 = vld [vmem:[#allocation47_spill] sm:$0xff]  ;;  %v8239_v36 = vld [vmem:[#allocation48_spill] sm:$0xff] }
 0x753   :  { %5647 = vmatpush1.bf16.msra.mxu0 %v8221_v56  ;;  %5679 = vmatpush1.bf16.msra.mxu1 %v8222_v25  ;;  %v8229_v56 = vld [vmem:[#allocation38_spill] sm:$0xff]  ;;  %v8230_v25 = vld [vmem:[#allocation39_spill] sm:$0xff] }
 0x754   :  { %5681 = vmatprep.subr.bf16.mxu0 %v8223_v57  ;;  %5713 = vmatprep.subr.bf16.mxu1 %v8224_v39  ;;  %v8231_v57 = vld [vmem:[#allocation40_spill] sm:$0xff]  ;;  %v8232_v39 = vld [vmem:[#allocation41_spill] sm:$0xff] }
 0x756   :  { %3341 = vmatmul.mubr.f32.vlgmr.msra.gmra.mrb[24].mxu0 %v2961_v33  ;;  %3412 = vmatmul.mubr.f32.vlgmr.msra.gmra.mrb[24].mxu1 %v2961_v33  ;;  %v8233_v33 = vld [vmem:[#allocation42_spill] sm:$0xff] }
 0x757   :  { %5683 = vmatpush1.bf16.msra.mxu0 %v8225_v49  ;;  %5715 = vmatpush1.bf16.msra.mxu1 %v8226_v40  ;;  %v8234_v49 = vld [vmem:[#allocation43_spill] sm:$0xff]  ;;  %v8235_v40 = vld [vmem:[#allocation44_spill] sm:$0xff] }
 0x758   :  { %5685 = vmatprep.subr.bf16.mxu0 %v8227_v44  ;;  %5717 = vmatprep.subr.bf16.mxu1 %v8228_v20  ;;  %v8236_v44 = vld [vmem:[#allocation45_spill] sm:$0xff]  ;;  %v8237_v20 = vld [vmem:[#allocation46_spill] sm:$0xff] }
 0x759   :  { %3525 = vmatprep.mubr.f32.mxu0 %v7920_v32  ;;  %3596 = vmatprep.mubr.f32.mxu1 %v7920_v32 }
 0x75b   :  { %5687 = vmatpush1.bf16.msra.mxu0 %v8229_v56  ;;  %5719 = vmatpush1.bf16.msra.mxu1 %v8230_v25  ;;  %v8240_v56 = vld [vmem:[#allocation49_spill] sm:$0xff]  ;;  %v8241_v25 = vld [vmem:[#allocation50_spill] sm:$0xff] }
 0x75c   :  { %5689 = vmatprep.subr.bf16.mxu0 %v8231_v57  ;;  %5721 = vmatprep.subr.bf16.mxu1 %v8232_v39  ;;  %v8242_v57 = vld [vmem:[#allocation51_spill] sm:$0xff]  ;;  %v8243_v39 = vld [vmem:[#allocation52_spill] sm:$0xff] }
 0x75f   :  { %5691 = vmatpush1.bf16.msra.mxu0 %v8233_v33  ;;  %5723 = vmatpush1.bf16.msra.mxu1 %v8234_v49  ;;  %v8244_v33 = vld [vmem:[#allocation53_spill] sm:$0xff]  ;;  %v8245_v49 = vld [vmem:[#allocation54_spill] sm:$0xff] }
 0x760   :  { %5693 = vmatprep.subr.bf16.mxu0 %v8235_v40  ;;  %5725 = vmatprep.subr.bf16.mxu1 %v8236_v44  ;;  %v8246_v40 = vld [vmem:[#allocation55_spill] sm:$0xff]  ;;  %v8247_v44 = vld [vmem:[#allocation56_spill] sm:$0xff] }
 0x763   :  { %5695 = vmatpush1.bf16.msra.mxu0 %v8237_v20  ;;  %5727 = vmatpush1.bf16.msra.mxu1 %v8238_v52  ;;  %v8248_v20 = vld [vmem:[#allocation57_spill] sm:$0xff]  ;;  %v8249_v52 = vld [vmem:[#allocation58_spill] sm:$0xff] }
 0x764   :  { %5697 = vmatprep.subr.bf16.mxu0 %v8239_v36  ;;  %5729 = vmatprep.subr.bf16.mxu1 %v8240_v56  ;;  %v8250_v36 = vld [vmem:[#allocation59_spill] sm:$0xff]  ;;  %v8251_v56 = vld [vmem:[#allocation60_spill] sm:$0xff] }
 0x767   :  { %5699 = vmatpush1.bf16.msra.mxu0 %v8241_v25  ;;  %5731 = vmatpush1.bf16.msra.mxu1 %v8242_v57  ;;  %v8252_v25 = vld [vmem:[#allocation61_spill] sm:$0xff]  ;;  %v8253_v57 = vld [vmem:[#allocation62_spill] sm:$0xff] }
 0x768   :  { %5701 = vmatprep.subr.bf16.mxu0 %v8243_v39  ;;  %5733 = vmatprep.subr.bf16.mxu1 %v8244_v33  ;;  %v8254_v39 = vld [vmem:[#allocation63_spill] sm:$0xff]  ;;  %v8255_v33 = vld [vmem:[#allocation64_spill] sm:$0xff] }
 0x76b   :  { %5703 = vmatpush1.bf16.msra.mxu0 %v8245_v49  ;;  %5735 = vmatpush1.bf16.msra.mxu1 %v8246_v40  ;;  %v8256_v49 = vld [vmem:[#allocation65_spill] sm:$0xff] }
 0x76c   :  { %5705 = vmatprep.subr.bf16.mxu0 %v8247_v44  ;;  %5737 = vmatprep.subr.bf16.mxu1 %v8248_v20 }
 0x76f   :  { %5707 = vmatpush1.bf16.msra.mxu0 %v8249_v52  ;;  %5739 = vmatpush1.bf16.msra.mxu1 %v8250_v36 }
 0x770   :  { %5709 = vmatprep.subr.bf16.mxu0 %v8251_v56  ;;  %5741 = vmatprep.subr.bf16.mxu1 %v8252_v25  ;;  %v8258_v25 = vld [vmem:[#allocation96_spill] sm:$0xff] }
 0x773   :  { %5711 = vmatpush1.bf16.msra.mxu0 %v8253_v57  ;;  %5743 = vmatpush1.bf16.msra.mxu1 %v8254_v39 }
 0x774   :  { %5745 = vmatprep.subr.bf16.mxu0 %v8255_v33  ;;  %5777 = vmatprep.subr.bf16.mxu1 %v8256_v49 }
 0x809   :  { %v3170_v40 = vpop.f32.mrb[22].mxu0  ;;  %v3241_v44 = vpop.f32.mrb[22].mxu1 }
 0x80a   :  { %v6044_v20 = vadd.f32 %v3170_v40, %v8257_v55  ;;  %v3172_v6 = vpop.f32.mrb[23].mxu0  ;;  %v3243_v52 = vpop.f32.mrb[23].mxu1  ;;  %v6046_v57 = vadd.f32 %v3241_v44, %v8258_v25 }
 0x80b   :  { %v6045_v36 = vadd.f32 %v3172_v6, %v6848_v62  ;;  %v6047_v39 = vadd.f32 %v3243_v52, %v6856_v14 }
 0x80c   :  { %v4398_v53 = vmul.f32 -1.442695, %v6044_v20  ;;  %v4400_v7 = vmul.f32 -1.442695, %v6046_v57 }
 0x80d   :  { %v4399_v56 = vmul.f32 -1.442695, %v6045_v36 }
 0x80e   :  { %6225 = vpow2.f32 %v4398_v53 }
 0x80f   :  { %6227 = vpow2.f32 %v4399_v56 }
 0x810   :  { %6229 = vtanh.f32 %v6047_v39 }
 0x811   :  { %6231 = vpow2.f32 %v4400_v7 }
 0x818   :  { %v6226_v33 = vpop.eup %6225 }
 0x819   :  { %v3259_v19 = vadd.f32 1.0, %v6226_v33  ;;  %v6228_v49 = vpop.eup %6227 }
 0x81a   :  { %v3260_v40 = vadd.f32 1.0, %v6228_v49  ;;  %v6230_v55 = vpop.eup %6229 }
 0x81b   :  { %6233 = vrcp.f32 %v3259_v19  ;;  %v6232_v2 = vpop.eup %6231 }
 0x81c   :  { %6235 = vrcp.f32 %v3260_v40  ;;  %v3261_v53 = vadd.f32 1.0, %v6232_v2  ;;  %v4401_v2 = vld [vmem:[%s7675_s0 + $0x30] sm:$0xff] }
 0x81e   :  { %6237 = vrcp.f32 %v3261_v53 }
 0x825   :  { %v6234_v6 = vpop.eup %6233 }
 0x826   :  { %v3270_v20 = vmul.f32 %v6234_v6, %v6230_v55  ;;  %v6236_v36 = vpop.eup %6235 }
 0x827   :  { %v3269_v56 = vmul.f32 %v6236_v36, %v7336_v51 }
 0x828   :  { %v6238_v6 = vpop.eup %6237 }
 0x829   :  { %v3342_v44 = vpop.f32.mrb[24].mxu0  ;;  %v3413_v25 = vpop.f32.mrb[24].mxu1  ;;  %v7455_v52 = vadd.f32 %v3270_v20, %v3269_v56 }
 0x82a   :  { %v3344_v57 = vpop.f32.mrb[25].mxu0  ;;  %v3415_v33 = vpop.f32.mrb[25].mxu1 }
 0x82b   :  { %v3422_v39 = vcombine.low %v3342_v44, %v3344_v57  ;;  %v3423_v7 = vcombine.low %v3413_v25, %v3415_v33  ;;  %6239 = vtanh.f32 %v7455_v52 }
 0x82d   :  { %v3430_v19 = vrot.slane %v3422_v39, %v6763_v42  ;;  %v3437_v49 = vrot.slane %v3423_v7, %v6763_v42 }
 0x82f   :  { %v3438_v51 = vcombine.low %v3430_v19, %v3437_v49 }
 0x831   :  { %v3440_v55 = vadd.f32 %v4401_v2, %v3438_v51  ;;  %v8270_v51 = vld [vmem:[#allocation22_spill] sm:$0xff] }
 0x833   :  { %v4402_v40 = vmul.f32 -1.442695, %v3440_v55  ;;  %v3448_v56 = vrot.slane %v3440_v55, 6  ;;  %v8271_v55 = vld [vmem:[#allocation23_spill] sm:$0xff] }
 0x835   :  { %6241 = vpow2.f32 %v4402_v40  ;;  %v6240_v20 = vpop.eup %6239  ;;  %v8272_v40 = vld [vmem:[#allocation24_spill] sm:$0xff] }
 0x836   :  { %v3273_v36 = vmul.f32 %v6240_v20, %v6238_v6  ;;  %v8273_v6 = vld [vmem:[#allocation25_spill] sm:$0xff]  ;;  %v8274_v20 = vld [vmem:[#allocation26_spill] sm:$0xff] }
 0x838   :  { %3526 = vmatmul.mubr.f32.vlgmr.msra.gmra.mrb[26].mxu0 %v3273_v36  ;;  %3597 = vmatmul.mubr.f32.vlgmr.msra.gmra.mrb[26].mxu1 %v3273_v36  ;;  %v8275_v36 = vld [vmem:[#allocation27_spill] sm:$0xff] }
 0x839   :  { %5747 = vmatpush1.bf16.msra.mxu0 %v7974_v48  ;;  %5779 = vmatpush1.bf16.msra.mxu1 %v7975_v5 }
 0x83a   :  { %5749 = vmatprep.subr.bf16.mxu0 %v7976_v4  ;;  %5781 = vmatprep.subr.bf16.mxu1 %v7977_v59 }
 0x83b   :  { %3667 = vmatprep.mubr.f32.mxu0 %v7920_v32  ;;  %3738 = vmatprep.mubr.f32.mxu1 %v7920_v32 }
 0x83d   :  { %5751 = vmatpush1.bf16.msra.mxu0 %v8031_v38  ;;  %5783 = vmatpush1.bf16.msra.mxu1 %v8032_v54 }
 0x83e   :  { %5753 = vmatprep.subr.bf16.mxu0 %v8033_v12  ;;  %5785 = vmatprep.subr.bf16.mxu1 %v7981_v41 }
 0x83f   :  { %v6242_v25 = vpop.eup %6241 }
 0x840   :  { %v3444_v53 = vadd.f32 1.0, %v6242_v25  ;;  %v8276_v25 = vld [vmem:[#allocation28_spill] sm:$0xff] }
 0x841   :  { %5755 = vmatpush1.bf16.msra.mxu0 %v8034_v47  ;;  %5787 = vmatpush1.bf16.msra.mxu1 %v8035_v50 }
 0x842   :  { %6243 = vrcp.f32 %v3444_v53  ;;  %5757 = vmatprep.subr.bf16.mxu0 %v8036_v43  ;;  %5789 = vmatprep.subr.bf16.mxu1 %v8088_v34  ;;  %v8277_v53 = vld [vmem:[#allocation29_spill] sm:$0xff] }
 0x843   :  { %6245 = vtanh.f32 %v3448_v56  ;;  %v8278_v56 = vld [vmem:[#allocation30_spill] sm:$0xff] }
 0x845   :  { %5759 = vmatpush1.bf16.msra.mxu0 %v8089_v21  ;;  %5791 = vmatpush1.bf16.msra.mxu1 %v8090_v37 }
 0x846   :  { %5761 = vmatprep.subr.bf16.mxu0 %v8091_v16  ;;  %5793 = vmatprep.subr.bf16.mxu1 %v8092_v1 }
 0x849   :  { %5763 = vmatpush1.bf16.msra.mxu0 %v8093_v63  ;;  %5795 = vmatpush1.bf16.msra.mxu1 %v8042_v8 }
 0x84a   :  { %5765 = vmatprep.subr.bf16.mxu0 %v8043_v23  ;;  %5797 = vmatprep.subr.bf16.mxu1 %v8044_v10 }
 0x84c   :  { %v6244_v44 = vpop.eup %6243 }
 0x84d   :  { %v3452_v57 = vrot.slane %v6244_v44, 2  ;;  %v6246_v33 = vpop.eup %6245  ;;  %5767 = vmatpush1.bf16.msra.mxu0 %v6726_v29  ;;  %5799 = vmatpush1.bf16.msra.mxu1 %v8045_v45 }
 0x84e   :  { %v3455_v39 = vmul.f32 %v6246_v33, %v6244_v44  ;;  %5769 = vmatprep.subr.bf16.mxu0 %v8046_v61  ;;  %5801 = vmatprep.subr.bf16.mxu1 %v8047_v60  ;;  %v8281_v33 = vld [vmem:[#allocation33_spill] sm:$0xff] }
 0x84f   :  { %v3454_v7 = vmul.f32 %v3452_v57, %v7371_v11  ;;  %v3458_v11 = vrot.slane %v6244_v44, 4  ;;  %v8279_v44 = vld [vmem:[#allocation31_spill] sm:$0xff]  ;;  %v8280_v57 = vld [vmem:[#allocation32_spill] sm:$0xff] }
 0x851   :  { %v7490_v19 = vadd.f32 %v3455_v39, %v3454_v7  ;;  %5771 = vmatpush1.bf16.msra.mxu0 %v7995_v58  ;;  %5803 = vmatpush1.bf16.msra.mxu1 %v7996_v46  ;;  %v8282_v39 = vld [vmem:[#allocation34_spill] sm:$0xff]  ;;  %v8283_v7 = vld [vmem:[#allocation35_spill] sm:$0xff] }
 0x852   :  { %5773 = vmatprep.subr.bf16.mxu0 %v7997_v3  ;;  %5805 = vmatprep.subr.bf16.mxu1 %v7998_v24 }
 0x853   :  { %6247 = vtanh.f32 %v7490_v19 }
 0x855   :  { %5775 = vmatpush1.bf16.msra.mxu0 %v7999_v28  ;;  %5807 = vmatpush1.bf16.msra.mxu1 %v8000_v30 }
 0x856   :  { %5809 = vmatprep.subr.bf16.mxu0 %v8001_v15  ;;  %5841 = vmatprep.subr.bf16.mxu1 %v8002_v0  ;;  %v8263_v15 = vld [vmem:[#allocation15_spill] sm:$0xff]  ;;  %v8264_v0 = vld [vmem:[#allocation16_spill] sm:$0xff] }
 0x85d   :  { %v6248_v49 = vpop.eup %6247 }
 0x85e   :  { %v3460_v2 = vmul.f32 %v6248_v49, %v3458_v11  ;;  %v8284_v11 = vld [vmem:[#allocation36_spill] sm:$0xff]  ;;  %v8285_v49 = vld [vmem:[#allocation37_spill] sm:$0xff] }
 0x860   :  { %3668 = vmatmul.mubr.f32.vlgmr.msra.gmra.mrb[26].mxu0 %v3460_v2  ;;  %3739 = vmatmul.mubr.f32.vlgmr.msra.gmra.mrb[26].mxu1 %v3460_v2 }
 0x861   :  { %5811 = vmatpush1.bf16.msra.mxu0 %v6466_v9  ;;  %5843 = vmatpush1.bf16.msra.mxu1 %v6469_v13  ;;  %v8259_v9 = vld [vmem:[#allocation11_spill] sm:$0xff]  ;;  %v8260_v13 = vld [vmem:[#allocation12_spill] sm:$0xff] }
 0x862   :  { %5813 = vmatprep.subr.bf16.mxu0 %v6473_v17  ;;  %5845 = vmatprep.subr.bf16.mxu1 %v6475_v18  ;;  %v8261_v17 = vld [vmem:[#allocation13_spill] sm:$0xff]  ;;  %v8262_v18 = vld [vmem:[#allocation14_spill] sm:$0xff] }
 0x863   :  { %3839 = vmatprep.mubr.f32.mxu0 %v7920_v32  ;;  %3910 = vmatprep.mubr.f32.mxu1 %v7920_v32 }
 0x865   :  { %5815 = vmatpush1.bf16.msra.mxu0 %v6478_v22  ;;  %5847 = vmatpush1.bf16.msra.mxu1 %v6482_v26  ;;  %v8265_v22 = vld [vmem:[#allocation17_spill] sm:$0xff]  ;;  %v8266_v26 = vld [vmem:[#allocation18_spill] sm:$0xff] }
 0x866   :  { %5817 = vmatprep.subr.bf16.mxu0 %v6484_v27  ;;  %5849 = vmatprep.subr.bf16.mxu1 %v6486_v31  ;;  %v8267_v27 = vld [vmem:[#allocation19_spill] sm:$0xff]  ;;  %v8268_v31 = vld [vmem:[#allocation20_spill] sm:$0xff] }
 0x869   :  { %5819 = vmatpush1.bf16.msra.mxu0 %v6489_v35  ;;  %5851 = vmatpush1.bf16.msra.mxu1 %v8259_v9  ;;  %v8269_v35 = vld [vmem:[#allocation21_spill] sm:$0xff]  ;;  %v8286_v9 = vld [vmem:[#allocation38_spill] sm:$0xff] }
 0x86a   :  { %5821 = vmatprep.subr.bf16.mxu0 %v8260_v13  ;;  %5853 = vmatprep.subr.bf16.mxu1 %v8261_v17  ;;  %v8287_v13 = vld [vmem:[#allocation39_spill] sm:$0xff]  ;;  %v8288_v17 = vld [vmem:[#allocation40_spill] sm:$0xff] }
 0x86d   :  { %5823 = vmatpush1.bf16.msra.mxu0 %v8262_v18  ;;  %5855 = vmatpush1.bf16.msra.mxu1 %v8263_v15  ;;  %v8289_v18 = vld [vmem:[#allocation41_spill] sm:$0xff]  ;;  %v8291_v15 = vld [vmem:[#allocation43_spill] sm:$0xff] }
 0x86e   :  { %5825 = vmatprep.subr.bf16.mxu0 %v8264_v0  ;;  %5857 = vmatprep.subr.bf16.mxu1 %v8265_v22  ;;  %v8292_v0 = vld [vmem:[#allocation44_spill] sm:$0xff]  ;;  %v8293_v22 = vld [vmem:[#allocation45_spill] sm:$0xff] }
 0x871   :  { %5827 = vmatpush1.bf16.msra.mxu0 %v8266_v26  ;;  %5859 = vmatpush1.bf16.msra.mxu1 %v8267_v27  ;;  %v8294_v26 = vld [vmem:[#allocation46_spill] sm:$0xff]  ;;  %v8295_v27 = vld [vmem:[#allocation47_spill] sm:$0xff] }
 0x872   :  { %5829 = vmatprep.subr.bf16.mxu0 %v8268_v31  ;;  %5861 = vmatprep.subr.bf16.mxu1 %v8269_v35  ;;  %v8296_v31 = vld [vmem:[#allocation48_spill] sm:$0xff]  ;;  %v8297_v35 = vld [vmem:[#allocation49_spill] sm:$0xff] }
 0x875   :  { %5831 = vmatpush1.bf16.msra.mxu0 %v8270_v51  ;;  %5863 = vmatpush1.bf16.msra.mxu1 %v8271_v55  ;;  %v8298_v51 = vld [vmem:[#allocation50_spill] sm:$0xff]  ;;  %v8299_v55 = vld [vmem:[#allocation51_spill] sm:$0xff] }
 0x876   :  { %5833 = vmatprep.subr.bf16.mxu0 %v8272_v40  ;;  %5865 = vmatprep.subr.bf16.mxu1 %v8273_v6  ;;  %v8300_v40 = vld [vmem:[#allocation52_spill] sm:$0xff]  ;;  %v8301_v6 = vld [vmem:[#allocation53_spill] sm:$0xff] }
 0x879   :  { %5835 = vmatpush1.bf16.msra.mxu0 %v8274_v20  ;;  %5867 = vmatpush1.bf16.msra.mxu1 %v8275_v36  ;;  %v8302_v20 = vld [vmem:[#allocation54_spill] sm:$0xff]  ;;  %v8303_v36 = vld [vmem:[#allocation55_spill] sm:$0xff] }
 0x87a   :  { %5837 = vmatprep.subr.bf16.mxu0 %v8276_v25  ;;  %5869 = vmatprep.subr.bf16.mxu1 %v8277_v53  ;;  %v8304_v25 = vld [vmem:[#allocation56_spill] sm:$0xff]  ;;  %v8305_v53 = vld [vmem:[#allocation57_spill] sm:$0xff] }
 0x87d   :  { %5839 = vmatpush1.bf16.msra.mxu0 %v8278_v56  ;;  %5871 = vmatpush1.bf16.msra.mxu1 %v8279_v44  ;;  %v8306_v56 = vld [vmem:[#allocation58_spill] sm:$0xff]  ;;  %v8307_v44 = vld [vmem:[#allocation59_spill] sm:$0xff] }
 0x87e   :  { %5873 = vmatprep.subr.bf16.mxu0 %v8280_v57  ;;  %5905 = vmatprep.subr.bf16.mxu1 %v8281_v33  ;;  %v8308_v57 = vld [vmem:[#allocation60_spill] sm:$0xff]  ;;  %v8309_v33 = vld [vmem:[#allocation61_spill] sm:$0xff] }
 0x880   :  { %3840 = vmatmul.mubr.f32.vlgmr.msra.gmra.mrb[28].mxu0 %v3460_v2  ;;  %3911 = vmatmul.mubr.f32.vlgmr.msra.gmra.mrb[28].mxu1 %v3460_v2  ;;  %v8290_v2 = vld [vmem:[#allocation42_spill] sm:$0xff] }
 0x881   :  { %5875 = vmatpush1.bf16.msra.mxu0 %v8282_v39  ;;  %5907 = vmatpush1.bf16.msra.mxu1 %v8283_v7  ;;  %v8310_v39 = vld [vmem:[#allocation62_spill] sm:$0xff]  ;;  %v8311_v7 = vld [vmem:[#allocation63_spill] sm:$0xff] }
 0x882   :  { %5877 = vmatprep.subr.bf16.mxu0 %v8284_v11  ;;  %5909 = vmatprep.subr.bf16.mxu1 %v8285_v49  ;;  %v8312_v11 = vld [vmem:[#allocation64_spill] sm:$0xff]  ;;  %v8313_v49 = vld [vmem:[#allocation65_spill] sm:$0xff] }
 0x883   :  { %4024 = vmatprep.mubr.f32.mxu0 %v7920_v32  ;;  %4095 = vmatprep.mubr.f32.mxu1 %v7920_v32 }
 0x885   :  { %5879 = vmatpush1.bf16.msra.mxu0 %v8286_v9  ;;  %5911 = vmatpush1.bf16.msra.mxu1 %v8287_v13 }
 0x886   :  { %5881 = vmatprep.subr.bf16.mxu0 %v8288_v17  ;;  %5913 = vmatprep.subr.bf16.mxu1 %v8289_v18  ;;  %v8314_v17 = vld [vmem:[#allocation95_spill] sm:$0xff] }
 0x889   :  { %5883 = vmatpush1.bf16.msra.mxu0 %v8290_v2  ;;  %5915 = vmatpush1.bf16.msra.mxu1 %v8291_v15 }
 0x88a   :  { %5885 = vmatprep.subr.bf16.mxu0 %v8292_v0  ;;  %5917 = vmatprep.subr.bf16.mxu1 %v8293_v22 }
 0x88d   :  { %5887 = vmatpush1.bf16.msra.mxu0 %v8294_v26  ;;  %5919 = vmatpush1.bf16.msra.mxu1 %v8295_v27  ;;  %v8315_v27 = vld [vmem:[#allocation96_spill] sm:$0xff] }
 0x88e   :  { %5889 = vmatprep.subr.bf16.mxu0 %v8296_v31  ;;  %5921 = vmatprep.subr.bf16.mxu1 %v8297_v35 }
 0x891   :  { %5891 = vmatpush1.bf16.msra.mxu0 %v8298_v51  ;;  %5923 = vmatpush1.bf16.msra.mxu1 %v8299_v55 }
 0x892   :  { %5893 = vmatprep.subr.bf16.mxu0 %v8300_v40  ;;  %5925 = vmatprep.subr.bf16.mxu1 %v8301_v6 }
 0x895   :  { %5895 = vmatpush1.bf16.msra.mxu0 %v8302_v20  ;;  %5927 = vmatpush1.bf16.msra.mxu1 %v8303_v36 }
 0x896   :  { %5897 = vmatprep.subr.bf16.mxu0 %v8304_v25  ;;  %5929 = vmatprep.subr.bf16.mxu1 %v8305_v53 }
 0x899   :  { %5899 = vmatpush1.bf16.msra.mxu0 %v8306_v56  ;;  %5931 = vmatpush1.bf16.msra.mxu1 %v8307_v44 }
 0x89a   :  { %5901 = vmatprep.subr.bf16.mxu0 %v8308_v57  ;;  %5933 = vmatprep.subr.bf16.mxu1 %v8309_v33 }
 0x89d   :  { %5903 = vmatpush1.bf16.msra.mxu0 %v8310_v39  ;;  %5935 = vmatpush1.bf16.msra.mxu1 %v8311_v7 }
 0x89e   :  { %5937 = vmatprep.subr.bf16.mxu0 %v8312_v11  ;;  %5969 = vmatprep.subr.bf16.mxu1 %v8313_v49 }
 0x933   :  { %v3669_v9 = vpop.f32.mrb[26].mxu0  ;;  %v3740_v13 = vpop.f32.mrb[26].mxu1 }
 0x934   :  { %v6048_v18 = vadd.f32 %v3669_v9, %v8314_v17  ;;  %v3671_v2 = vpop.f32.mrb[27].mxu0  ;;  %v3742_v15 = vpop.f32.mrb[27].mxu1  ;;  %v6050_v31 = vadd.f32 %v3740_v13, %v8315_v27 }
 0x935   :  { %v6049_v0 = vadd.f32 %v3671_v2, %v6848_v62  ;;  %v6051_v35 = vadd.f32 %v3742_v15, %v6856_v14 }
 0x936   :  { %v4403_v22 = vmul.f32 -1.442695, %v6048_v18  ;;  %v4405_v51 = vmul.f32 -1.442695, %v6050_v31 }
 0x937   :  { %v4404_v26 = vmul.f32 -1.442695, %v6049_v0  ;;  %v4406_v0 = vld [vmem:[%s7675_s0 + $0x38] sm:$0xff] }
 0x938   :  { %6249 = vpow2.f32 %v4403_v22 }
 0x939   :  { %6251 = vpow2.f32 %v4404_v26 }
 0x93a   :  { %6253 = vtanh.f32 %v6051_v35 }
 0x93b   :  { %6255 = vpow2.f32 %v4405_v51 }
 0x942   :  { %v6250_v55 = vpop.eup %6249 }
 0x943   :  { %v3758_v40 = vadd.f32 1.0, %v6250_v55  ;;  %v6252_v6 = vpop.eup %6251 }
 0x944   :  { %v3759_v20 = vadd.f32 1.0, %v6252_v6  ;;  %v6254_v36 = vpop.eup %6253  ;;  %v4286_v6 = vld [vmem:[%s7680_s5 + $0x70] sm:$0xff] }
 0x945   :  { %6257 = vrcp.f32 %v3758_v40  ;;  %v6256_v25 = vpop.eup %6255 }
 0x946   :  { %6259 = vrcp.f32 %v3759_v20  ;;  %v3760_v57 = vadd.f32 1.0, %v6256_v25  ;;  %v4287_v20 = vld [vmem:[%s7680_s5 + $0x78] sm:$0xff] }
 0x948   :  { %6261 = vrcp.f32 %v3760_v57 }
 0x94f   :  { %v6258_v53 = vpop.eup %6257 }
 0x950   :  { %v3769_v56 = vmul.f32 %v6258_v53, %v6254_v36  ;;  %v6260_v44 = vpop.eup %6259  ;;  %v6022_v36 = vpack.c.bf16 %v4287_v20, %v4286_v6 }
 0x951   :  { %v3768_v33 = vmul.f32 %v6260_v44, %v7455_v52 }
 0x952   :  { %v6262_v31 = vpop.eup %6261 }
 0x953   :  { %v3841_v39 = vpop.f32.mrb[28].mxu0  ;;  %v3912_v7 = vpop.f32.mrb[28].mxu1  ;;  %v7574_v11 = vadd.f32 %v3769_v56, %v3768_v33 }
 0x954   :  { %v3843_v49 = vpop.f32.mrb[29].mxu0  ;;  %v3914_v9 = vpop.f32.mrb[29].mxu1 }
 0x955   :  { %v3921_v13 = vcombine.low %v3841_v39, %v3843_v49  ;;  %v3922_v18 = vcombine.low %v3912_v7, %v3914_v9  ;;  %6263 = vtanh.f32 %v7574_v11 }
 0x957   :  { %v3929_v2 = vrot.slane %v3921_v13, %v6763_v42  ;;  %v3936_v15 = vrot.slane %v3922_v18, %v6763_v42 }
 0x959   :  { %v3937_v52 = vcombine.low %v3929_v2, %v3936_v15 }
 0x95b   :  { %v3939_v22 = vadd.f32 %v4406_v0, %v3937_v52 }
 0x95d   :  { %v4407_v26 = vmul.f32 -1.442695, %v3939_v22  ;;  %v3947_v55 = vrot.slane %v3939_v22, 6 }
 0x95f   :  { %6265 = vpow2.f32 %v4407_v26  ;;  %v6264_v35 = vpop.eup %6263 }
 0x960   :  { %v3772_v51 = vmul.f32 %v6264_v35, %v6262_v31 }
 0x962   :  { %4025 = vmatmul.mubr.f32.vlgmr.msra.gmra.mrb[30].mxu0 %v3772_v51  ;;  %4096 = vmatmul.mubr.f32.vlgmr.msra.gmra.mrb[30].mxu1 %v3772_v51 }
 0x963   :  { %5939 = vmatpush1.bf16.msra.mxu0 %v7974_v48  ;;  %5971 = vmatpush1.bf16.msra.mxu1 %v7975_v5 }
 0x964   :  { %5941 = vmatprep.subr.bf16.mxu0 %v7976_v4  ;;  %5973 = vmatprep.subr.bf16.mxu1 %v7977_v59 }
 0x965   :  { %4166 = vmatprep.mubr.f32.mxu0 %v7920_v32  ;;  %4237 = vmatprep.mubr.f32.mxu1 %v7920_v32 }
 0x967   :  { %5943 = vmatpush1.bf16.msra.mxu0 %v8031_v38  ;;  %5975 = vmatpush1.bf16.msra.mxu1 %v8032_v54 }
 0x968   :  { %5945 = vmatprep.subr.bf16.mxu0 %v8033_v12  ;;  %5977 = vmatprep.subr.bf16.mxu1 %v7981_v41 }
 0x969   :  { %v6266_v42 = vpop.eup %6265 }
 0x96a   :  { %v3943_v48 = vadd.f32 1.0, %v6266_v42  ;;  %v4411_v42 = vld [vmem:[%s7681_s6] ss:$0 sm:$0xff] }
 0x96b   :  { %5947 = vmatpush1.bf16.msra.mxu0 %v8034_v47  ;;  %5979 = vmatpush1.bf16.msra.mxu1 %v8035_v50  ;;  %v4276_v50 = vld [vmem:[%s7680_s5 + $0x20] sm:$0xff] }
 0x96c   :  { %6267 = vrcp.f32 %v3943_v48  ;;  %5949 = vmatprep.subr.bf16.mxu0 %v8036_v43  ;;  %5981 = vmatprep.subr.bf16.mxu1 %v8088_v34  ;;  %v4277_v43 = vld [vmem:[%s7680_s5 + $0x28] sm:$0xff] }
 0x96d   :  { %6269 = vtanh.f32 %v3947_v55  ;;  %v4281_v34 = vld [vmem:[%s7680_s5 + $0x48] sm:$0xff] }
 0x96f   :  { %5951 = vmatpush1.bf16.msra.mxu0 %v8089_v21  ;;  %5983 = vmatpush1.bf16.msra.mxu1 %v8090_v37  ;;  %v4282_v37 = vld [vmem:[%s7680_s5 + $0x50] sm:$0xff] }
 0x970   :  { %5953 = vmatprep.subr.bf16.mxu0 %v8091_v16  ;;  %5985 = vmatprep.subr.bf16.mxu1 %v8092_v1  ;;  %v4283_v16 = vld [vmem:[%s7680_s5 + $0x58] sm:$0xff] }
 0x971   :  { %v6016_v1 = vpack.c.bf16 %v4283_v16, %v4282_v37 }
 0x973   :  { %5955 = vmatpush1.bf16.msra.mxu0 %v8093_v63  ;;  %5987 = vmatpush1.bf16.msra.mxu1 %v8042_v8  ;;  %v4278_v8 = vld [vmem:[%s7680_s5 + $0x30] sm:$0xff]  ;;  %v4284_v63 = vld [vmem:[%s7680_s5 + $0x60] sm:$0xff] }
 0x974   :  { %5957 = vmatprep.subr.bf16.mxu0 %v8043_v23  ;;  %5989 = vmatprep.subr.bf16.mxu1 %v8044_v10  ;;  %v4279_v23 = vld [vmem:[%s7680_s5 + $0x38] sm:$0xff] }
 0x975   :  { %v6010_v10 = vpack.c.bf16 %v4279_v23, %v4278_v8 }
 0x976   :  { %v6268_v5 = vpop.eup %6267 }
 0x977   :  { %v3951_v4 = vrot.slane %v6268_v5, 2  ;;  %v6270_v59 = vpop.eup %6269  ;;  %5959 = vmatpush1.bf16.msra.mxu0 %v6726_v29  ;;  %5991 = vmatpush1.bf16.msra.mxu1 %v8045_v45  ;;  %v3957_v29 = vrot.slane %v6268_v5, 4  ;;  %v4280_v45 = vld [vmem:[%s7680_s5 + $0x40] sm:$0xff] }
 0x978   :  { %v3954_v41 = vmul.f32 %v6270_v59, %v6268_v5  ;;  %5961 = vmatprep.subr.bf16.mxu0 %v8046_v61  ;;  %5993 = vmatprep.subr.bf16.mxu1 %v8047_v60  ;;  %v6007_v60 = vpack.c.bf16 %v4277_v43, %v4276_v50  ;;  %v6013_v21 = vpack.c.bf16 %v4281_v34, %v4280_v45 }
 0x979   :  { %v3953_v38 = vmul.f32 %v3951_v4, %v7490_v19  ;;  %v4285_v19 = vld [vmem:[%s7680_s5 + $0x68] sm:$0xff] }
 0x97a   :  { %v6019_v40 = vpack.c.bf16 %v4285_v19, %v4284_v63 }
 0x97b   :  { %v3955_v54 = vadd.f32 %v3954_v41, %v3953_v38  ;;  %5963 = vmatpush1.bf16.msra.mxu0 %v7995_v58  ;;  %5995 = vmatpush1.bf16.msra.mxu1 %v7996_v46  ;;  %v4272_v58 = vld [vmem:[%s7680_s5] sm:$0xff] }
 0x97c   :  { %5965 = vmatprep.subr.bf16.mxu0 %v7997_v3  ;;  %5997 = vmatprep.subr.bf16.mxu1 %v7998_v24  ;;  %v4273_v3 = vld [vmem:[%s7680_s5 + $0x8] sm:$0xff]  ;;  %v6366_v24 = vmov 0.0|0.0  }
 0x97d   :  { %6271 = vtanh.f32 %v3955_v54  ;;  %v6001_v46 = vpack.c.bf16 %v4273_v3, %v4272_v58 }
 0x97f   :  { %5967 = vmatpush1.bf16.msra.mxu0 %v7999_v28  ;;  %5999 = vmatpush1.bf16.msra.mxu1 %v8000_v30  ;;  %v4274_v28 = vld [vmem:[%s7680_s5 + $0x10] sm:$0xff]  ;;  %v4275_v30 = vld [vmem:[%s7680_s5 + $0x18] sm:$0xff] }
 0x980   :  { %6000 = vmatprep.subr.bf16.mxu0 %v6366_v24  ;;  %v6004_v47 = vpack.c.bf16 %v4275_v30, %v4274_v28 }
 0x987   :  { %v6272_v61 = vpop.eup %6271 }
 0x988   :  { %v3959_v12 = vmul.f32 %v6272_v61, %v3957_v29 }
 0x98a   :  { %4167 = vmatmul.mubr.f32.vlgmr.msra.gmra.mrb[30].mxu0 %v3959_v12  ;;  %4238 = vmatmul.mubr.f32.vlgmr.msra.gmra.mrb[30].mxu1 %v3959_v12 }
 0x98b   :  { %6002 = vmatpush3.bf16.msra.mxu0 %v6001_v46  ;;  %4461 = vmatprep.mubr.msk.f32.mxu0 %vm6367_vm0, %v7920_v32 }
 0x98c   :  { %6003 = vmatprep.subr.bf16.mxu0 %v6366_v24 }
 0x98f   :  { %6005 = vmatpush3.bf16.msra.mxu0 %v6004_v47 }
 0x990   :  { %6006 = vmatprep.subr.bf16.mxu0 %v6366_v24 }
 0x993   :  { %6008 = vmatpush3.bf16.msra.mxu0 %v6007_v60 }
 0x994   :  { %6009 = vmatprep.subr.bf16.mxu0 %v6366_v24 }
 0x997   :  { %6011 = vmatpush3.bf16.msra.mxu0 %v6010_v10 }
 0x998   :  { %6012 = vmatprep.subr.bf16.mxu0 %v6366_v24 }
 0x99b   :  { %6014 = vmatpush3.bf16.msra.mxu0 %v6013_v21 }
 0x99c   :  { %6015 = vmatprep.subr.bf16.mxu0 %v6366_v24 }
 0x99f   :  { %6017 = vmatpush3.bf16.msra.mxu0 %v6016_v1 }
 0x9a0   :  { %6018 = vmatprep.subr.bf16.mxu0 %v6366_v24 }
 0x9a3   :  { %6020 = vmatpush3.bf16.msra.mxu0 %v6019_v40 }
 0x9a4   :  { %6021 = vmatprep.subr.bf16.mxu0 %v6366_v24 }
 0x9a7   :  { %6023 = vmatpush3.bf16.msra.mxu0 %v6022_v36 }
 0xa5d   :  { %v4168_v25 = vpop.f32.mrb[30].mxu0  ;;  %v4239_v53 = vpop.f32.mrb[30].mxu1 }
 0xa5e   :  { %v6052_v56 = vadd.f32 %v4168_v25, %v8314_v17  ;;  %v4170_v32 = vpop.f32.mrb[31].mxu0  ;;  %v4241_v44 = vpop.f32.mrb[31].mxu1  ;;  %v6054_v7 = vadd.f32 %v4239_v53, %v8315_v27 }
 0xa5f   :  { %v6053_v57 = vadd.f32 %v4170_v32, %v6848_v62  ;;  %v6055_v49 = vadd.f32 %v4241_v44, %v6856_v14 }
 0xa60   :  { %v4408_v33 = vmul.f32 -1.442695, %v6052_v56  ;;  %v4410_v9 = vmul.f32 -1.442695, %v6054_v7 }
 0xa61   :  { %v4409_v39 = vmul.f32 -1.442695, %v6053_v57 }
 0xa62   :  { %6273 = vpow2.f32 %v4408_v33 }
 0xa63   :  { %6275 = vpow2.f32 %v4409_v39 }
 0xa64   :  { %6277 = vtanh.f32 %v6055_v49 }
 0xa65   :  { %6279 = vpow2.f32 %v4410_v9 }
 0xa6c   :  { %v6274_v13 = vpop.eup %6273 }
 0xa6d   :  { %v4257_v18 = vadd.f32 1.0, %v6274_v13  ;;  %v6276_v2 = vpop.eup %6275 }
 0xa6e   :  { %v4258_v17 = vadd.f32 1.0, %v6276_v2  ;;  %v6278_v15 = vpop.eup %6277 }
 0xa6f   :  { %6281 = vrcp.f32 %v4257_v18  ;;  %v6280_v0 = vpop.eup %6279 }
 0xa70   :  { %6283 = vrcp.f32 %v4258_v17  ;;  %v4259_v26 = vadd.f32 1.0, %v6280_v0 }
 0xa72   :  { %6285 = vrcp.f32 %v4259_v26 }
 0xa79   :  { %v6282_v62 = vpop.eup %6281 }
 0xa7a   :  { %v4268_v52 = vmul.f32 %v6282_v62, %v6278_v15  ;;  %v6284_v22 = vpop.eup %6283 }
 0xa7b   :  { %v4267_v31 = vmul.f32 %v6284_v22, %v7574_v11 }
 0xa7c   :  { %v6286_v14 = vpop.eup %6285 }
 0xa7d   :  { %v4269_v27 = vadd.f32 %v4268_v52, %v4267_v31 }
 0xa7f   :  { %6287 = vtanh.f32 %v4269_v27 }
 0xa89   :  { %v6288_v35 = vpop.eup %6287 }
 0xa8a   :  { %v4271_v51 = vmul.f32 %v6288_v35, %v6286_v14 }
 0xa8c   :  { %4462 = vmatmul.mubr.f32.vlgmr.msra.gmra.mrb[32].mxu0 %v4271_v51 }
 0xb5f   :  { %v4361_v48 = vpop.f32.mrb[32].mxu0 }
 0xb60   :  { %v4362_v55 = vadd.f32 %v4411_v42, %v4361_v48  ;;  %v4463_v5 = vpop.f32.mrb[33].mxu0 }
 0xb62   :  { %4365 = vst [vmem:[%s7682_s7] sm:$0x3] %v4362_v55 }
 0xb63   :  { %4370 = vsyncpa [#allocation3], 1 }
 0xb64   :  { %4371 = vsyncpa [#allocation5], 1 }

</bundles_post_ra>
